<compile_context>
chip_gen: v5e
topology: v5e:2x2
jax: 0.10.0
libtpu: 0.0.40
codegen_flags: <defaults>
</compile_context>

<pallas_src>
import functools
import math

import jax
import jax.numpy as jnp
from jax.experimental import pallas as pl
from jax.experimental.pallas import tpu as pltpu

# ---------------- small synthetic BERT config ----------------
VOCAB = 100
HIDDEN = 32
N_HEADS = 4
HEAD_DIM = HIDDEN // N_HEADS
N_LAYERS = 2
INTERMEDIATE = 64
MAX_POS = 16
LN_EPS = 1e-12


# ---------------- fused encoder kernel ----------------
def _encoder_kernel(
    emb_ref, mask_ref, eg_ref, eb_ref,
    wqkv_ref, bqkv_ref, wo_ref, bo_ref,
    ln1g_ref, ln1b_ref, w1_ref, b1_ref,
    w2_ref, b2_ref, ln2g_ref, ln2b_ref,
    o_ref, ctx_ref,
    *, n_layers, n_heads, head_dim, batch, seq, eps,
):
    hidden = n_heads * head_dim
    scale = 1.0 / math.sqrt(head_dim)
    inv_sqrt2 = 1.0 / math.sqrt(2.0)

    def layernorm(x, g, b):
        # f32 statistics over the hidden (lane) axis
        mean = jnp.mean(x, axis=-1, keepdims=True)
        xc = x - mean
        var = jnp.mean(xc * xc, axis=-1, keepdims=True)
        return xc * jax.lax.rsqrt(var + eps) * g + b

    def matmul(x_f32, w_bf16, b_f32):
        # bf16 MXU operands, f32 accumulation
        return jnp.dot(
            x_f32.astype(jnp.bfloat16), w_bf16,
            preferred_element_type=jnp.float32,
        ) + b_f32

    # embedding LayerNorm (no zero residual)
    x = layernorm(emb_ref[...], eg_ref[...], eb_ref[...])       # [B*S, H] f32
    mask = mask_ref[...]                                        # [B, S] additive bias

    for l in range(n_layers):
        # ---- fused QKV projection: [B*S, H] @ [H, 3H] ----
        qkv = matmul(x, wqkv_ref[l], bqkv_ref[l])               # [B*S, 3H] f32

        # ---- self attention, per (batch, head), fully unrolled in-kernel ----
        for b in range(batch):
            rows = slice(b * seq, (b + 1) * seq)
            mb = mask[b:b + 1, :]                               # [1, S]
            for h in range(n_heads):
                lo = h * head_dim
                qh = qkv[rows, lo:lo + head_dim].astype(jnp.bfloat16)                # [S, dH]
                kh = qkv[rows, hidden + lo:hidden + lo + head_dim].astype(jnp.bfloat16)
                vh = qkv[rows, 2 * hidden + lo:2 * hidden + lo + head_dim].astype(jnp.bfloat16)

                # scores = q @ k^T  (contract last dims; no transpose)
                s = jax.lax.dot_general(
                    qh, kh, (((1,), (1,)), ((), ())),
                    preferred_element_type=jnp.float32,
                )                                               # [S, S] f32
                s = s * scale + mb
                s = s - jnp.max(s, axis=-1, keepdims=True)
                p = jnp.exp(s)
                p = p * pl.reciprocal(jnp.sum(p, axis=-1, keepdims=True), approx=True)

                ctx_ref[rows, lo:lo + head_dim] = jnp.dot(
                    p.astype(jnp.bfloat16), vh,
                    preferred_element_type=jnp.float32,
                )

        ctx = ctx_ref[...]                                      # [B*S, H] f32 (heads merged)

        # ---- output projection + residual + LayerNorm ----
        attn_out = matmul(ctx, wo_ref[l], bo_ref[l])
        x = layernorm(attn_out + x, ln1g_ref[l], ln1b_ref[l])

        # ---- feed-forward (GELU) + residual + LayerNorm ----
        h1 = matmul(x, w1_ref[l], b1_ref[l])                    # [B*S, I]
        h1 = 0.5 * h1 * (1.0 + jax.lax.erf(h1 * inv_sqrt2))     # exact erf GELU, f32
        ffn = matmul(h1, w2_ref[l], b2_ref[l])
        x = layernorm(ffn + x, ln2g_ref[l], ln2b_ref[l])

    # single lane-dense [B*S, H] store
    o_ref[...] = x


# ---------------- parameters (deterministic synthetic init) ----------------
def init_params(key):
    keys = iter(jax.random.split(key, 16))

    def nrm(shape, dtype=jnp.float32, scale=0.02):
        return (scale * jax.random.normal(next(keys), shape)).astype(dtype)

    L = N_LAYERS
    params = {
        # embeddings stay f32 (gather glue outside the kernel)
        "word_emb": nrm((VOCAB, HIDDEN)),
        "pos_emb": nrm((MAX_POS, HIDDEN)),
        "type_emb": nrm((2, HIDDEN)),
        "emb_ln_g": jnp.ones((1, HIDDEN), jnp.float32),
        "emb_ln_b": jnp.zeros((1, HIDDEN), jnp.float32),
        # layer weights stacked on a leading L axis; matmul weights pre-cast to bf16
        "wqkv": nrm((L, HIDDEN, 3 * HIDDEN), jnp.bfloat16),
        "bqkv": jnp.zeros((L, 1, 3 * HIDDEN), jnp.float32),
        "wo": nrm((L, HIDDEN, HIDDEN), jnp.bfloat16),
        "bo": jnp.zeros((L, 1, HIDDEN), jnp.float32),
        "ln1_g": jnp.ones((L, 1, HIDDEN), jnp.float32),
        "ln1_b": jnp.zeros((L, 1, HIDDEN), jnp.float32),
        "w1": nrm((L, HIDDEN, INTERMEDIATE), jnp.bfloat16),
        "b1": jnp.zeros((L, 1, INTERMEDIATE), jnp.float32),
        "w2": nrm((L, INTERMEDIATE, HIDDEN), jnp.bfloat16),
        "b2": jnp.zeros((L, 1, HIDDEN), jnp.float32),
        "ln2_g": jnp.ones((L, 1, HIDDEN), jnp.float32),
        "ln2_b": jnp.zeros((L, 1, HIDDEN), jnp.float32),
    }
    return params


# ---------------- forward (mirrors BertModel(token_ids, attention_mask).last_hidden_state) ----------------
@jax.jit
def bert_encoder_forward(params, token_ids, attn_mask):
    # TODO(synk): BERT WordPiece tokenization / index_retrieve bookkeeping is string
    # processing and has no Pallas equivalent; token_ids/attn_mask are taken as inputs.
    B, S = token_ids.shape

    # glue: tiny embedding gathers, summed on host side of the kernel
    emb = (params["word_emb"][token_ids]
           + params["pos_emb"][:S][None, :, :]
           + params["type_emb"][0][None, None, :])              # [B, S, H]
    emb = emb.reshape(B * S, HIDDEN).astype(jnp.float32)

    # HF-style additive attention mask: 0 where attended, -10000 where padded
    mask_bias = (1.0 - attn_mask.astype(jnp.float32)) * -10000.0  # [B, S]

    kern = functools.partial(
        _encoder_kernel,
        n_layers=N_LAYERS, n_heads=N_HEADS, head_dim=HEAD_DIM,
        batch=B, seq=S, eps=LN_EPS,
    )
    vmem = pl.BlockSpec(memory_space=pltpu.MemorySpace.VMEM)

    out = pl.pallas_call(
        kern,
        out_shape=jax.ShapeDtypeStruct((B * S, HIDDEN), jnp.float32),
        in_specs=[vmem] * 16,
        out_specs=vmem,
        scratch_shapes=[pltpu.VMEM((B * S, HIDDEN), jnp.float32)],  # merged-head ctx buffer
    )(
        emb, mask_bias,
        params["emb_ln_g"], params["emb_ln_b"],
        params["wqkv"], params["bqkv"],
        params["wo"], params["bo"],
        params["ln1_g"], params["ln1_b"],
        params["w1"], params["b1"],
        params["w2"], params["b2"],
        params["ln2_g"], params["ln2_b"],
    )
    return out.reshape(B, S, HIDDEN)   # == last_hidden_state


if __name__ == "__main__":
    key = jax.random.PRNGKey(0)
    pkey, tkey = jax.random.split(key)
    params = init_params(pkey)

    B, S = 2, 8
    token_ids = jax.random.randint(tkey, (B, S), minval=1, maxval=VOCAB, dtype=jnp.int32)
    # second sequence padded after 6 tokens (pad id 0, mask 0), like a real batch
    attn_mask = jnp.array([[1] * S, [1] * 6 + [0] * 2], dtype=jnp.int32)
    token_ids = token_ids * attn_mask
    input_lengths = jnp.sum(attn_mask, axis=-1)  # analogue of the module's input_lengths

    cont_reps = bert_encoder_forward(params, token_ids, attn_mask)
    cont_reps = jax.block_until_ready(cont_reps)

    assert cont_reps.shape == (B, S, HIDDEN)
    assert bool(jnp.all(jnp.isfinite(cont_reps)))
    _ = jax.block_until_ready(input_lengths)
    print("KERNEL_OK")
</pallas_src>

<mosaic_0001>
module attributes {stable_mosaic.version = 11 : i64} {
  func.func @_encoder_kernel(%arg0: memref<16x32xf32, #tpu.memory_space<vmem>>, %arg1: memref<2x8xf32, #tpu.memory_space<vmem>>, %arg2: memref<1x32xf32, #tpu.memory_space<vmem>>, %arg3: memref<1x32xf32, #tpu.memory_space<vmem>>, %arg4: memref<2x32x96xbf16, #tpu.memory_space<vmem>>, %arg5: memref<2x1x96xf32, #tpu.memory_space<vmem>>, %arg6: memref<2x32x32xbf16, #tpu.memory_space<vmem>>, %arg7: memref<2x1x32xf32, #tpu.memory_space<vmem>>, %arg8: memref<2x1x32xf32, #tpu.memory_space<vmem>>, %arg9: memref<2x1x32xf32, #tpu.memory_space<vmem>>, %arg10: memref<2x32x64xbf16, #tpu.memory_space<vmem>>, %arg11: memref<2x1x64xf32, #tpu.memory_space<vmem>>, %arg12: memref<2x64x32xbf16, #tpu.memory_space<vmem>>, %arg13: memref<2x1x32xf32, #tpu.memory_space<vmem>>, %arg14: memref<2x1x32xf32, #tpu.memory_space<vmem>>, %arg15: memref<2x1x32xf32, #tpu.memory_space<vmem>>, %arg16: memref<16x32xf32, #tpu.memory_space<vmem>>, %arg17: memref<16x32xf32, #tpu.memory_space<vmem>>) attributes {dimension_semantics = [], scalar_prefetch = 0 : i64, scratch_operands = 1 : i64, tpu.core_type = #tpu.core_type<tc>} {
    %c0 = arith.constant 0 : index
    %c0_0 = arith.constant 0 : index
    %0 = vector.load %arg0[%c0, %c0_0] : memref<16x32xf32, #tpu.memory_space<vmem>>, vector<16x32xf32>
    %c0_1 = arith.constant 0 : index
    %c0_2 = arith.constant 0 : index
    %1 = vector.load %arg2[%c0_1, %c0_2] : memref<1x32xf32, #tpu.memory_space<vmem>>, vector<1x32xf32>
    %c0_3 = arith.constant 0 : index
    %c0_4 = arith.constant 0 : index
    %2 = vector.load %arg3[%c0_3, %c0_4] : memref<1x32xf32, #tpu.memory_space<vmem>>, vector<1x32xf32>
    %cst = arith.constant dense<0.000000e+00> : vector<16xf32>
    %3 = vector.multi_reduction <add>, %0, %cst [1] : vector<16x32xf32> to vector<16xf32>
    %4 = vector.shape_cast %3 : vector<16xf32> to vector<16x1xf32>
    %cst_5 = arith.constant 3.200000e+01 : f32
    %5 = vector.broadcast %cst_5 : f32 to vector<16x1xf32>
    %6 = arith.divf %4, %5 : vector<16x1xf32>
    %7 = vector.broadcast %6 : vector<16x1xf32> to vector<16x32xf32>
    %8 = arith.subf %0, %7 : vector<16x32xf32>
    %9 = arith.mulf %8, %8 : vector<16x32xf32>
    %cst_6 = arith.constant dense<0.000000e+00> : vector<16xf32>
    %10 = vector.multi_reduction <add>, %9, %cst_6 [1] : vector<16x32xf32> to vector<16xf32>
    %11 = vector.shape_cast %10 : vector<16xf32> to vector<16x1xf32>
    %cst_7 = arith.constant 3.200000e+01 : f32
    %12 = vector.broadcast %cst_7 : f32 to vector<16x1xf32>
    %13 = arith.divf %11, %12 : vector<16x1xf32>
    %cst_8 = arith.constant 9.99999996E-13 : f32
    %14 = vector.broadcast %cst_8 : f32 to vector<16x1xf32>
    %15 = arith.addf %13, %14 : vector<16x1xf32>
    %16 = math.rsqrt %15 : vector<16x1xf32>
    %17 = vector.broadcast %16 : vector<16x1xf32> to vector<16x32xf32>
    %18 = arith.mulf %8, %17 : vector<16x32xf32>
    %19 = vector.broadcast %1 : vector<1x32xf32> to vector<16x32xf32>
    %20 = arith.mulf %18, %19 : vector<16x32xf32>
    %21 = vector.broadcast %2 : vector<1x32xf32> to vector<16x32xf32>
    %22 = arith.addf %20, %21 : vector<16x32xf32>
    %c0_9 = arith.constant 0 : index
    %c0_10 = arith.constant 0 : index
    %23 = vector.load %arg1[%c0_9, %c0_10] : memref<2x8xf32, #tpu.memory_space<vmem>>, vector<2x8xf32>
    %c0_11 = arith.constant 0 : index
    %c0_12 = arith.constant 0 : index
    %c0_13 = arith.constant 0 : index
    %24 = vector.load %arg4[%c0_11, %c0_12, %c0_13] : memref<2x32x96xbf16, #tpu.memory_space<vmem>>, vector<1x32x96xbf16>
    %25 = vector.shape_cast %24 : vector<1x32x96xbf16> to vector<32x96xbf16>
    %c0_14 = arith.constant 0 : index
    %c0_15 = arith.constant 0 : index
    %c0_16 = arith.constant 0 : index
    %26 = vector.load %arg5[%c0_14, %c0_15, %c0_16] : memref<2x1x96xf32, #tpu.memory_space<vmem>>, vector<1x1x96xf32>
    %27 = vector.shape_cast %26 : vector<1x1x96xf32> to vector<1x96xf32>
    %28 = arith.truncf %22 : vector<16x32xf32> to vector<16x32xbf16>
    %cst_17 = arith.constant dense<0.000000e+00> : vector<16x96xf32>
    %29 = tpu.matmul %28, %25, %cst_17 {dimension_numbers = #tpu.dot_dimension_numbers<[1], [0], [0], [1], [0, 0, 1, 1], [], []>} : vector<16x32xbf16>, vector<32x96xbf16>, vector<16x96xf32> -> vector<16x96xf32>
    %30 = vector.broadcast %27 : vector<1x96xf32> to vector<16x96xf32>
    %31 = arith.addf %29, %30 : vector<16x96xf32>
    %32 = vector.extract_strided_slice %23 {offsets = [0, 0], sizes = [1, 8], strides = [1, 1]} : vector<2x8xf32> to vector<1x8xf32>
    %33 = vector.extract_strided_slice %31 {offsets = [0, 0], sizes = [8, 8], strides = [1, 1]} : vector<16x96xf32> to vector<8x8xf32>
    %34 = arith.truncf %33 : vector<8x8xf32> to vector<8x8xbf16>
    %35 = vector.extract_strided_slice %31 {offsets = [0, 32], sizes = [8, 8], strides = [1, 1]} : vector<16x96xf32> to vector<8x8xf32>
    %36 = arith.truncf %35 : vector<8x8xf32> to vector<8x8xbf16>
    %37 = vector.extract_strided_slice %31 {offsets = [0, 64], sizes = [8, 8], strides = [1, 1]} : vector<16x96xf32> to vector<8x8xf32>
    %38 = arith.truncf %37 : vector<8x8xf32> to vector<8x8xbf16>
    %cst_18 = arith.constant dense<0.000000e+00> : vector<8x8xf32>
    %39 = tpu.matmul %34, %36, %cst_18 {dimension_numbers = #tpu.dot_dimension_numbers<[1], [1], [0], [0], [0, 0, 1, 0], [], []>} : vector<8x8xbf16>, vector<8x8xbf16>, vector<8x8xf32> -> vector<8x8xf32>
    %cst_19 = arith.constant 0.353553385 : f32
    %40 = vector.broadcast %cst_19 : f32 to vector<8x8xf32>
    %41 = arith.mulf %39, %40 : vector<8x8xf32>
    %42 = vector.broadcast %32 : vector<1x8xf32> to vector<8x8xf32>
    %43 = arith.addf %41, %42 : vector<8x8xf32>
    %cst_20 = arith.constant dense<0xFF800000> : vector<8xf32>
    %44 = vector.multi_reduction <maximumf>, %43, %cst_20 [1] : vector<8x8xf32> to vector<8xf32>
    %45 = vector.shape_cast %44 : vector<8xf32> to vector<8x1xf32>
    %46 = vector.broadcast %45 : vector<8x1xf32> to vector<8x8xf32>
    %47 = arith.subf %43, %46 : vector<8x8xf32>
    %48 = math.exp %47 : vector<8x8xf32>
    %cst_21 = arith.constant dense<0.000000e+00> : vector<8xf32>
    %49 = vector.multi_reduction <add>, %48, %cst_21 [1] : vector<8x8xf32> to vector<8xf32>
    %50 = vector.shape_cast %49 : vector<8xf32> to vector<8x1xf32>
    %51 = tpu.reciprocal %50 {approx = true} : vector<8x1xf32> -> vector<8x1xf32>
    %52 = vector.broadcast %51 : vector<8x1xf32> to vector<8x8xf32>
    %53 = arith.mulf %48, %52 : vector<8x8xf32>
    %54 = arith.truncf %53 : vector<8x8xf32> to vector<8x8xbf16>
    %cst_22 = arith.constant dense<0.000000e+00> : vector<8x8xf32>
    %55 = tpu.matmul %54, %38, %cst_22 {dimension_numbers = #tpu.dot_dimension_numbers<[1], [0], [0], [1], [0, 0, 1, 1], [], []>} : vector<8x8xbf16>, vector<8x8xbf16>, vector<8x8xf32> -> vector<8x8xf32>
    %c0_23 = arith.constant 0 : index
    %c0_24 = arith.constant 0 : index
    %56 = vector.load %arg17[%c0_23, %c0_24] : memref<16x32xf32, #tpu.memory_space<vmem>>, vector<8x8xf32>
    tpu.vector_store %arg17[%c0_23, %c0_24], %55 {strides = array<i32>} : memref<16x32xf32, #tpu.memory_space<vmem>>, vector<8x8xf32>,
    %57 = vector.extract_strided_slice %31 {offsets = [0, 8], sizes = [8, 8], strides = [1, 1]} : vector<16x96xf32> to vector<8x8xf32>
    %58 = arith.truncf %57 : vector<8x8xf32> to vector<8x8xbf16>
    %59 = vector.extract_strided_slice %31 {offsets = [0, 40], sizes = [8, 8], strides = [1, 1]} : vector<16x96xf32> to vector<8x8xf32>
    %60 = arith.truncf %59 : vector<8x8xf32> to vector<8x8xbf16>
    %61 = vector.extract_strided_slice %31 {offsets = [0, 72], sizes = [8, 8], strides = [1, 1]} : vector<16x96xf32> to vector<8x8xf32>
    %62 = arith.truncf %61 : vector<8x8xf32> to vector<8x8xbf16>
    %cst_25 = arith.constant dense<0.000000e+00> : vector<8x8xf32>
    %63 = tpu.matmul %58, %60, %cst_25 {dimension_numbers = #tpu.dot_dimension_numbers<[1], [1], [0], [0], [0, 0, 1, 0], [], []>} : vector<8x8xbf16>, vector<8x8xbf16>, vector<8x8xf32> -> vector<8x8xf32>
    %cst_26 = arith.constant 0.353553385 : f32
    %64 = vector.broadcast %cst_26 : f32 to vector<8x8xf32>
    %65 = arith.mulf %63, %64 : vector<8x8xf32>
    %66 = vector.broadcast %32 : vector<1x8xf32> to vector<8x8xf32>
    %67 = arith.addf %65, %66 : vector<8x8xf32>
    %cst_27 = arith.constant dense<0xFF800000> : vector<8xf32>
    %68 = vector.multi_reduction <maximumf>, %67, %cst_27 [1] : vector<8x8xf32> to vector<8xf32>
    %69 = vector.shape_cast %68 : vector<8xf32> to vector<8x1xf32>
    %70 = vector.broadcast %69 : vector<8x1xf32> to vector<8x8xf32>
    %71 = arith.subf %67, %70 : vector<8x8xf32>
    %72 = math.exp %71 : vector<8x8xf32>
    %cst_28 = arith.constant dense<0.000000e+00> : vector<8xf32>
    %73 = vector.multi_reduction <add>, %72, %cst_28 [1] : vector<8x8xf32> to vector<8xf32>
    %74 = vector.shape_cast %73 : vector<8xf32> to vector<8x1xf32>
    %75 = tpu.reciprocal %74 {approx = true} : vector<8x1xf32> -> vector<8x1xf32>
    %76 = vector.broadcast %75 : vector<8x1xf32> to vector<8x8xf32>
    %77 = arith.mulf %72, %76 : vector<8x8xf32>
    %78 = arith.truncf %77 : vector<8x8xf32> to vector<8x8xbf16>
    %cst_29 = arith.constant dense<0.000000e+00> : vector<8x8xf32>
    %79 = tpu.matmul %78, %62, %cst_29 {dimension_numbers = #tpu.dot_dimension_numbers<[1], [0], [0], [1], [0, 0, 1, 1], [], []>} : vector<8x8xbf16>, vector<8x8xbf16>, vector<8x8xf32> -> vector<8x8xf32>
    %c0_30 = arith.constant 0 : index
    %c8 = arith.constant 8 : index
    %80 = vector.load %arg17[%c0_30, %c8] : memref<16x32xf32, #tpu.memory_space<vmem>>, vector<8x8xf32>
    tpu.vector_store %arg17[%c0_30, %c8], %79 {strides = array<i32>} : memref<16x32xf32, #tpu.memory_space<vmem>>, vector<8x8xf32>,
    %81 = vector.extract_strided_slice %31 {offsets = [0, 16], sizes = [8, 8], strides = [1, 1]} : vector<16x96xf32> to vector<8x8xf32>
    %82 = arith.truncf %81 : vector<8x8xf32> to vector<8x8xbf16>
    %83 = vector.extract_strided_slice %31 {offsets = [0, 48], sizes = [8, 8], strides = [1, 1]} : vector<16x96xf32> to vector<8x8xf32>
    %84 = arith.truncf %83 : vector<8x8xf32> to vector<8x8xbf16>
    %85 = vector.extract_strided_slice %31 {offsets = [0, 80], sizes = [8, 8], strides = [1, 1]} : vector<16x96xf32> to vector<8x8xf32>
    %86 = arith.truncf %85 : vector<8x8xf32> to vector<8x8xbf16>
    %cst_31 = arith.constant dense<0.000000e+00> : vector<8x8xf32>
    %87 = tpu.matmul %82, %84, %cst_31 {dimension_numbers = #tpu.dot_dimension_numbers<[1], [1], [0], [0], [0, 0, 1, 0], [], []>} : vector<8x8xbf16>, vector<8x8xbf16>, vector<8x8xf32> -> vector<8x8xf32>
    %cst_32 = arith.constant 0.353553385 : f32
    %88 = vector.broadcast %cst_32 : f32 to vector<8x8xf32>
    %89 = arith.mulf %87, %88 : vector<8x8xf32>
    %90 = vector.broadcast %32 : vector<1x8xf32> to vector<8x8xf32>
    %91 = arith.addf %89, %90 : vector<8x8xf32>
    %cst_33 = arith.constant dense<0xFF800000> : vector<8xf32>
    %92 = vector.multi_reduction <maximumf>, %91, %cst_33 [1] : vector<8x8xf32> to vector<8xf32>
    %93 = vector.shape_cast %92 : vector<8xf32> to vector<8x1xf32>
    %94 = vector.broadcast %93 : vector<8x1xf32> to vector<8x8xf32>
    %95 = arith.subf %91, %94 : vector<8x8xf32>
    %96 = math.exp %95 : vector<8x8xf32>
    %cst_34 = arith.constant dense<0.000000e+00> : vector<8xf32>
    %97 = vector.multi_reduction <add>, %96, %cst_34 [1] : vector<8x8xf32> to vector<8xf32>
    %98 = vector.shape_cast %97 : vector<8xf32> to vector<8x1xf32>
    %99 = tpu.reciprocal %98 {approx = true} : vector<8x1xf32> -> vector<8x1xf32>
    %100 = vector.broadcast %99 : vector<8x1xf32> to vector<8x8xf32>
    %101 = arith.mulf %96, %100 : vector<8x8xf32>
    %102 = arith.truncf %101 : vector<8x8xf32> to vector<8x8xbf16>
    %cst_35 = arith.constant dense<0.000000e+00> : vector<8x8xf32>
    %103 = tpu.matmul %102, %86, %cst_35 {dimension_numbers = #tpu.dot_dimension_numbers<[1], [0], [0], [1], [0, 0, 1, 1], [], []>} : vector<8x8xbf16>, vector<8x8xbf16>, vector<8x8xf32> -> vector<8x8xf32>
    %c0_36 = arith.constant 0 : index
    %c16 = arith.constant 16 : index
    %104 = vector.load %arg17[%c0_36, %c16] : memref<16x32xf32, #tpu.memory_space<vmem>>, vector<8x8xf32>
    tpu.vector_store %arg17[%c0_36, %c16], %103 {strides = array<i32>} : memref<16x32xf32, #tpu.memory_space<vmem>>, vector<8x8xf32>,
    %105 = vector.extract_strided_slice %31 {offsets = [0, 24], sizes = [8, 8], strides = [1, 1]} : vector<16x96xf32> to vector<8x8xf32>
    %106 = arith.truncf %105 : vector<8x8xf32> to vector<8x8xbf16>
    %107 = vector.extract_strided_slice %31 {offsets = [0, 56], sizes = [8, 8], strides = [1, 1]} : vector<16x96xf32> to vector<8x8xf32>
    %108 = arith.truncf %107 : vector<8x8xf32> to vector<8x8xbf16>
    %109 = vector.extract_strided_slice %31 {offsets = [0, 88], sizes = [8, 8], strides = [1, 1]} : vector<16x96xf32> to vector<8x8xf32>
    %110 = arith.truncf %109 : vector<8x8xf32> to vector<8x8xbf16>
    %cst_37 = arith.constant dense<0.000000e+00> : vector<8x8xf32>
    %111 = tpu.matmul %106, %108, %cst_37 {dimension_numbers = #tpu.dot_dimension_numbers<[1], [1], [0], [0], [0, 0, 1, 0], [], []>} : vector<8x8xbf16>, vector<8x8xbf16>, vector<8x8xf32> -> vector<8x8xf32>
    %cst_38 = arith.constant 0.353553385 : f32
    %112 = vector.broadcast %cst_38 : f32 to vector<8x8xf32>
    %113 = arith.mulf %111, %112 : vector<8x8xf32>
    %114 = vector.broadcast %32 : vector<1x8xf32> to vector<8x8xf32>
    %115 = arith.addf %113, %114 : vector<8x8xf32>
    %cst_39 = arith.constant dense<0xFF800000> : vector<8xf32>
    %116 = vector.multi_reduction <maximumf>, %115, %cst_39 [1] : vector<8x8xf32> to vector<8xf32>
    %117 = vector.shape_cast %116 : vector<8xf32> to vector<8x1xf32>
    %118 = vector.broadcast %117 : vector<8x1xf32> to vector<8x8xf32>
    %119 = arith.subf %115, %118 : vector<8x8xf32>
    %120 = math.exp %119 : vector<8x8xf32>
    %cst_40 = arith.constant dense<0.000000e+00> : vector<8xf32>
    %121 = vector.multi_reduction <add>, %120, %cst_40 [1] : vector<8x8xf32> to vector<8xf32>
    %122 = vector.shape_cast %121 : vector<8xf32> to vector<8x1xf32>
    %123 = tpu.reciprocal %122 {approx = true} : vector<8x1xf32> -> vector<8x1xf32>
    %124 = vector.broadcast %123 : vector<8x1xf32> to vector<8x8xf32>
    %125 = arith.mulf %120, %124 : vector<8x8xf32>
    %126 = arith.truncf %125 : vector<8x8xf32> to vector<8x8xbf16>
    %cst_41 = arith.constant dense<0.000000e+00> : vector<8x8xf32>
    %127 = tpu.matmul %126, %110, %cst_41 {dimension_numbers = #tpu.dot_dimension_numbers<[1], [0], [0], [1], [0, 0, 1, 1], [], []>} : vector<8x8xbf16>, vector<8x8xbf16>, vector<8x8xf32> -> vector<8x8xf32>
    %c0_42 = arith.constant 0 : index
    %c24 = arith.constant 24 : index
    %128 = vector.load %arg17[%c0_42, %c24] : memref<16x32xf32, #tpu.memory_space<vmem>>, vector<8x8xf32>
    tpu.vector_store %arg17[%c0_42, %c24], %127 {strides = array<i32>} : memref<16x32xf32, #tpu.memory_space<vmem>>, vector<8x8xf32>,
    %129 = vector.extract_strided_slice %23 {offsets = [1, 0], sizes = [1, 8], strides = [1, 1]} : vector<2x8xf32> to vector<1x8xf32>
    %130 = vector.extract_strided_slice %31 {offsets = [8, 0], sizes = [8, 8], strides = [1, 1]} : vector<16x96xf32> to vector<8x8xf32>
    %131 = arith.truncf %130 : vector<8x8xf32> to vector<8x8xbf16>
    %132 = vector.extract_strided_slice %31 {offsets = [8, 32], sizes = [8, 8], strides = [1, 1]} : vector<16x96xf32> to vector<8x8xf32>
    %133 = arith.truncf %132 : vector<8x8xf32> to vector<8x8xbf16>
    %134 = vector.extract_strided_slice %31 {offsets = [8, 64], sizes = [8, 8], strides = [1, 1]} : vector<16x96xf32> to vector<8x8xf32>
    %135 = arith.truncf %134 : vector<8x8xf32> to vector<8x8xbf16>
    %cst_43 = arith.constant dense<0.000000e+00> : vector<8x8xf32>
    %136 = tpu.matmul %131, %133, %cst_43 {dimension_numbers = #tpu.dot_dimension_numbers<[1], [1], [0], [0], [0, 0, 1, 0], [], []>} : vector<8x8xbf16>, vector<8x8xbf16>, vector<8x8xf32> -> vector<8x8xf32>
    %cst_44 = arith.constant 0.353553385 : f32
    %137 = vector.broadcast %cst_44 : f32 to vector<8x8xf32>
    %138 = arith.mulf %136, %137 : vector<8x8xf32>
    %139 = vector.broadcast %129 : vector<1x8xf32> to vector<8x8xf32>
    %140 = arith.addf %138, %139 : vector<8x8xf32>
    %cst_45 = arith.constant dense<0xFF800000> : vector<8xf32>
    %141 = vector.multi_reduction <maximumf>, %140, %cst_45 [1] : vector<8x8xf32> to vector<8xf32>
    %142 = vector.shape_cast %141 : vector<8xf32> to vector<8x1xf32>
    %143 = vector.broadcast %142 : vector<8x1xf32> to vector<8x8xf32>
    %144 = arith.subf %140, %143 : vector<8x8xf32>
    %145 = math.exp %144 : vector<8x8xf32>
    %cst_46 = arith.constant dense<0.000000e+00> : vector<8xf32>
    %146 = vector.multi_reduction <add>, %145, %cst_46 [1] : vector<8x8xf32> to vector<8xf32>
    %147 = vector.shape_cast %146 : vector<8xf32> to vector<8x1xf32>
    %148 = tpu.reciprocal %147 {approx = true} : vector<8x1xf32> -> vector<8x1xf32>
    %149 = vector.broadcast %148 : vector<8x1xf32> to vector<8x8xf32>
    %150 = arith.mulf %145, %149 : vector<8x8xf32>
    %151 = arith.truncf %150 : vector<8x8xf32> to vector<8x8xbf16>
    %cst_47 = arith.constant dense<0.000000e+00> : vector<8x8xf32>
    %152 = tpu.matmul %151, %135, %cst_47 {dimension_numbers = #tpu.dot_dimension_numbers<[1], [0], [0], [1], [0, 0, 1, 1], [], []>} : vector<8x8xbf16>, vector<8x8xbf16>, vector<8x8xf32> -> vector<8x8xf32>
    %c8_48 = arith.constant 8 : index
    %c0_49 = arith.constant 0 : index
    %153 = vector.load %arg17[%c8_48, %c0_49] : memref<16x32xf32, #tpu.memory_space<vmem>>, vector<8x8xf32>
    tpu.vector_store %arg17[%c8_48, %c0_49], %152 {strides = array<i32>} : memref<16x32xf32, #tpu.memory_space<vmem>>, vector<8x8xf32>,
    %154 = vector.extract_strided_slice %31 {offsets = [8, 8], sizes = [8, 8], strides = [1, 1]} : vector<16x96xf32> to vector<8x8xf32>
    %155 = arith.truncf %154 : vector<8x8xf32> to vector<8x8xbf16>
    %156 = vector.extract_strided_slice %31 {offsets = [8, 40], sizes = [8, 8], strides = [1, 1]} : vector<16x96xf32> to vector<8x8xf32>
    %157 = arith.truncf %156 : vector<8x8xf32> to vector<8x8xbf16>
    %158 = vector.extract_strided_slice %31 {offsets = [8, 72], sizes = [8, 8], strides = [1, 1]} : vector<16x96xf32> to vector<8x8xf32>
    %159 = arith.truncf %158 : vector<8x8xf32> to vector<8x8xbf16>
    %cst_50 = arith.constant dense<0.000000e+00> : vector<8x8xf32>
    %160 = tpu.matmul %155, %157, %cst_50 {dimension_numbers = #tpu.dot_dimension_numbers<[1], [1], [0], [0], [0, 0, 1, 0], [], []>} : vector<8x8xbf16>, vector<8x8xbf16>, vector<8x8xf32> -> vector<8x8xf32>
    %cst_51 = arith.constant 0.353553385 : f32
    %161 = vector.broadcast %cst_51 : f32 to vector<8x8xf32>
    %162 = arith.mulf %160, %161 : vector<8x8xf32>
    %163 = vector.broadcast %129 : vector<1x8xf32> to vector<8x8xf32>
    %164 = arith.addf %162, %163 : vector<8x8xf32>
    %cst_52 = arith.constant dense<0xFF800000> : vector<8xf32>
    %165 = vector.multi_reduction <maximumf>, %164, %cst_52 [1] : vector<8x8xf32> to vector<8xf32>
    %166 = vector.shape_cast %165 : vector<8xf32> to vector<8x1xf32>
    %167 = vector.broadcast %166 : vector<8x1xf32> to vector<8x8xf32>
    %168 = arith.subf %164, %167 : vector<8x8xf32>
    %169 = math.exp %168 : vector<8x8xf32>
    %cst_53 = arith.constant dense<0.000000e+00> : vector<8xf32>
    %170 = vector.multi_reduction <add>, %169, %cst_53 [1] : vector<8x8xf32> to vector<8xf32>
    %171 = vector.shape_cast %170 : vector<8xf32> to vector<8x1xf32>
    %172 = tpu.reciprocal %171 {approx = true} : vector<8x1xf32> -> vector<8x1xf32>
    %173 = vector.broadcast %172 : vector<8x1xf32> to vector<8x8xf32>
    %174 = arith.mulf %169, %173 : vector<8x8xf32>
    %175 = arith.truncf %174 : vector<8x8xf32> to vector<8x8xbf16>
    %cst_54 = arith.constant dense<0.000000e+00> : vector<8x8xf32>
    %176 = tpu.matmul %175, %159, %cst_54 {dimension_numbers = #tpu.dot_dimension_numbers<[1], [0], [0], [1], [0, 0, 1, 1], [], []>} : vector<8x8xbf16>, vector<8x8xbf16>, vector<8x8xf32> -> vector<8x8xf32>
    %c8_55 = arith.constant 8 : index
    %c8_56 = arith.constant 8 : index
    %177 = vector.load %arg17[%c8_55, %c8_56] : memref<16x32xf32, #tpu.memory_space<vmem>>, vector<8x8xf32>
    tpu.vector_store %arg17[%c8_55, %c8_56], %176 {strides = array<i32>} : memref<16x32xf32, #tpu.memory_space<vmem>>, vector<8x8xf32>,
    %178 = vector.extract_strided_slice %31 {offsets = [8, 16], sizes = [8, 8], strides = [1, 1]} : vector<16x96xf32> to vector<8x8xf32>
    %179 = arith.truncf %178 : vector<8x8xf32> to vector<8x8xbf16>
    %180 = vector.extract_strided_slice %31 {offsets = [8, 48], sizes = [8, 8], strides = [1, 1]} : vector<16x96xf32> to vector<8x8xf32>
    %181 = arith.truncf %180 : vector<8x8xf32> to vector<8x8xbf16>
    %182 = vector.extract_strided_slice %31 {offsets = [8, 80], sizes = [8, 8], strides = [1, 1]} : vector<16x96xf32> to vector<8x8xf32>
    %183 = arith.truncf %182 : vector<8x8xf32> to vector<8x8xbf16>
    %cst_57 = arith.constant dense<0.000000e+00> : vector<8x8xf32>
    %184 = tpu.matmul %179, %181, %cst_57 {dimension_numbers = #tpu.dot_dimension_numbers<[1], [1], [0], [0], [0, 0, 1, 0], [], []>} : vector<8x8xbf16>, vector<8x8xbf16>, vector<8x8xf32> -> vector<8x8xf32>
    %cst_58 = arith.constant 0.353553385 : f32
    %185 = vector.broadcast %cst_58 : f32 to vector<8x8xf32>
    %186 = arith.mulf %184, %185 : vector<8x8xf32>
    %187 = vector.broadcast %129 : vector<1x8xf32> to vector<8x8xf32>
    %188 = arith.addf %186, %187 : vector<8x8xf32>
    %cst_59 = arith.constant dense<0xFF800000> : vector<8xf32>
    %189 = vector.multi_reduction <maximumf>, %188, %cst_59 [1] : vector<8x8xf32> to vector<8xf32>
    %190 = vector.shape_cast %189 : vector<8xf32> to vector<8x1xf32>
    %191 = vector.broadcast %190 : vector<8x1xf32> to vector<8x8xf32>
    %192 = arith.subf %188, %191 : vector<8x8xf32>
    %193 = math.exp %192 : vector<8x8xf32>
    %cst_60 = arith.constant dense<0.000000e+00> : vector<8xf32>
    %194 = vector.multi_reduction <add>, %193, %cst_60 [1] : vector<8x8xf32> to vector<8xf32>
    %195 = vector.shape_cast %194 : vector<8xf32> to vector<8x1xf32>
    %196 = tpu.reciprocal %195 {approx = true} : vector<8x1xf32> -> vector<8x1xf32>
    %197 = vector.broadcast %196 : vector<8x1xf32> to vector<8x8xf32>
    %198 = arith.mulf %193, %197 : vector<8x8xf32>
    %199 = arith.truncf %198 : vector<8x8xf32> to vector<8x8xbf16>
    %cst_61 = arith.constant dense<0.000000e+00> : vector<8x8xf32>
    %200 = tpu.matmul %199, %183, %cst_61 {dimension_numbers = #tpu.dot_dimension_numbers<[1], [0], [0], [1], [0, 0, 1, 1], [], []>} : vector<8x8xbf16>, vector<8x8xbf16>, vector<8x8xf32> -> vector<8x8xf32>
    %c8_62 = arith.constant 8 : index
    %c16_63 = arith.constant 16 : index
    %201 = vector.load %arg17[%c8_62, %c16_63] : memref<16x32xf32, #tpu.memory_space<vmem>>, vector<8x8xf32>
    tpu.vector_store %arg17[%c8_62, %c16_63], %200 {strides = array<i32>} : memref<16x32xf32, #tpu.memory_space<vmem>>, vector<8x8xf32>,
    %202 = vector.extract_strided_slice %31 {offsets = [8, 24], sizes = [8, 8], strides = [1, 1]} : vector<16x96xf32> to vector<8x8xf32>
    %203 = arith.truncf %202 : vector<8x8xf32> to vector<8x8xbf16>
    %204 = vector.extract_strided_slice %31 {offsets = [8, 56], sizes = [8, 8], strides = [1, 1]} : vector<16x96xf32> to vector<8x8xf32>
    %205 = arith.truncf %204 : vector<8x8xf32> to vector<8x8xbf16>
    %206 = vector.extract_strided_slice %31 {offsets = [8, 88], sizes = [8, 8], strides = [1, 1]} : vector<16x96xf32> to vector<8x8xf32>
    %207 = arith.truncf %206 : vector<8x8xf32> to vector<8x8xbf16>
    %cst_64 = arith.constant dense<0.000000e+00> : vector<8x8xf32>
    %208 = tpu.matmul %203, %205, %cst_64 {dimension_numbers = #tpu.dot_dimension_numbers<[1], [1], [0], [0], [0, 0, 1, 0], [], []>} : vector<8x8xbf16>, vector<8x8xbf16>, vector<8x8xf32> -> vector<8x8xf32>
    %cst_65 = arith.constant 0.353553385 : f32
    %209 = vector.broadcast %cst_65 : f32 to vector<8x8xf32>
    %210 = arith.mulf %208, %209 : vector<8x8xf32>
    %211 = vector.broadcast %129 : vector<1x8xf32> to vector<8x8xf32>
    %212 = arith.addf %210, %211 : vector<8x8xf32>
    %cst_66 = arith.constant dense<0xFF800000> : vector<8xf32>
    %213 = vector.multi_reduction <maximumf>, %212, %cst_66 [1] : vector<8x8xf32> to vector<8xf32>
    %214 = vector.shape_cast %213 : vector<8xf32> to vector<8x1xf32>
    %215 = vector.broadcast %214 : vector<8x1xf32> to vector<8x8xf32>
    %216 = arith.subf %212, %215 : vector<8x8xf32>
    %217 = math.exp %216 : vector<8x8xf32>
    %cst_67 = arith.constant dense<0.000000e+00> : vector<8xf32>
    %218 = vector.multi_reduction <add>, %217, %cst_67 [1] : vector<8x8xf32> to vector<8xf32>
    %219 = vector.shape_cast %218 : vector<8xf32> to vector<8x1xf32>
    %220 = tpu.reciprocal %219 {approx = true} : vector<8x1xf32> -> vector<8x1xf32>
    %221 = vector.broadcast %220 : vector<8x1xf32> to vector<8x8xf32>
    %222 = arith.mulf %217, %221 : vector<8x8xf32>
    %223 = arith.truncf %222 : vector<8x8xf32> to vector<8x8xbf16>
    %cst_68 = arith.constant dense<0.000000e+00> : vector<8x8xf32>
    %224 = tpu.matmul %223, %207, %cst_68 {dimension_numbers = #tpu.dot_dimension_numbers<[1], [0], [0], [1], [0, 0, 1, 1], [], []>} : vector<8x8xbf16>, vector<8x8xbf16>, vector<8x8xf32> -> vector<8x8xf32>
    %c8_69 = arith.constant 8 : index
    %c24_70 = arith.constant 24 : index
    %225 = vector.load %arg17[%c8_69, %c24_70] : memref<16x32xf32, #tpu.memory_space<vmem>>, vector<8x8xf32>
    tpu.vector_store %arg17[%c8_69, %c24_70], %224 {strides = array<i32>} : memref<16x32xf32, #tpu.memory_space<vmem>>, vector<8x8xf32>,
    %c0_71 = arith.constant 0 : index
    %c0_72 = arith.constant 0 : index
    %226 = vector.load %arg17[%c0_71, %c0_72] : memref<16x32xf32, #tpu.memory_space<vmem>>, vector<16x32xf32>
    %c0_73 = arith.constant 0 : index
    %c0_74 = arith.constant 0 : index
    %c0_75 = arith.constant 0 : index
    %227 = vector.load %arg6[%c0_73, %c0_74, %c0_75] : memref<2x32x32xbf16, #tpu.memory_space<vmem>>, vector<1x32x32xbf16>
    %228 = vector.shape_cast %227 : vector<1x32x32xbf16> to vector<32x32xbf16>
    %c0_76 = arith.constant 0 : index
    %c0_77 = arith.constant 0 : index
    %c0_78 = arith.constant 0 : index
    %229 = vector.load %arg7[%c0_76, %c0_77, %c0_78] : memref<2x1x32xf32, #tpu.memory_space<vmem>>, vector<1x1x32xf32>
    %230 = vector.shape_cast %229 : vector<1x1x32xf32> to vector<1x32xf32>
    %231 = arith.truncf %226 : vector<16x32xf32> to vector<16x32xbf16>
    %cst_79 = arith.constant dense<0.000000e+00> : vector<16x32xf32>
    %232 = tpu.matmul %231, %228, %cst_79 {dimension_numbers = #tpu.dot_dimension_numbers<[1], [0], [0], [1], [0, 0, 1, 1], [], []>} : vector<16x32xbf16>, vector<32x32xbf16>, vector<16x32xf32> -> vector<16x32xf32>
    %233 = vector.broadcast %230 : vector<1x32xf32> to vector<16x32xf32>
    %234 = arith.addf %232, %233 : vector<16x32xf32>
    %235 = arith.addf %234, %22 : vector<16x32xf32>
    %c0_80 = arith.constant 0 : index
    %c0_81 = arith.constant 0 : index
    %c0_82 = arith.constant 0 : index
    %236 = vector.load %arg8[%c0_80, %c0_81, %c0_82] : memref<2x1x32xf32, #tpu.memory_space<vmem>>, vector<1x1x32xf32>
    %237 = vector.shape_cast %236 : vector<1x1x32xf32> to vector<1x32xf32>
    %c0_83 = arith.constant 0 : index
    %c0_84 = arith.constant 0 : index
    %c0_85 = arith.constant 0 : index
    %238 = vector.load %arg9[%c0_83, %c0_84, %c0_85] : memref<2x1x32xf32, #tpu.memory_space<vmem>>, vector<1x1x32xf32>
    %239 = vector.shape_cast %238 : vector<1x1x32xf32> to vector<1x32xf32>
    %cst_86 = arith.constant dense<0.000000e+00> : vector<16xf32>
    %240 = vector.multi_reduction <add>, %235, %cst_86 [1] : vector<16x32xf32> to vector<16xf32>
    %241 = vector.shape_cast %240 : vector<16xf32> to vector<16x1xf32>
    %cst_87 = arith.constant 3.200000e+01 : f32
    %242 = vector.broadcast %cst_87 : f32 to vector<16x1xf32>
    %243 = arith.divf %241, %242 : vector<16x1xf32>
    %244 = vector.broadcast %243 : vector<16x1xf32> to vector<16x32xf32>
    %245 = arith.subf %235, %244 : vector<16x32xf32>
    %246 = arith.mulf %245, %245 : vector<16x32xf32>
    %cst_88 = arith.constant dense<0.000000e+00> : vector<16xf32>
    %247 = vector.multi_reduction <add>, %246, %cst_88 [1] : vector<16x32xf32> to vector<16xf32>
    %248 = vector.shape_cast %247 : vector<16xf32> to vector<16x1xf32>
    %cst_89 = arith.constant 3.200000e+01 : f32
    %249 = vector.broadcast %cst_89 : f32 to vector<16x1xf32>
    %250 = arith.divf %248, %249 : vector<16x1xf32>
    %cst_90 = arith.constant 9.99999996E-13 : f32
    %251 = vector.broadcast %cst_90 : f32 to vector<16x1xf32>
    %252 = arith.addf %250, %251 : vector<16x1xf32>
    %253 = math.rsqrt %252 : vector<16x1xf32>
    %254 = vector.broadcast %253 : vector<16x1xf32> to vector<16x32xf32>
    %255 = arith.mulf %245, %254 : vector<16x32xf32>
    %256 = vector.broadcast %237 : vector<1x32xf32> to vector<16x32xf32>
    %257 = arith.mulf %255, %256 : vector<16x32xf32>
    %258 = vector.broadcast %239 : vector<1x32xf32> to vector<16x32xf32>
    %259 = arith.addf %257, %258 : vector<16x32xf32>
    %c0_91 = arith.constant 0 : index
    %c0_92 = arith.constant 0 : index
    %c0_93 = arith.constant 0 : index
    %260 = vector.load %arg10[%c0_91, %c0_92, %c0_93] : memref<2x32x64xbf16, #tpu.memory_space<vmem>>, vector<1x32x64xbf16>
    %261 = vector.shape_cast %260 : vector<1x32x64xbf16> to vector<32x64xbf16>
    %c0_94 = arith.constant 0 : index
    %c0_95 = arith.constant 0 : index
    %c0_96 = arith.constant 0 : index
    %262 = vector.load %arg11[%c0_94, %c0_95, %c0_96] : memref<2x1x64xf32, #tpu.memory_space<vmem>>, vector<1x1x64xf32>
    %263 = vector.shape_cast %262 : vector<1x1x64xf32> to vector<1x64xf32>
    %264 = arith.truncf %259 : vector<16x32xf32> to vector<16x32xbf16>
    %cst_97 = arith.constant dense<0.000000e+00> : vector<16x64xf32>
    %265 = tpu.matmul %264, %261, %cst_97 {dimension_numbers = #tpu.dot_dimension_numbers<[1], [0], [0], [1], [0, 0, 1, 1], [], []>} : vector<16x32xbf16>, vector<32x64xbf16>, vector<16x64xf32> -> vector<16x64xf32>
    %266 = vector.broadcast %263 : vector<1x64xf32> to vector<16x64xf32>
    %267 = arith.addf %265, %266 : vector<16x64xf32>
    %cst_98 = arith.constant 5.000000e-01 : f32
    %268 = vector.broadcast %cst_98 : f32 to vector<16x64xf32>
    %269 = arith.mulf %268, %267 : vector<16x64xf32>
    %cst_99 = arith.constant 0.707106769 : f32
    %270 = vector.broadcast %cst_99 : f32 to vector<16x64xf32>
    %271 = arith.mulf %267, %270 : vector<16x64xf32>
    %272 = math.erf %271 : vector<16x64xf32>
    %cst_100 = arith.constant 1.000000e+00 : f32
    %273 = vector.broadcast %cst_100 : f32 to vector<16x64xf32>
    %274 = arith.addf %273, %272 : vector<16x64xf32>
    %275 = arith.mulf %269, %274 : vector<16x64xf32>
    %c0_101 = arith.constant 0 : index
    %c0_102 = arith.constant 0 : index
    %c0_103 = arith.constant 0 : index
    %276 = vector.load %arg12[%c0_101, %c0_102, %c0_103] : memref<2x64x32xbf16, #tpu.memory_space<vmem>>, vector<1x64x32xbf16>
    %277 = vector.shape_cast %276 : vector<1x64x32xbf16> to vector<64x32xbf16>
    %c0_104 = arith.constant 0 : index
    %c0_105 = arith.constant 0 : index
    %c0_106 = arith.constant 0 : index
    %278 = vector.load %arg13[%c0_104, %c0_105, %c0_106] : memref<2x1x32xf32, #tpu.memory_space<vmem>>, vector<1x1x32xf32>
    %279 = vector.shape_cast %278 : vector<1x1x32xf32> to vector<1x32xf32>
    %280 = arith.truncf %275 : vector<16x64xf32> to vector<16x64xbf16>
    %cst_107 = arith.constant dense<0.000000e+00> : vector<16x32xf32>
    %281 = tpu.matmul %280, %277, %cst_107 {dimension_numbers = #tpu.dot_dimension_numbers<[1], [0], [0], [1], [0, 0, 1, 1], [], []>} : vector<16x64xbf16>, vector<64x32xbf16>, vector<16x32xf32> -> vector<16x32xf32>
    %282 = vector.broadcast %279 : vector<1x32xf32> to vector<16x32xf32>
    %283 = arith.addf %281, %282 : vector<16x32xf32>
    %284 = arith.addf %283, %259 : vector<16x32xf32>
    %c0_108 = arith.constant 0 : index
    %c0_109 = arith.constant 0 : index
    %c0_110 = arith.constant 0 : index
    %285 = vector.load %arg14[%c0_108, %c0_109, %c0_110] : memref<2x1x32xf32, #tpu.memory_space<vmem>>, vector<1x1x32xf32>
    %286 = vector.shape_cast %285 : vector<1x1x32xf32> to vector<1x32xf32>
    %c0_111 = arith.constant 0 : index
    %c0_112 = arith.constant 0 : index
    %c0_113 = arith.constant 0 : index
    %287 = vector.load %arg15[%c0_111, %c0_112, %c0_113] : memref<2x1x32xf32, #tpu.memory_space<vmem>>, vector<1x1x32xf32>
    %288 = vector.shape_cast %287 : vector<1x1x32xf32> to vector<1x32xf32>
    %cst_114 = arith.constant dense<0.000000e+00> : vector<16xf32>
    %289 = vector.multi_reduction <add>, %284, %cst_114 [1] : vector<16x32xf32> to vector<16xf32>
    %290 = vector.shape_cast %289 : vector<16xf32> to vector<16x1xf32>
    %cst_115 = arith.constant 3.200000e+01 : f32
    %291 = vector.broadcast %cst_115 : f32 to vector<16x1xf32>
    %292 = arith.divf %290, %291 : vector<16x1xf32>
    %293 = vector.broadcast %292 : vector<16x1xf32> to vector<16x32xf32>
    %294 = arith.subf %284, %293 : vector<16x32xf32>
    %295 = arith.mulf %294, %294 : vector<16x32xf32>
    %cst_116 = arith.constant dense<0.000000e+00> : vector<16xf32>
    %296 = vector.multi_reduction <add>, %295, %cst_116 [1] : vector<16x32xf32> to vector<16xf32>
    %297 = vector.shape_cast %296 : vector<16xf32> to vector<16x1xf32>
    %cst_117 = arith.constant 3.200000e+01 : f32
    %298 = vector.broadcast %cst_117 : f32 to vector<16x1xf32>
    %299 = arith.divf %297, %298 : vector<16x1xf32>
    %cst_118 = arith.constant 9.99999996E-13 : f32
    %300 = vector.broadcast %cst_118 : f32 to vector<16x1xf32>
    %301 = arith.addf %299, %300 : vector<16x1xf32>
    %302 = math.rsqrt %301 : vector<16x1xf32>
    %303 = vector.broadcast %302 : vector<16x1xf32> to vector<16x32xf32>
    %304 = arith.mulf %294, %303 : vector<16x32xf32>
    %305 = vector.broadcast %286 : vector<1x32xf32> to vector<16x32xf32>
    %306 = arith.mulf %304, %305 : vector<16x32xf32>
    %307 = vector.broadcast %288 : vector<1x32xf32> to vector<16x32xf32>
    %308 = arith.addf %306, %307 : vector<16x32xf32>
    %c1 = arith.constant 1 : index
    %c0_119 = arith.constant 0 : index
    %c0_120 = arith.constant 0 : index
    %309 = vector.load %arg4[%c1, %c0_119, %c0_120] : memref<2x32x96xbf16, #tpu.memory_space<vmem>>, vector<1x32x96xbf16>
    %310 = vector.shape_cast %309 : vector<1x32x96xbf16> to vector<32x96xbf16>
    %c1_121 = arith.constant 1 : index
    %c0_122 = arith.constant 0 : index
    %c0_123 = arith.constant 0 : index
    %311 = vector.load %arg5[%c1_121, %c0_122, %c0_123] : memref<2x1x96xf32, #tpu.memory_space<vmem>>, vector<1x1x96xf32>
    %312 = vector.shape_cast %311 : vector<1x1x96xf32> to vector<1x96xf32>
    %313 = arith.truncf %308 : vector<16x32xf32> to vector<16x32xbf16>
    %cst_124 = arith.constant dense<0.000000e+00> : vector<16x96xf32>
    %314 = tpu.matmul %313, %310, %cst_124 {dimension_numbers = #tpu.dot_dimension_numbers<[1], [0], [0], [1], [0, 0, 1, 1], [], []>} : vector<16x32xbf16>, vector<32x96xbf16>, vector<16x96xf32> -> vector<16x96xf32>
    %315 = vector.broadcast %312 : vector<1x96xf32> to vector<16x96xf32>
    %316 = arith.addf %314, %315 : vector<16x96xf32>
    %317 = vector.extract_strided_slice %23 {offsets = [0, 0], sizes = [1, 8], strides = [1, 1]} : vector<2x8xf32> to vector<1x8xf32>
    %318 = vector.extract_strided_slice %316 {offsets = [0, 0], sizes = [8, 8], strides = [1, 1]} : vector<16x96xf32> to vector<8x8xf32>
    %319 = arith.truncf %318 : vector<8x8xf32> to vector<8x8xbf16>
    %320 = vector.extract_strided_slice %316 {offsets = [0, 32], sizes = [8, 8], strides = [1, 1]} : vector<16x96xf32> to vector<8x8xf32>
    %321 = arith.truncf %320 : vector<8x8xf32> to vector<8x8xbf16>
    %322 = vector.extract_strided_slice %316 {offsets = [0, 64], sizes = [8, 8], strides = [1, 1]} : vector<16x96xf32> to vector<8x8xf32>
    %323 = arith.truncf %322 : vector<8x8xf32> to vector<8x8xbf16>
    %cst_125 = arith.constant dense<0.000000e+00> : vector<8x8xf32>
    %324 = tpu.matmul %319, %321, %cst_125 {dimension_numbers = #tpu.dot_dimension_numbers<[1], [1], [0], [0], [0, 0, 1, 0], [], []>} : vector<8x8xbf16>, vector<8x8xbf16>, vector<8x8xf32> -> vector<8x8xf32>
    %cst_126 = arith.constant 0.353553385 : f32
    %325 = vector.broadcast %cst_126 : f32 to vector<8x8xf32>
    %326 = arith.mulf %324, %325 : vector<8x8xf32>
    %327 = vector.broadcast %317 : vector<1x8xf32> to vector<8x8xf32>
    %328 = arith.addf %326, %327 : vector<8x8xf32>
    %cst_127 = arith.constant dense<0xFF800000> : vector<8xf32>
    %329 = vector.multi_reduction <maximumf>, %328, %cst_127 [1] : vector<8x8xf32> to vector<8xf32>
    %330 = vector.shape_cast %329 : vector<8xf32> to vector<8x1xf32>
    %331 = vector.broadcast %330 : vector<8x1xf32> to vector<8x8xf32>
    %332 = arith.subf %328, %331 : vector<8x8xf32>
    %333 = math.exp %332 : vector<8x8xf32>
    %cst_128 = arith.constant dense<0.000000e+00> : vector<8xf32>
    %334 = vector.multi_reduction <add>, %333, %cst_128 [1] : vector<8x8xf32> to vector<8xf32>
    %335 = vector.shape_cast %334 : vector<8xf32> to vector<8x1xf32>
    %336 = tpu.reciprocal %335 {approx = true} : vector<8x1xf32> -> vector<8x1xf32>
    %337 = vector.broadcast %336 : vector<8x1xf32> to vector<8x8xf32>
    %338 = arith.mulf %333, %337 : vector<8x8xf32>
    %339 = arith.truncf %338 : vector<8x8xf32> to vector<8x8xbf16>
    %cst_129 = arith.constant dense<0.000000e+00> : vector<8x8xf32>
    %340 = tpu.matmul %339, %323, %cst_129 {dimension_numbers = #tpu.dot_dimension_numbers<[1], [0], [0], [1], [0, 0, 1, 1], [], []>} : vector<8x8xbf16>, vector<8x8xbf16>, vector<8x8xf32> -> vector<8x8xf32>
    %c0_130 = arith.constant 0 : index
    %c0_131 = arith.constant 0 : index
    %341 = vector.load %arg17[%c0_130, %c0_131] : memref<16x32xf32, #tpu.memory_space<vmem>>, vector<8x8xf32>
    tpu.vector_store %arg17[%c0_130, %c0_131], %340 {strides = array<i32>} : memref<16x32xf32, #tpu.memory_space<vmem>>, vector<8x8xf32>,
    %342 = vector.extract_strided_slice %316 {offsets = [0, 8], sizes = [8, 8], strides = [1, 1]} : vector<16x96xf32> to vector<8x8xf32>
    %343 = arith.truncf %342 : vector<8x8xf32> to vector<8x8xbf16>
    %344 = vector.extract_strided_slice %316 {offsets = [0, 40], sizes = [8, 8], strides = [1, 1]} : vector<16x96xf32> to vector<8x8xf32>
    %345 = arith.truncf %344 : vector<8x8xf32> to vector<8x8xbf16>
    %346 = vector.extract_strided_slice %316 {offsets = [0, 72], sizes = [8, 8], strides = [1, 1]} : vector<16x96xf32> to vector<8x8xf32>
    %347 = arith.truncf %346 : vector<8x8xf32> to vector<8x8xbf16>
    %cst_132 = arith.constant dense<0.000000e+00> : vector<8x8xf32>
    %348 = tpu.matmul %343, %345, %cst_132 {dimension_numbers = #tpu.dot_dimension_numbers<[1], [1], [0], [0], [0, 0, 1, 0], [], []>} : vector<8x8xbf16>, vector<8x8xbf16>, vector<8x8xf32> -> vector<8x8xf32>
    %cst_133 = arith.constant 0.353553385 : f32
    %349 = vector.broadcast %cst_133 : f32 to vector<8x8xf32>
    %350 = arith.mulf %348, %349 : vector<8x8xf32>
    %351 = vector.broadcast %317 : vector<1x8xf32> to vector<8x8xf32>
    %352 = arith.addf %350, %351 : vector<8x8xf32>
    %cst_134 = arith.constant dense<0xFF800000> : vector<8xf32>
    %353 = vector.multi_reduction <maximumf>, %352, %cst_134 [1] : vector<8x8xf32> to vector<8xf32>
    %354 = vector.shape_cast %353 : vector<8xf32> to vector<8x1xf32>
    %355 = vector.broadcast %354 : vector<8x1xf32> to vector<8x8xf32>
    %356 = arith.subf %352, %355 : vector<8x8xf32>
    %357 = math.exp %356 : vector<8x8xf32>
    %cst_135 = arith.constant dense<0.000000e+00> : vector<8xf32>
    %358 = vector.multi_reduction <add>, %357, %cst_135 [1] : vector<8x8xf32> to vector<8xf32>
    %359 = vector.shape_cast %358 : vector<8xf32> to vector<8x1xf32>
    %360 = tpu.reciprocal %359 {approx = true} : vector<8x1xf32> -> vector<8x1xf32>
    %361 = vector.broadcast %360 : vector<8x1xf32> to vector<8x8xf32>
    %362 = arith.mulf %357, %361 : vector<8x8xf32>
    %363 = arith.truncf %362 : vector<8x8xf32> to vector<8x8xbf16>
    %cst_136 = arith.constant dense<0.000000e+00> : vector<8x8xf32>
    %364 = tpu.matmul %363, %347, %cst_136 {dimension_numbers = #tpu.dot_dimension_numbers<[1], [0], [0], [1], [0, 0, 1, 1], [], []>} : vector<8x8xbf16>, vector<8x8xbf16>, vector<8x8xf32> -> vector<8x8xf32>
    %c0_137 = arith.constant 0 : index
    %c8_138 = arith.constant 8 : index
    %365 = vector.load %arg17[%c0_137, %c8_138] : memref<16x32xf32, #tpu.memory_space<vmem>>, vector<8x8xf32>
    tpu.vector_store %arg17[%c0_137, %c8_138], %364 {strides = array<i32>} : memref<16x32xf32, #tpu.memory_space<vmem>>, vector<8x8xf32>,
    %366 = vector.extract_strided_slice %316 {offsets = [0, 16], sizes = [8, 8], strides = [1, 1]} : vector<16x96xf32> to vector<8x8xf32>
    %367 = arith.truncf %366 : vector<8x8xf32> to vector<8x8xbf16>
    %368 = vector.extract_strided_slice %316 {offsets = [0, 48], sizes = [8, 8], strides = [1, 1]} : vector<16x96xf32> to vector<8x8xf32>
    %369 = arith.truncf %368 : vector<8x8xf32> to vector<8x8xbf16>
    %370 = vector.extract_strided_slice %316 {offsets = [0, 80], sizes = [8, 8], strides = [1, 1]} : vector<16x96xf32> to vector<8x8xf32>
    %371 = arith.truncf %370 : vector<8x8xf32> to vector<8x8xbf16>
    %cst_139 = arith.constant dense<0.000000e+00> : vector<8x8xf32>
    %372 = tpu.matmul %367, %369, %cst_139 {dimension_numbers = #tpu.dot_dimension_numbers<[1], [1], [0], [0], [0, 0, 1, 0], [], []>} : vector<8x8xbf16>, vector<8x8xbf16>, vector<8x8xf32> -> vector<8x8xf32>
    %cst_140 = arith.constant 0.353553385 : f32
    %373 = vector.broadcast %cst_140 : f32 to vector<8x8xf32>
    %374 = arith.mulf %372, %373 : vector<8x8xf32>
    %375 = vector.broadcast %317 : vector<1x8xf32> to vector<8x8xf32>
    %376 = arith.addf %374, %375 : vector<8x8xf32>
    %cst_141 = arith.constant dense<0xFF800000> : vector<8xf32>
    %377 = vector.multi_reduction <maximumf>, %376, %cst_141 [1] : vector<8x8xf32> to vector<8xf32>
    %378 = vector.shape_cast %377 : vector<8xf32> to vector<8x1xf32>
    %379 = vector.broadcast %378 : vector<8x1xf32> to vector<8x8xf32>
    %380 = arith.subf %376, %379 : vector<8x8xf32>
    %381 = math.exp %380 : vector<8x8xf32>
    %cst_142 = arith.constant dense<0.000000e+00> : vector<8xf32>
    %382 = vector.multi_reduction <add>, %381, %cst_142 [1] : vector<8x8xf32> to vector<8xf32>
    %383 = vector.shape_cast %382 : vector<8xf32> to vector<8x1xf32>
    %384 = tpu.reciprocal %383 {approx = true} : vector<8x1xf32> -> vector<8x1xf32>
    %385 = vector.broadcast %384 : vector<8x1xf32> to vector<8x8xf32>
    %386 = arith.mulf %381, %385 : vector<8x8xf32>
    %387 = arith.truncf %386 : vector<8x8xf32> to vector<8x8xbf16>
    %cst_143 = arith.constant dense<0.000000e+00> : vector<8x8xf32>
    %388 = tpu.matmul %387, %371, %cst_143 {dimension_numbers = #tpu.dot_dimension_numbers<[1], [0], [0], [1], [0, 0, 1, 1], [], []>} : vector<8x8xbf16>, vector<8x8xbf16>, vector<8x8xf32> -> vector<8x8xf32>
    %c0_144 = arith.constant 0 : index
    %c16_145 = arith.constant 16 : index
    %389 = vector.load %arg17[%c0_144, %c16_145] : memref<16x32xf32, #tpu.memory_space<vmem>>, vector<8x8xf32>
    tpu.vector_store %arg17[%c0_144, %c16_145], %388 {strides = array<i32>} : memref<16x32xf32, #tpu.memory_space<vmem>>, vector<8x8xf32>,
    %390 = vector.extract_strided_slice %316 {offsets = [0, 24], sizes = [8, 8], strides = [1, 1]} : vector<16x96xf32> to vector<8x8xf32>
    %391 = arith.truncf %390 : vector<8x8xf32> to vector<8x8xbf16>
    %392 = vector.extract_strided_slice %316 {offsets = [0, 56], sizes = [8, 8], strides = [1, 1]} : vector<16x96xf32> to vector<8x8xf32>
    %393 = arith.truncf %392 : vector<8x8xf32> to vector<8x8xbf16>
    %394 = vector.extract_strided_slice %316 {offsets = [0, 88], sizes = [8, 8], strides = [1, 1]} : vector<16x96xf32> to vector<8x8xf32>
    %395 = arith.truncf %394 : vector<8x8xf32> to vector<8x8xbf16>
    %cst_146 = arith.constant dense<0.000000e+00> : vector<8x8xf32>
    %396 = tpu.matmul %391, %393, %cst_146 {dimension_numbers = #tpu.dot_dimension_numbers<[1], [1], [0], [0], [0, 0, 1, 0], [], []>} : vector<8x8xbf16>, vector<8x8xbf16>, vector<8x8xf32> -> vector<8x8xf32>
    %cst_147 = arith.constant 0.353553385 : f32
    %397 = vector.broadcast %cst_147 : f32 to vector<8x8xf32>
    %398 = arith.mulf %396, %397 : vector<8x8xf32>
    %399 = vector.broadcast %317 : vector<1x8xf32> to vector<8x8xf32>
    %400 = arith.addf %398, %399 : vector<8x8xf32>
    %cst_148 = arith.constant dense<0xFF800000> : vector<8xf32>
    %401 = vector.multi_reduction <maximumf>, %400, %cst_148 [1] : vector<8x8xf32> to vector<8xf32>
    %402 = vector.shape_cast %401 : vector<8xf32> to vector<8x1xf32>
    %403 = vector.broadcast %402 : vector<8x1xf32> to vector<8x8xf32>
    %404 = arith.subf %400, %403 : vector<8x8xf32>
    %405 = math.exp %404 : vector<8x8xf32>
    %cst_149 = arith.constant dense<0.000000e+00> : vector<8xf32>
    %406 = vector.multi_reduction <add>, %405, %cst_149 [1] : vector<8x8xf32> to vector<8xf32>
    %407 = vector.shape_cast %406 : vector<8xf32> to vector<8x1xf32>
    %408 = tpu.reciprocal %407 {approx = true} : vector<8x1xf32> -> vector<8x1xf32>
    %409 = vector.broadcast %408 : vector<8x1xf32> to vector<8x8xf32>
    %410 = arith.mulf %405, %409 : vector<8x8xf32>
    %411 = arith.truncf %410 : vector<8x8xf32> to vector<8x8xbf16>
    %cst_150 = arith.constant dense<0.000000e+00> : vector<8x8xf32>
    %412 = tpu.matmul %411, %395, %cst_150 {dimension_numbers = #tpu.dot_dimension_numbers<[1], [0], [0], [1], [0, 0, 1, 1], [], []>} : vector<8x8xbf16>, vector<8x8xbf16>, vector<8x8xf32> -> vector<8x8xf32>
    %c0_151 = arith.constant 0 : index
    %c24_152 = arith.constant 24 : index
    %413 = vector.load %arg17[%c0_151, %c24_152] : memref<16x32xf32, #tpu.memory_space<vmem>>, vector<8x8xf32>
    tpu.vector_store %arg17[%c0_151, %c24_152], %412 {strides = array<i32>} : memref<16x32xf32, #tpu.memory_space<vmem>>, vector<8x8xf32>,
    %414 = vector.extract_strided_slice %23 {offsets = [1, 0], sizes = [1, 8], strides = [1, 1]} : vector<2x8xf32> to vector<1x8xf32>
    %415 = vector.extract_strided_slice %316 {offsets = [8, 0], sizes = [8, 8], strides = [1, 1]} : vector<16x96xf32> to vector<8x8xf32>
    %416 = arith.truncf %415 : vector<8x8xf32> to vector<8x8xbf16>
    %417 = vector.extract_strided_slice %316 {offsets = [8, 32], sizes = [8, 8], strides = [1, 1]} : vector<16x96xf32> to vector<8x8xf32>
    %418 = arith.truncf %417 : vector<8x8xf32> to vector<8x8xbf16>
    %419 = vector.extract_strided_slice %316 {offsets = [8, 64], sizes = [8, 8], strides = [1, 1]} : vector<16x96xf32> to vector<8x8xf32>
    %420 = arith.truncf %419 : vector<8x8xf32> to vector<8x8xbf16>
    %cst_153 = arith.constant dense<0.000000e+00> : vector<8x8xf32>
    %421 = tpu.matmul %416, %418, %cst_153 {dimension_numbers = #tpu.dot_dimension_numbers<[1], [1], [0], [0], [0, 0, 1, 0], [], []>} : vector<8x8xbf16>, vector<8x8xbf16>, vector<8x8xf32> -> vector<8x8xf32>
    %cst_154 = arith.constant 0.353553385 : f32
    %422 = vector.broadcast %cst_154 : f32 to vector<8x8xf32>
    %423 = arith.mulf %421, %422 : vector<8x8xf32>
    %424 = vector.broadcast %414 : vector<1x8xf32> to vector<8x8xf32>
    %425 = arith.addf %423, %424 : vector<8x8xf32>
    %cst_155 = arith.constant dense<0xFF800000> : vector<8xf32>
    %426 = vector.multi_reduction <maximumf>, %425, %cst_155 [1] : vector<8x8xf32> to vector<8xf32>
    %427 = vector.shape_cast %426 : vector<8xf32> to vector<8x1xf32>
    %428 = vector.broadcast %427 : vector<8x1xf32> to vector<8x8xf32>
    %429 = arith.subf %425, %428 : vector<8x8xf32>
    %430 = math.exp %429 : vector<8x8xf32>
    %cst_156 = arith.constant dense<0.000000e+00> : vector<8xf32>
    %431 = vector.multi_reduction <add>, %430, %cst_156 [1] : vector<8x8xf32> to vector<8xf32>
    %432 = vector.shape_cast %431 : vector<8xf32> to vector<8x1xf32>
    %433 = tpu.reciprocal %432 {approx = true} : vector<8x1xf32> -> vector<8x1xf32>
    %434 = vector.broadcast %433 : vector<8x1xf32> to vector<8x8xf32>
    %435 = arith.mulf %430, %434 : vector<8x8xf32>
    %436 = arith.truncf %435 : vector<8x8xf32> to vector<8x8xbf16>
    %cst_157 = arith.constant dense<0.000000e+00> : vector<8x8xf32>
    %437 = tpu.matmul %436, %420, %cst_157 {dimension_numbers = #tpu.dot_dimension_numbers<[1], [0], [0], [1], [0, 0, 1, 1], [], []>} : vector<8x8xbf16>, vector<8x8xbf16>, vector<8x8xf32> -> vector<8x8xf32>
    %c8_158 = arith.constant 8 : index
    %c0_159 = arith.constant 0 : index
    %438 = vector.load %arg17[%c8_158, %c0_159] : memref<16x32xf32, #tpu.memory_space<vmem>>, vector<8x8xf32>
    tpu.vector_store %arg17[%c8_158, %c0_159], %437 {strides = array<i32>} : memref<16x32xf32, #tpu.memory_space<vmem>>, vector<8x8xf32>,
    %439 = vector.extract_strided_slice %316 {offsets = [8, 8], sizes = [8, 8], strides = [1, 1]} : vector<16x96xf32> to vector<8x8xf32>
    %440 = arith.truncf %439 : vector<8x8xf32> to vector<8x8xbf16>
    %441 = vector.extract_strided_slice %316 {offsets = [8, 40], sizes = [8, 8], strides = [1, 1]} : vector<16x96xf32> to vector<8x8xf32>
    %442 = arith.truncf %441 : vector<8x8xf32> to vector<8x8xbf16>
    %443 = vector.extract_strided_slice %316 {offsets = [8, 72], sizes = [8, 8], strides = [1, 1]} : vector<16x96xf32> to vector<8x8xf32>
    %444 = arith.truncf %443 : vector<8x8xf32> to vector<8x8xbf16>
    %cst_160 = arith.constant dense<0.000000e+00> : vector<8x8xf32>
    %445 = tpu.matmul %440, %442, %cst_160 {dimension_numbers = #tpu.dot_dimension_numbers<[1], [1], [0], [0], [0, 0, 1, 0], [], []>} : vector<8x8xbf16>, vector<8x8xbf16>, vector<8x8xf32> -> vector<8x8xf32>
    %cst_161 = arith.constant 0.353553385 : f32
    %446 = vector.broadcast %cst_161 : f32 to vector<8x8xf32>
    %447 = arith.mulf %445, %446 : vector<8x8xf32>
    %448 = vector.broadcast %414 : vector<1x8xf32> to vector<8x8xf32>
    %449 = arith.addf %447, %448 : vector<8x8xf32>
    %cst_162 = arith.constant dense<0xFF800000> : vector<8xf32>
    %450 = vector.multi_reduction <maximumf>, %449, %cst_162 [1] : vector<8x8xf32> to vector<8xf32>
    %451 = vector.shape_cast %450 : vector<8xf32> to vector<8x1xf32>
    %452 = vector.broadcast %451 : vector<8x1xf32> to vector<8x8xf32>
    %453 = arith.subf %449, %452 : vector<8x8xf32>
    %454 = math.exp %453 : vector<8x8xf32>
    %cst_163 = arith.constant dense<0.000000e+00> : vector<8xf32>
    %455 = vector.multi_reduction <add>, %454, %cst_163 [1] : vector<8x8xf32> to vector<8xf32>
    %456 = vector.shape_cast %455 : vector<8xf32> to vector<8x1xf32>
    %457 = tpu.reciprocal %456 {approx = true} : vector<8x1xf32> -> vector<8x1xf32>
    %458 = vector.broadcast %457 : vector<8x1xf32> to vector<8x8xf32>
    %459 = arith.mulf %454, %458 : vector<8x8xf32>
    %460 = arith.truncf %459 : vector<8x8xf32> to vector<8x8xbf16>
    %cst_164 = arith.constant dense<0.000000e+00> : vector<8x8xf32>
    %461 = tpu.matmul %460, %444, %cst_164 {dimension_numbers = #tpu.dot_dimension_numbers<[1], [0], [0], [1], [0, 0, 1, 1], [], []>} : vector<8x8xbf16>, vector<8x8xbf16>, vector<8x8xf32> -> vector<8x8xf32>
    %c8_165 = arith.constant 8 : index
    %c8_166 = arith.constant 8 : index
    %462 = vector.load %arg17[%c8_165, %c8_166] : memref<16x32xf32, #tpu.memory_space<vmem>>, vector<8x8xf32>
    tpu.vector_store %arg17[%c8_165, %c8_166], %461 {strides = array<i32>} : memref<16x32xf32, #tpu.memory_space<vmem>>, vector<8x8xf32>,
    %463 = vector.extract_strided_slice %316 {offsets = [8, 16], sizes = [8, 8], strides = [1, 1]} : vector<16x96xf32> to vector<8x8xf32>
    %464 = arith.truncf %463 : vector<8x8xf32> to vector<8x8xbf16>
    %465 = vector.extract_strided_slice %316 {offsets = [8, 48], sizes = [8, 8], strides = [1, 1]} : vector<16x96xf32> to vector<8x8xf32>
    %466 = arith.truncf %465 : vector<8x8xf32> to vector<8x8xbf16>
    %467 = vector.extract_strided_slice %316 {offsets = [8, 80], sizes = [8, 8], strides = [1, 1]} : vector<16x96xf32> to vector<8x8xf32>
    %468 = arith.truncf %467 : vector<8x8xf32> to vector<8x8xbf16>
    %cst_167 = arith.constant dense<0.000000e+00> : vector<8x8xf32>
    %469 = tpu.matmul %464, %466, %cst_167 {dimension_numbers = #tpu.dot_dimension_numbers<[1], [1], [0], [0], [0, 0, 1, 0], [], []>} : vector<8x8xbf16>, vector<8x8xbf16>, vector<8x8xf32> -> vector<8x8xf32>
    %cst_168 = arith.constant 0.353553385 : f32
    %470 = vector.broadcast %cst_168 : f32 to vector<8x8xf32>
    %471 = arith.mulf %469, %470 : vector<8x8xf32>
    %472 = vector.broadcast %414 : vector<1x8xf32> to vector<8x8xf32>
    %473 = arith.addf %471, %472 : vector<8x8xf32>
    %cst_169 = arith.constant dense<0xFF800000> : vector<8xf32>
    %474 = vector.multi_reduction <maximumf>, %473, %cst_169 [1] : vector<8x8xf32> to vector<8xf32>
    %475 = vector.shape_cast %474 : vector<8xf32> to vector<8x1xf32>
    %476 = vector.broadcast %475 : vector<8x1xf32> to vector<8x8xf32>
    %477 = arith.subf %473, %476 : vector<8x8xf32>
    %478 = math.exp %477 : vector<8x8xf32>
    %cst_170 = arith.constant dense<0.000000e+00> : vector<8xf32>
    %479 = vector.multi_reduction <add>, %478, %cst_170 [1] : vector<8x8xf32> to vector<8xf32>
    %480 = vector.shape_cast %479 : vector<8xf32> to vector<8x1xf32>
    %481 = tpu.reciprocal %480 {approx = true} : vector<8x1xf32> -> vector<8x1xf32>
    %482 = vector.broadcast %481 : vector<8x1xf32> to vector<8x8xf32>
    %483 = arith.mulf %478, %482 : vector<8x8xf32>
    %484 = arith.truncf %483 : vector<8x8xf32> to vector<8x8xbf16>
    %cst_171 = arith.constant dense<0.000000e+00> : vector<8x8xf32>
    %485 = tpu.matmul %484, %468, %cst_171 {dimension_numbers = #tpu.dot_dimension_numbers<[1], [0], [0], [1], [0, 0, 1, 1], [], []>} : vector<8x8xbf16>, vector<8x8xbf16>, vector<8x8xf32> -> vector<8x8xf32>
    %c8_172 = arith.constant 8 : index
    %c16_173 = arith.constant 16 : index
    %486 = vector.load %arg17[%c8_172, %c16_173] : memref<16x32xf32, #tpu.memory_space<vmem>>, vector<8x8xf32>
    tpu.vector_store %arg17[%c8_172, %c16_173], %485 {strides = array<i32>} : memref<16x32xf32, #tpu.memory_space<vmem>>, vector<8x8xf32>,
    %487 = vector.extract_strided_slice %316 {offsets = [8, 24], sizes = [8, 8], strides = [1, 1]} : vector<16x96xf32> to vector<8x8xf32>
    %488 = arith.truncf %487 : vector<8x8xf32> to vector<8x8xbf16>
    %489 = vector.extract_strided_slice %316 {offsets = [8, 56], sizes = [8, 8], strides = [1, 1]} : vector<16x96xf32> to vector<8x8xf32>
    %490 = arith.truncf %489 : vector<8x8xf32> to vector<8x8xbf16>
    %491 = vector.extract_strided_slice %316 {offsets = [8, 88], sizes = [8, 8], strides = [1, 1]} : vector<16x96xf32> to vector<8x8xf32>
    %492 = arith.truncf %491 : vector<8x8xf32> to vector<8x8xbf16>
    %cst_174 = arith.constant dense<0.000000e+00> : vector<8x8xf32>
    %493 = tpu.matmul %488, %490, %cst_174 {dimension_numbers = #tpu.dot_dimension_numbers<[1], [1], [0], [0], [0, 0, 1, 0], [], []>} : vector<8x8xbf16>, vector<8x8xbf16>, vector<8x8xf32> -> vector<8x8xf32>
    %cst_175 = arith.constant 0.353553385 : f32
    %494 = vector.broadcast %cst_175 : f32 to vector<8x8xf32>
    %495 = arith.mulf %493, %494 : vector<8x8xf32>
    %496 = vector.broadcast %414 : vector<1x8xf32> to vector<8x8xf32>
    %497 = arith.addf %495, %496 : vector<8x8xf32>
    %cst_176 = arith.constant dense<0xFF800000> : vector<8xf32>
    %498 = vector.multi_reduction <maximumf>, %497, %cst_176 [1] : vector<8x8xf32> to vector<8xf32>
    %499 = vector.shape_cast %498 : vector<8xf32> to vector<8x1xf32>
    %500 = vector.broadcast %499 : vector<8x1xf32> to vector<8x8xf32>
    %501 = arith.subf %497, %500 : vector<8x8xf32>
    %502 = math.exp %501 : vector<8x8xf32>
    %cst_177 = arith.constant dense<0.000000e+00> : vector<8xf32>
    %503 = vector.multi_reduction <add>, %502, %cst_177 [1] : vector<8x8xf32> to vector<8xf32>
    %504 = vector.shape_cast %503 : vector<8xf32> to vector<8x1xf32>
    %505 = tpu.reciprocal %504 {approx = true} : vector<8x1xf32> -> vector<8x1xf32>
    %506 = vector.broadcast %505 : vector<8x1xf32> to vector<8x8xf32>
    %507 = arith.mulf %502, %506 : vector<8x8xf32>
    %508 = arith.truncf %507 : vector<8x8xf32> to vector<8x8xbf16>
    %cst_178 = arith.constant dense<0.000000e+00> : vector<8x8xf32>
    %509 = tpu.matmul %508, %492, %cst_178 {dimension_numbers = #tpu.dot_dimension_numbers<[1], [0], [0], [1], [0, 0, 1, 1], [], []>} : vector<8x8xbf16>, vector<8x8xbf16>, vector<8x8xf32> -> vector<8x8xf32>
    %c8_179 = arith.constant 8 : index
    %c24_180 = arith.constant 24 : index
    %510 = vector.load %arg17[%c8_179, %c24_180] : memref<16x32xf32, #tpu.memory_space<vmem>>, vector<8x8xf32>
    tpu.vector_store %arg17[%c8_179, %c24_180], %509 {strides = array<i32>} : memref<16x32xf32, #tpu.memory_space<vmem>>, vector<8x8xf32>,
    %c0_181 = arith.constant 0 : index
    %c0_182 = arith.constant 0 : index
    %511 = vector.load %arg17[%c0_181, %c0_182] : memref<16x32xf32, #tpu.memory_space<vmem>>, vector<16x32xf32>
    %c1_183 = arith.constant 1 : index
    %c0_184 = arith.constant 0 : index
    %c0_185 = arith.constant 0 : index
    %512 = vector.load %arg6[%c1_183, %c0_184, %c0_185] : memref<2x32x32xbf16, #tpu.memory_space<vmem>>, vector<1x32x32xbf16>
    %513 = vector.shape_cast %512 : vector<1x32x32xbf16> to vector<32x32xbf16>
    %c1_186 = arith.constant 1 : index
    %c0_187 = arith.constant 0 : index
    %c0_188 = arith.constant 0 : index
    %514 = vector.load %arg7[%c1_186, %c0_187, %c0_188] : memref<2x1x32xf32, #tpu.memory_space<vmem>>, vector<1x1x32xf32>
    %515 = vector.shape_cast %514 : vector<1x1x32xf32> to vector<1x32xf32>
    %516 = arith.truncf %511 : vector<16x32xf32> to vector<16x32xbf16>
    %cst_189 = arith.constant dense<0.000000e+00> : vector<16x32xf32>
    %517 = tpu.matmul %516, %513, %cst_189 {dimension_numbers = #tpu.dot_dimension_numbers<[1], [0], [0], [1], [0, 0, 1, 1], [], []>} : vector<16x32xbf16>, vector<32x32xbf16>, vector<16x32xf32> -> vector<16x32xf32>
    %518 = vector.broadcast %515 : vector<1x32xf32> to vector<16x32xf32>
    %519 = arith.addf %517, %518 : vector<16x32xf32>
    %520 = arith.addf %519, %308 : vector<16x32xf32>
    %c1_190 = arith.constant 1 : index
    %c0_191 = arith.constant 0 : index
    %c0_192 = arith.constant 0 : index
    %521 = vector.load %arg8[%c1_190, %c0_191, %c0_192] : memref<2x1x32xf32, #tpu.memory_space<vmem>>, vector<1x1x32xf32>
    %522 = vector.shape_cast %521 : vector<1x1x32xf32> to vector<1x32xf32>
    %c1_193 = arith.constant 1 : index
    %c0_194 = arith.constant 0 : index
    %c0_195 = arith.constant 0 : index
    %523 = vector.load %arg9[%c1_193, %c0_194, %c0_195] : memref<2x1x32xf32, #tpu.memory_space<vmem>>, vector<1x1x32xf32>
    %524 = vector.shape_cast %523 : vector<1x1x32xf32> to vector<1x32xf32>
    %cst_196 = arith.constant dense<0.000000e+00> : vector<16xf32>
    %525 = vector.multi_reduction <add>, %520, %cst_196 [1] : vector<16x32xf32> to vector<16xf32>
    %526 = vector.shape_cast %525 : vector<16xf32> to vector<16x1xf32>
    %cst_197 = arith.constant 3.200000e+01 : f32
    %527 = vector.broadcast %cst_197 : f32 to vector<16x1xf32>
    %528 = arith.divf %526, %527 : vector<16x1xf32>
    %529 = vector.broadcast %528 : vector<16x1xf32> to vector<16x32xf32>
    %530 = arith.subf %520, %529 : vector<16x32xf32>
    %531 = arith.mulf %530, %530 : vector<16x32xf32>
    %cst_198 = arith.constant dense<0.000000e+00> : vector<16xf32>
    %532 = vector.multi_reduction <add>, %531, %cst_198 [1] : vector<16x32xf32> to vector<16xf32>
    %533 = vector.shape_cast %532 : vector<16xf32> to vector<16x1xf32>
    %cst_199 = arith.constant 3.200000e+01 : f32
    %534 = vector.broadcast %cst_199 : f32 to vector<16x1xf32>
    %535 = arith.divf %533, %534 : vector<16x1xf32>
    %cst_200 = arith.constant 9.99999996E-13 : f32
    %536 = vector.broadcast %cst_200 : f32 to vector<16x1xf32>
    %537 = arith.addf %535, %536 : vector<16x1xf32>
    %538 = math.rsqrt %537 : vector<16x1xf32>
    %539 = vector.broadcast %538 : vector<16x1xf32> to vector<16x32xf32>
    %540 = arith.mulf %530, %539 : vector<16x32xf32>
    %541 = vector.broadcast %522 : vector<1x32xf32> to vector<16x32xf32>
    %542 = arith.mulf %540, %541 : vector<16x32xf32>
    %543 = vector.broadcast %524 : vector<1x32xf32> to vector<16x32xf32>
    %544 = arith.addf %542, %543 : vector<16x32xf32>
    %c1_201 = arith.constant 1 : index
    %c0_202 = arith.constant 0 : index
    %c0_203 = arith.constant 0 : index
    %545 = vector.load %arg10[%c1_201, %c0_202, %c0_203] : memref<2x32x64xbf16, #tpu.memory_space<vmem>>, vector<1x32x64xbf16>
    %546 = vector.shape_cast %545 : vector<1x32x64xbf16> to vector<32x64xbf16>
    %c1_204 = arith.constant 1 : index
    %c0_205 = arith.constant 0 : index
    %c0_206 = arith.constant 0 : index
    %547 = vector.load %arg11[%c1_204, %c0_205, %c0_206] : memref<2x1x64xf32, #tpu.memory_space<vmem>>, vector<1x1x64xf32>
    %548 = vector.shape_cast %547 : vector<1x1x64xf32> to vector<1x64xf32>
    %549 = arith.truncf %544 : vector<16x32xf32> to vector<16x32xbf16>
    %cst_207 = arith.constant dense<0.000000e+00> : vector<16x64xf32>
    %550 = tpu.matmul %549, %546, %cst_207 {dimension_numbers = #tpu.dot_dimension_numbers<[1], [0], [0], [1], [0, 0, 1, 1], [], []>} : vector<16x32xbf16>, vector<32x64xbf16>, vector<16x64xf32> -> vector<16x64xf32>
    %551 = vector.broadcast %548 : vector<1x64xf32> to vector<16x64xf32>
    %552 = arith.addf %550, %551 : vector<16x64xf32>
    %cst_208 = arith.constant 5.000000e-01 : f32
    %553 = vector.broadcast %cst_208 : f32 to vector<16x64xf32>
    %554 = arith.mulf %553, %552 : vector<16x64xf32>
    %cst_209 = arith.constant 0.707106769 : f32
    %555 = vector.broadcast %cst_209 : f32 to vector<16x64xf32>
    %556 = arith.mulf %552, %555 : vector<16x64xf32>
    %557 = math.erf %556 : vector<16x64xf32>
    %cst_210 = arith.constant 1.000000e+00 : f32
    %558 = vector.broadcast %cst_210 : f32 to vector<16x64xf32>
    %559 = arith.addf %558, %557 : vector<16x64xf32>
    %560 = arith.mulf %554, %559 : vector<16x64xf32>
    %c1_211 = arith.constant 1 : index
    %c0_212 = arith.constant 0 : index
    %c0_213 = arith.constant 0 : index
    %561 = vector.load %arg12[%c1_211, %c0_212, %c0_213] : memref<2x64x32xbf16, #tpu.memory_space<vmem>>, vector<1x64x32xbf16>
    %562 = vector.shape_cast %561 : vector<1x64x32xbf16> to vector<64x32xbf16>
    %c1_214 = arith.constant 1 : index
    %c0_215 = arith.constant 0 : index
    %c0_216 = arith.constant 0 : index
    %563 = vector.load %arg13[%c1_214, %c0_215, %c0_216] : memref<2x1x32xf32, #tpu.memory_space<vmem>>, vector<1x1x32xf32>
    %564 = vector.shape_cast %563 : vector<1x1x32xf32> to vector<1x32xf32>
    %565 = arith.truncf %560 : vector<16x64xf32> to vector<16x64xbf16>
    %cst_217 = arith.constant dense<0.000000e+00> : vector<16x32xf32>
    %566 = tpu.matmul %565, %562, %cst_217 {dimension_numbers = #tpu.dot_dimension_numbers<[1], [0], [0], [1], [0, 0, 1, 1], [], []>} : vector<16x64xbf16>, vector<64x32xbf16>, vector<16x32xf32> -> vector<16x32xf32>
    %567 = vector.broadcast %564 : vector<1x32xf32> to vector<16x32xf32>
    %568 = arith.addf %566, %567 : vector<16x32xf32>
    %569 = arith.addf %568, %544 : vector<16x32xf32>
    %c1_218 = arith.constant 1 : index
    %c0_219 = arith.constant 0 : index
    %c0_220 = arith.constant 0 : index
    %570 = vector.load %arg14[%c1_218, %c0_219, %c0_220] : memref<2x1x32xf32, #tpu.memory_space<vmem>>, vector<1x1x32xf32>
    %571 = vector.shape_cast %570 : vector<1x1x32xf32> to vector<1x32xf32>
    %c1_221 = arith.constant 1 : index
    %c0_222 = arith.constant 0 : index
    %c0_223 = arith.constant 0 : index
    %572 = vector.load %arg15[%c1_221, %c0_222, %c0_223] : memref<2x1x32xf32, #tpu.memory_space<vmem>>, vector<1x1x32xf32>
    %573 = vector.shape_cast %572 : vector<1x1x32xf32> to vector<1x32xf32>
    %cst_224 = arith.constant dense<0.000000e+00> : vector<16xf32>
    %574 = vector.multi_reduction <add>, %569, %cst_224 [1] : vector<16x32xf32> to vector<16xf32>
    %575 = vector.shape_cast %574 : vector<16xf32> to vector<16x1xf32>
    %cst_225 = arith.constant 3.200000e+01 : f32
    %576 = vector.broadcast %cst_225 : f32 to vector<16x1xf32>
    %577 = arith.divf %575, %576 : vector<16x1xf32>
    %578 = vector.broadcast %577 : vector<16x1xf32> to vector<16x32xf32>
    %579 = arith.subf %569, %578 : vector<16x32xf32>
    %580 = arith.mulf %579, %579 : vector<16x32xf32>
    %cst_226 = arith.constant dense<0.000000e+00> : vector<16xf32>
    %581 = vector.multi_reduction <add>, %580, %cst_226 [1] : vector<16x32xf32> to vector<16xf32>
    %582 = vector.shape_cast %581 : vector<16xf32> to vector<16x1xf32>
    %cst_227 = arith.constant 3.200000e+01 : f32
    %583 = vector.broadcast %cst_227 : f32 to vector<16x1xf32>
    %584 = arith.divf %582, %583 : vector<16x1xf32>
    %cst_228 = arith.constant 9.99999996E-13 : f32
    %585 = vector.broadcast %cst_228 : f32 to vector<16x1xf32>
    %586 = arith.addf %584, %585 : vector<16x1xf32>
    %587 = math.rsqrt %586 : vector<16x1xf32>
    %588 = vector.broadcast %587 : vector<16x1xf32> to vector<16x32xf32>
    %589 = arith.mulf %579, %588 : vector<16x32xf32>
    %590 = vector.broadcast %571 : vector<1x32xf32> to vector<16x32xf32>
    %591 = arith.mulf %589, %590 : vector<16x32xf32>
    %592 = vector.broadcast %573 : vector<1x32xf32> to vector<16x32xf32>
    %593 = arith.addf %591, %592 : vector<16x32xf32>
    %c0_229 = arith.constant 0 : index
    %c0_230 = arith.constant 0 : index
    %594 = vector.load %arg16[%c0_229, %c0_230] : memref<16x32xf32, #tpu.memory_space<vmem>>, vector<16x32xf32>
    tpu.vector_store %arg16[%c0_229, %c0_230], %593 {strides = array<i32>} : memref<16x32xf32, #tpu.memory_space<vmem>>, vector<16x32xf32>,
    return
  }
}

</mosaic_0001>

<bundles_post_ra>
// kernel: bert_encoder_forward.1
= control target key start
LH: loop header
LB: loop body
LE: loop exit
PB: predicated region body
PF: predicated region fallthrough
CT: control target
= control target key end

     0   :  { %s2878_s0 = inlined_call_operand.vmem [shape: f32[16,32], index: 0, kind: input, shape index: {}]   ;;  %s2879_s1 = inlined_call_operand.vmem [shape: f32[2,8], index: 1, kind: input, shape index: {}]   ;;  %s2880_s2 = inlined_call_operand.vmem [shape: f32[1,32], index: 2, kind: input, shape index: {}]   ;;  %s2881_s3 = inlined_call_operand.vmem [shape: f32[1,32], index: 3, kind: input, shape index: {}]   ;;  %s2882_s4 = inlined_call_operand.vmem [shape: bf16[2,32,96], index: 4, kind: input, shape index: {}]   ;;  %s2883_s5 = inlined_call_operand.vmem [shape: f32[2,1,96], index: 5, kind: input, shape index: {}]   ;;  %s2884_s6 = inlined_call_operand.vmem [shape: bf16[2,32,32], index: 6, kind: input, shape index: {}]   ;;  %s2885_s7 = inlined_call_operand.vmem [shape: f32[2,1,32], index: 7, kind: input, shape index: {}]   ;;  %s2886_s8 = inlined_call_operand.vmem [shape: f32[2,1,32], index: 8, kind: input, shape index: {}]   ;;  %s2887_s9 = inlined_call_operand.vmem [shape: f32[2,1,32], index: 9, kind: input, shape index: {}]   ;;  %s2888_s10 = inlined_call_operand.vmem [shape: bf16[2,32,64], index: 10, kind: input, shape index: {}]   ;;  %s2889_s11 = inlined_call_operand.vmem [shape: f32[2,1,64], index: 11, kind: input, shape index: {}]   ;;  %s2890_s12 = inlined_call_operand.vmem [shape: bf16[2,64,32], index: 12, kind: input, shape index: {}]   ;;  %s2891_s13 = inlined_call_operand.vmem [shape: f32[2,1,32], index: 13, kind: input, shape index: {}]   ;;  %s2892_s14 = inlined_call_operand.vmem [shape: f32[2,1,32], index: 14, kind: input, shape index: {}]   ;;  %s2893_s15 = inlined_call_operand.vmem [shape: f32[2,1,32], index: 15, kind: input, shape index: {}]   ;;  %s2894_s16 = inlined_call_operand.hbm [shape: f32[16,32], index: 16, kind: output, shape index: {}]  }
   0x1   :  { %2900 = sst [smem:[#allocation6_spill]] %s2878_s0 }
   0x2   :  { %s2901_s23 = sld [smem:[#allocation6_spill]]  ;;  %vm59_vm0 = vcmask 261120  }
   0x8   :  { %v55_v0 = vld [vmem:[%s2901_s23] sm:$0xff]  ;;  %v56_v2 = vld [vmem:[%s2901_s23 + $0x8] sm:$0xff] }
   0x9   :  { %v60_v1 = vsel %vm59_vm0, %v55_v0, 0.0 }
   0xa   :  { %61 = vadd.xlane.f32.xlu0 %v60_v1 }
   0xb   :  { %21 = vsyncpa [#allocation4], 0  ;;  %v63_v3 = vsel %vm59_vm0, %v56_v2, 0.0  ;;  %v2229_v4 = vmov 32.0   ;;  %v2055_v21 = vld [vmem:[%s2882_s4 + $0x8] sm:$0xff]  ;;  %v2054_v23 = vld [vmem:[%s2882_s4] sm:$0xff] }
   0xc   :  { %2109 = vrcp.f32 %v2229_v4  ;;  %152 = vmatpush.bf16.msra.mxu0 %v2055_v21  ;;  %v2091_v42 = vld [vmem:[%s2880_s2] ss:$0 sm:$0xff]  ;;  %s2230_s20 = smov 72   ;;  %s2232_s21 = smov 96   ;;  %vm164_vm8 = vcmask 64512   ;;  %vm204_vm9 = vcmask 1043456  }
   0xd   :  { %v2092_v47 = vld [vmem:[%s2881_s3] ss:$0 sm:$0xff]  ;;  %s2231_s3 = smov 120   ;;  %s2233_s22 = smov 112   ;;  %vm284_vm10 = vcmask 130112   ;;  %vm348_vm11 = vcmask 195712  }
   0xe   :  { %v2093_v52 = vld [vmem:[%s2883_s5] ss:$0 sm:$0xff]  ;;  %s2234_s23 = smov 88   ;;  %s2235_s24 = smov 80   ;;  %vm412_vm12 = vcmask 261312  }
   0xf   :  { %s2236_s25 = smov 104   ;;  %s2238_s28 = smov 56  }
  0x10   :  { %153 = vmatpush.bf16.msra.mxu0 %v2054_v23  ;;  %s2239_s29 = smov 48   ;;  %s2240_s30 = smov 40  }
  0x11   :  { %s2898_s0 = smov 16   ;;  %s2242_s17 = smov 8  }
  0x12   :  { %64 = vadd.xlane.f32.xlu0 %v63_v3  ;;  %v2110_v5 = vpop.eup %2109  ;;  %s2896_s18 = smov 24  }
  0x13   :  { %v67_v6 = vmul.f32 32.0, %v2110_v5  ;;  %vm71_vm1 = vweird.f32 %v2110_v5 }
  0x15   :  { %v68_v7 = vsub.f32 1.0, %v67_v6 }
  0x17   :  { %v69_v8 = vmul.f32 %v2110_v5, %v68_v7 }
  0x19   :  { %v70_v9 = vadd.f32 %v2110_v5, %v69_v8 }
  0x1b   :  { %v2339_v10 = vsel %vm71_vm1, %v2110_v5, %v70_v9 }
  0x7d   :  { %v62_v11 = vpop.xlane.xlu0 %61 }
  0x7e   :  { %v73_v12 = vmul.f32 %v2339_v10, %v62_v11 }
  0x80   :  { %v75_v13 = vsub.f32 %v55_v0, %v73_v12 }
  0x82   :  { %v77_v14 = vmul.f32 %v75_v13, %v75_v13 }
  0x84   :  { %v79_v15 = vsel %vm59_vm0, %v77_v14, 0.0 }
  0x85   :  { %80 = vadd.xlane.f32.xlu1 %v79_v15  ;;  %v65_v16 = vpop.xlane.xlu0 %64 }
  0x86   :  { %v74_v17 = vmul.f32 %v2339_v10, %v65_v16 }
  0x88   :  { %v76_v18 = vsub.f32 %v56_v2, %v74_v17 }
  0x8a   :  { %v78_v19 = vmul.f32 %v76_v18, %v76_v18 }
  0x8c   :  { %v82_v20 = vsel %vm59_vm0, %v78_v19, 0.0 }
  0x8d   :  { %83 = vadd.xlane.f32.xlu1 %v82_v20 }
  0xf8   :  { %v81_v22 = vpop.xlane.xlu1 %80 }
  0xf9   :  { %v85_v24 = vmul.f32 %v81_v22, %v2339_v10 }
  0xfb   :  { %v87_v25 = vadd.f32 1e-12, %v85_v24 }
  0xfd   :  { %2111 = vrsqrt.f32 %v87_v25  ;;  %vm95_vm3 = vweird.f32 %v87_v25 }
 0x100   :  { %v84_v26 = vpop.xlane.xlu1 %83 }
 0x101   :  { %v86_v27 = vmul.f32 %v84_v26, %v2339_v10 }
 0x103   :  { %v2112_v28 = vpop.eup %2111  ;;  %v88_v29 = vadd.f32 1e-12, %v86_v27 }
 0x104   :  { %v90_v30 = vmul.f32 %v2112_v28, %v87_v25  ;;  %vm96_vm2 = vweird.f32 %v2112_v28 }
 0x105   :  { %2113 = vrsqrt.f32 %v88_v29  ;;  %vm97_vm4 = vmor %vm95_vm3, %vm96_vm2  ;;  %vm105_vm6 = vweird.f32 %v88_v29 }
 0x106   :  { %v91_v31 = vmul.f32 %v2112_v28, %v90_v30 }
 0x108   :  { %v92_v32 = vmul.f32 0.5, %v91_v31 }
 0x10a   :  { %v93_v33 = vsub.f32 1.5, %v92_v32 }
 0x10b   :  { %v2114_v34 = vpop.eup %2113 }
 0x10c   :  { %v94_v35 = vmul.f32 %v2112_v28, %v93_v33  ;;  %v100_v36 = vmul.f32 %v2114_v34, %v88_v29  ;;  %vm106_vm5 = vweird.f32 %v2114_v34 }
 0x10d   :  { %vm107_vm7 = vmor %vm105_vm6, %vm106_vm5 }
 0x10e   :  { %v101_v37 = vmul.f32 %v2114_v34, %v100_v36  ;;  %v98_v38 = vsel %vm97_vm4, %v2112_v28, %v94_v35 }
 0x10f   :  { %v109_v41 = vmul.f32 %v98_v38, %v75_v13 }
 0x110   :  { %v102_v39 = vmul.f32 0.5, %v101_v37 }
 0x111   :  { %v114_v46 = vmul.f32 %v2091_v42, %v109_v41 }
 0x112   :  { %v103_v40 = vsub.f32 1.5, %v102_v39 }
 0x113   :  { %v2359_v49 = vadd.f32 %v2092_v47, %v114_v46 }
 0x114   :  { %v104_v43 = vmul.f32 %v2114_v34, %v103_v40 }
 0x116   :  { %v108_v44 = vsel %vm107_vm7, %v2114_v34, %v104_v43 }
 0x117   :  { %v110_v45 = vmul.f32 %v108_v44, %v76_v18  ;;  %v121_v18 = vld [vmem:[%s2879_s1] sm:$0x3]  ;;  %s2237_s1 = smov 64  }
 0x118   :  { %v2422_v19 = vperm.slane %v121_v18, 0 }
 0x119   :  { %v115_v48 = vmul.f32 %v2091_v42, %v110_v45  ;;  %v2439_v45 = vperm.slane %v121_v18, 1 }
 0x11b   :  { %v2361_v50 = vadd.f32 %v2092_v47, %v115_v48 }
 0x11d   :  { %v127_v51 = vpack.c.bf16 %v2361_v50, %v2359_v49 }
 0x11f   :  { %1910 = vmatmul.msk.bf16.vlgmr.msra.gmra.mxu0 %vm59_vm0, %v127_v51 }
 0x19c   :  { %v155_v53 = vpop.f32.mrf.mxu0 }
 0x19d   :  { %v156_v54 = vadd.f32 %v2093_v52, %v155_v53 }
 0x19f   :  { %v2369_v55 = vpack.c.bf16 %v156_v54, %v156_v54 }
 0x1a1   :  { %352 = vrot.lane.b32.xlu1 %v2369_v55, %s2230_s20  ;;  %222 = vrot.lane.b32.xlu0 %v2369_v55, %s2231_s3 }
 0x1a2   :  { %162 = vrot.lane.b32.xlu2 %v2369_v55, %s2232_s21 }
 0x1a4   :  { %v157_v56 = vpop.f32.mrf.mxu0 }
 0x1a5   :  { %v158_v57 = vadd.f32 %v2093_v52, %v157_v56 }
 0x1a7   :  { %v2377_v58 = vpack.c.bf16 %v158_v57, %v158_v57 }
 0x1a9   :  { %416 = vrot.lane.b32.xlu1 %v2377_v58, %s2232_s21  ;;  %286 = vrot.lane.b32.xlu0 %v2369_v55, %s2233_s22 }
 0x1aa   :  { %224 = vrot.lane.b32.xlu2 %v2369_v55, %s2234_s23 }
 0x1b1   :  { %539 = vrot.lane.b32.xlu1 %v2377_v58, %s2235_s24  ;;  %602 = vrot.lane.b32.xlu0 %v2377_v58, %s2230_s20 }
 0x1b2   :  { %350 = vrot.lane.b32.xlu2 %v2369_v55, %s2236_s25 }
 0x1b9   :  { %537 = vrot.lane.b32.xlu0 %v2377_v58, %s2233_s22 }
 0x1ba   :  { %288 = vrot.lane.b32.xlu2 %v2369_v55, %s2235_s24 }
 0x1c2   :  { %476 = vrot.lane.b32.xlu2 %v2377_v58, %s2234_s23 }
 0x1ca   :  { %474 = vrot.lane.b32.xlu2 %v2377_v58, %s2231_s3 }
 0x1d2   :  { %600 = vrot.lane.b32.xlu2 %v2377_v58, %s2236_s25 }
 0x1fc   :  { %v163_v59 = vpop.permute.xlu2 %162 }
 0x1fd   :  { %v169_v60 = vsel %vm164_vm8, %v163_v59, 0 }
 0x1fe   :  { %178 = vmatpush.bf16.xpose.msra.mxu1 %v169_v60 }
 0x204   :  { %v225_v61 = vpop.permute.xlu2 %224 }
 0x205   :  { %1911 = vmatmul.msk.bf16.vlgmr.msra.gmra.mxu1 %vm164_vm8, %v2369_v55  ;;  %v230_v62 = vsel %vm164_vm8, %v225_v61, 0 }
 0x206   :  { %239 = vmatpush.bf16.xpose.msra.mxu3 %v230_v62 }
 0x20c   :  { %v351_v63 = vpop.permute.xlu2 %350 }
 0x213   :  { %v353_v0 = vpop.permute.xlu1 %352  ;;  %v223_v1 = vpop.permute.xlu0 %222 }
 0x214   :  { %v289_v2 = vpop.permute.xlu2 %288  ;;  %1913 = vmatmul.msk.bf16.vlgmr.msra.gmra.mxu3 %vm164_vm8, %v223_v1  ;;  %v358_v3 = vsel %vm164_vm8, %v353_v0, 0 }
 0x215   :  { %v294_v4 = vsel %vm164_vm8, %v289_v2, 0  ;;  %367 = vmatpush.bf16.xpose.msrb.mxu3 %v358_v3 }
 0x216   :  { %303 = vmatpush.bf16.xpose.msrb.mxu0 %v294_v4 }
 0x21b   :  { %v417_v5 = vpop.permute.xlu1 %416  ;;  %v287_v6 = vpop.permute.xlu0 %286 }
 0x21c   :  { %v422_v7 = vsel %vm164_vm8, %v417_v5, 0  ;;  %v477_v8 = vpop.permute.xlu2 %476 }
 0x21d   :  { %v482_v9 = vsel %vm164_vm8, %v477_v8, 0  ;;  %1915 = vmatmul.msk.bf16.vlgmr.msrb.gmra.mxu0 %vm164_vm8, %v287_v6 }
 0x21e   :  { %431 = vmatpush.bf16.xpose.msra.mxu0 %v422_v7  ;;  %491 = vmatpush.bf16.xpose.msra.mxu3 %v482_v9 }
 0x223   :  { %v540_v11 = vpop.permute.xlu1 %539  ;;  %v603_v12 = vpop.permute.xlu0 %602 }
 0x224   :  { %v545_v13 = vsel %vm164_vm8, %v540_v11, 0  ;;  %v608_v14 = vsel %vm164_vm8, %v603_v12, 0  ;;  %1917 = vmatmul.msk.bf16.vlgmr.msrb.gmra.mxu3 %vm164_vm8, %v351_v63  ;;  %v475_v15 = vpop.permute.xlu2 %474 }
 0x226   :  { %554 = vmatpush.bf16.xpose.msrb.mxu0 %v545_v13  ;;  %617 = vmatpush.bf16.xpose.msrb.mxu3 %v608_v14 }
 0x22b   :  { %v538_v16 = vpop.permute.xlu0 %537 }
 0x22c   :  { %v601_v17 = vpop.permute.xlu2 %600 }
 0x22d   :  { %1919 = vmatmul.msk.bf16.vlgmr.msra.gmra.mxu0 %vm164_vm8, %v2377_v58 }
 0x234   :  { %1921 = vmatmul.msk.bf16.vlgmr.msra.gmra.mxu3 %vm164_vm8, %v475_v15 }
 0x23d   :  { %1923 = vmatmul.msk.bf16.vlgmr.msrb.gmra.mxu0 %vm164_vm8, %v538_v16 }
 0x244   :  { %1925 = vmatmul.msk.bf16.vlgmr.msrb.gmra.mxu3 %vm164_vm8, %v601_v17 }
 0x282   :  { %v180_v20 = vpop.f32.mrf.mxu1 }
 0x283   :  { %v184_v21 = vmul.f32 0.35355338, %v180_v20 }
 0x285   :  { %v186_v22 = vadd.f32 %v2422_v19, %v184_v21 }
 0x287   :  { %v187_v23 = vsel %vm164_vm8, %v186_v22, -inf }
 0x288   :  { %188 = vmax.xlane.f32.xlu2 %v187_v23 }
 0x28a   :  { %v182_v24 = vpop.f32.mrf.mxu1 }
 0x297   :  { %v241_v25 = vpop.f32.mrf.mxu3 }
 0x298   :  { %v245_v26 = vmul.f32 0.35355338, %v241_v25 }
 0x29a   :  { %v305_v27 = vpop.f32.mrf.mxu0  ;;  %v246_v28 = vadd.f32 %v245_v26, %v2422_v19 }
 0x29b   :  { %v309_v29 = vmul.f32 0.35355338, %v305_v27 }
 0x29c   :  { %v247_v30 = vsel %vm164_vm8, %v246_v28, -inf }
 0x29d   :  { %248 = vmax.xlane.f32.xlu1 %v247_v30  ;;  %v310_v31 = vadd.f32 %v309_v29, %v2422_v19 }
 0x29f   :  { %v243_v32 = vpop.f32.mrf.mxu3  ;;  %v311_v33 = vsel %vm164_vm8, %v310_v31, -inf }
 0x2a0   :  { %312 = vmax.xlane.f32.xlu2 %v311_v33 }
 0x2a2   :  { %v307_v34 = vpop.f32.mrf.mxu0 }
 0x2a7   :  { %v369_v35 = vpop.f32.mrf.mxu3 }
 0x2a8   :  { %v373_v36 = vmul.f32 0.35355338, %v369_v35 }
 0x2aa   :  { %v433_v37 = vpop.f32.mrf.mxu0  ;;  %v2431_v38 = vadd.f32 %v373_v36, %v2422_v19 }
 0x2ab   :  { %v437_v60 = vmul.f32 0.35355338, %v433_v37 }
 0x2ac   :  { %v375_v39 = vsel %vm164_vm8, %v2431_v38, -inf }
 0x2ad   :  { %376 = vmax.xlane.f32.xlu0 %v375_v39  ;;  %v439_v62 = vadd.f32 %v2439_v45, %v437_v60 }
 0x2af   :  { %v371_v40 = vpop.f32.mrf.mxu3  ;;  %v440_v0 = vsel %vm164_vm8, %v439_v62, -inf }
 0x2b2   :  { %v435_v41 = vpop.f32.mrf.mxu0 }
 0x2b6   :  { %199 = vrot.lane.b32.xlu1 %v2369_v55, %s2237_s1 }
 0x2b7   :  { %v493_v42 = vpop.f32.mrf.mxu3 }
 0x2b8   :  { %259 = vrot.lane.b32.xlu2 %v2369_v55, %s2238_s28  ;;  %v497_v59 = vmul.f32 0.35355338, %v493_v42 }
 0x2ba   :  { %v556_v43 = vpop.f32.mrf.mxu0  ;;  %v498_v61 = vadd.f32 %v497_v59, %v2439_v45 }
 0x2bb   :  { %v560_v44 = vmul.f32 0.35355338, %v556_v43 }
 0x2bc   :  { %v499_v63 = vsel %vm164_vm8, %v498_v61, -inf }
 0x2bd   :  { %v561_v46 = vadd.f32 %v560_v44, %v2439_v45 }
 0x2bf   :  { %v562_v47 = vsel %vm164_vm8, %v561_v46, -inf  ;;  %v495_v48 = vpop.f32.mrf.mxu3 }
 0x2c0   :  { %563 = vmax.xlane.f32.xlu0 %v562_v47 }
 0x2c2   :  { %v558_v51 = vpop.f32.mrf.mxu0 }
 0x2c7   :  { %v619_v52 = vpop.f32.mrf.mxu3 }
 0x2c8   :  { %v623_v53 = vmul.f32 0.35355338, %v619_v52 }
 0x2ca   :  { %v2444_v54 = vadd.f32 %v623_v53, %v2439_v45 }
 0x2cc   :  { %v625_v56 = vsel %vm164_vm8, %v2444_v54, -inf }
 0x2cd   :  { %626 = vmax.xlane.f32.xlu0 %v625_v56 }
 0x2cf   :  { %v621_v57 = vpop.f32.mrf.mxu3 }
 0x2e0   :  { %500 = vmax.xlane.f32.xlu1 %v499_v63 }
 0x2e1   :  { %441 = vmax.xlane.f32.xlu2 %v440_v0 }
 0x2f9   :  { %323 = vrot.lane.b32.xlu2 %v2369_v55, %s2239_s29 }
 0x2fb   :  { %v189_v1 = vpop.xlane.xlu2 %188 }
 0x2fc   :  { %v190_v2 = vsub.f32 %v186_v22, %v189_v1 }
 0x2fe   :  { %v191_v3 = vmul.f32 1.442695, %v190_v2 }
 0x300   :  { %2115 = vpow2.f32 %v191_v3 }
 0x306   :  { %v2454_v4 = vpop.eup %2115 }
 0x307   :  { %v193_v5 = vsel %vm164_vm8, %v2454_v4, 0.0 }
 0x308   :  { %194 = vadd.xlane.f32.xlu0 %v193_v5 }
 0x310   :  { %v249_v6 = vpop.xlane.xlu1 %248 }
 0x311   :  { %v250_v7 = vsub.f32 %v246_v28, %v249_v6 }
 0x313   :  { %v251_v8 = vmul.f32 1.442695, %v250_v7  ;;  %v313_v9 = vpop.xlane.xlu2 %312 }
 0x314   :  { %v314_v11 = vsub.f32 %v310_v31, %v313_v9 }
 0x315   :  { %2117 = vpow2.f32 %v251_v8 }
 0x316   :  { %v315_v12 = vmul.f32 1.442695, %v314_v11 }
 0x318   :  { %2119 = vpow2.f32 %v315_v12 }
 0x31b   :  { %v2460_v13 = vpop.eup %2117  ;;  %v260_v17 = vpop.permute.xlu2 %259 }
 0x31c   :  { %387 = vrot.lane.b32.xlu0 %v2369_v55, %s2240_s30  ;;  %v253_v16 = vsel %vm164_vm8, %v2460_v13, 0.0  ;;  %v265_v55 = vsel %vm204_vm9, %v260_v17, 0 }
 0x31e   :  { %v2462_v14 = vpop.eup %2119 }
 0x31f   :  { %v317_v15 = vsel %vm164_vm8, %v2462_v14, 0.0 }
 0x320   :  { %318 = vadd.xlane.f32.xlu1 %v317_v15  ;;  %v377_v21 = vpop.xlane.xlu0 %376 }
 0x321   :  { %v378_v30 = vsub.f32 %v2431_v38, %v377_v21 }
 0x322   :  { %254 = vadd.xlane.f32.xlu2 %v253_v16 }
 0x323   :  { %v379_v32 = vmul.f32 1.442695, %v378_v30 }
 0x328   :  { %v200_v18 = vpop.permute.xlu1 %199 }
 0x329   :  { %v206_v20 = vsel %vm204_vm9, %v200_v18, 0 }
 0x32a   :  { %215 = vmatpush.bf16.msra.mxu2 %v206_v20 }
 0x32e   :  { %274 = vmatpush.bf16.msrb.mxu2 %v265_v55 }
 0x333   :  { %v564_v22 = vpop.xlane.xlu0 %563 }
 0x334   :  { %v565_v23 = vsub.f32 %v561_v46, %v564_v22 }
 0x336   :  { %v566_v24 = vmul.f32 1.442695, %v565_v23 }
 0x338   :  { %2121 = vpow2.f32 %v566_v24 }
 0x339   :  { %511 = vrot.lane.b32.xlu1 %v2377_v58, %s2238_s28 }
 0x33a   :  { %452 = vrot.lane.b32.xlu2 %v2377_v58, %s2237_s1 }
 0x33e   :  { %v2475_v35 = vpop.eup %2121 }
 0x33f   :  { %v568_v42 = vsel %vm164_vm8, %v2475_v35, 0.0 }
 0x340   :  { %v627_v33 = vpop.xlane.xlu0 %626 }
 0x341   :  { %v628_v40 = vsub.f32 %v2444_v54, %v627_v33 }
 0x343   :  { %v629_v43 = vmul.f32 1.442695, %v628_v40 }
 0x353   :  { %v501_v25 = vpop.xlane.xlu1 %500 }
 0x354   :  { %v502_v26 = vsub.f32 %v498_v61, %v501_v25  ;;  %v442_v27 = vpop.xlane.xlu2 %441 }
 0x355   :  { %v443_v28 = vsub.f32 %v439_v62, %v442_v27 }
 0x356   :  { %v503_v29 = vmul.f32 1.442695, %v502_v26 }
 0x357   :  { %v444_v31 = vmul.f32 1.442695, %v443_v28 }
 0x358   :  { %2123 = vpow2.f32 %v503_v29 }
 0x359   :  { %2125 = vpow2.f32 %v444_v31 }
 0x35a   :  { %2127 = vpow2.f32 %v379_v32 }
 0x35b   :  { %2129 = vpow2.f32 %v629_v43 }
 0x35c   :  { %v324_v34 = vpop.permute.xlu2 %323 }
 0x35d   :  { %v329_v36 = vsel %vm204_vm9, %v324_v34, 0 }
 0x35e   :  { %v2478_v37 = vpop.eup %2123  ;;  %338 = vmatpush.bf16.msrb.mxu1 %v329_v36 }
 0x35f   :  { %v2126_v39 = vpop.eup %2125  ;;  %v505_v41 = vsel %vm164_vm8, %v2478_v37, 0.0 }
 0x360   :  { %v446_v38 = vsel %vm164_vm8, %v2126_v39, 0.0  ;;  %v2128_v44 = vpop.eup %2127 }
 0x361   :  { %447 = vadd.xlane.f32.xlu0 %v446_v38  ;;  %v381_v46 = vsel %vm164_vm8, %v2128_v44, 0.0  ;;  %v2487_v47 = vpop.eup %2129 }
 0x362   :  { %v631_v48 = vsel %vm164_vm8, %v2487_v47, 0.0 }
 0x363   :  { %506 = vadd.xlane.f32.xlu2 %v505_v41  ;;  %569 = vadd.xlane.f32.xlu1 %v568_v42 }
 0x369   :  { %382 = vadd.xlane.f32.xlu0 %v381_v46 }
 0x371   :  { %632 = vadd.xlane.f32.xlu0 %v631_v48 }
 0x37b   :  { %574 = vrot.lane.b32.xlu2 %v2377_v58, %s2239_s29  ;;  %v195_v51 = vpop.xlane.xlu0 %194 }
 0x37c   :  { %2131 = vrcp.f32 %v195_v51 }
 0x382   :  { %v2132_v52 = vpop.eup %2131 }
 0x383   :  { %v197_v53 = vmul.f32 %v2132_v52, %v2454_v4 }
 0x385   :  { %637 = vrot.lane.b32.xlu0 %v2377_v58, %s2240_s30  ;;  %v198_v54 = vpack.c.bf16 %v197_v53, %v197_v53 }
 0x387   :  { %1912 = vmatmul.msk.bf16.vlgmr.msra.gmra.mxu2 %vm164_vm8, %v198_v54 }
 0x38e   :  { %v388_v56 = vpop.permute.xlu0 %387 }
 0x38f   :  { %v393_v57 = vsel %vm204_vm9, %v388_v56, 0  ;;  %v2057_v56 = vld [vmem:[%s2884_s6 + $0x8] sm:$0xff] }
 0x390   :  { %402 = vmatpush.bf16.msra.mxu2 %v393_v57  ;;  %695 = vmatpush.bf16.msra.mxu0 %v2057_v56  ;;  %v2056_v57 = vld [vmem:[%s2884_s6] sm:$0xff] }
 0x393   :  { %v319_v59 = vpop.xlane.xlu1 %318 }
 0x394   :  { %2133 = vrcp.f32 %v319_v59  ;;  %696 = vmatpush.bf16.msra.mxu0 %v2056_v57 }
 0x395   :  { %v255_v60 = vpop.xlane.xlu2 %254 }
 0x396   :  { %2135 = vrcp.f32 %v255_v60 }
 0x39a   :  { %v2134_v61 = vpop.eup %2133 }
 0x39b   :  { %v321_v62 = vmul.f32 %v2134_v61, %v2462_v14 }
 0x39c   :  { %v2136_v63 = vpop.eup %2135 }
 0x39d   :  { %v257_v0 = vmul.f32 %v2136_v63, %v2460_v13  ;;  %v453_v1 = vpop.permute.xlu2 %452  ;;  %v322_v2 = vpack.c.bf16 %v321_v62, %v321_v62  ;;  %v2094_v63 = vld [vmem:[%s2885_s7] ss:$0 sm:$0xff] }
 0x39e   :  { %v458_v58 = vsel %vm204_vm9, %v453_v1, 0 }
 0x39f   :  { %1916 = vmatmul.msk.bf16.vlgmr.msrb.gmra.mxu1 %vm164_vm8, %v322_v2  ;;  %v258_v3 = vpack.c.bf16 %v257_v0, %v257_v0 }
 0x3a0   :  { %467 = vmatpush.bf16.msra.mxu1 %v458_v58 }
 0x3a1   :  { %1914 = vmatmul.msk.bf16.vlgmr.msrb.gmra.mxu2 %vm164_vm8, %v258_v3 }
 0x3ab   :  { %v512_v4 = vpop.permute.xlu1 %511 }
 0x3ac   :  { %v517_v5 = vsel %vm204_vm9, %v512_v4, 0 }
 0x3ad   :  { %526 = vmatpush.bf16.msrb.mxu2 %v517_v5 }
 0x3d4   :  { %v448_v6 = vpop.xlane.xlu0 %447 }
 0x3d5   :  { %2137 = vrcp.f32 %v448_v6 }
 0x3d6   :  { %v507_v7 = vpop.xlane.xlu2 %506  ;;  %v570_v13 = vpop.xlane.xlu1 %569 }
 0x3db   :  { %v2138_v8 = vpop.eup %2137 }
 0x3dc   :  { %v450_v9 = vmul.f32 %v2138_v8, %v2126_v39  ;;  %v383_v11 = vpop.xlane.xlu0 %382 }
 0x3dd   :  { %2139 = vrcp.f32 %v383_v11 }
 0x3de   :  { %v451_v12 = vpack.c.bf16 %v450_v9, %v450_v9  ;;  %v575_v14 = vpop.permute.xlu2 %574  ;;  %2141 = vrcp.f32 %v570_v13 }
 0x3df   :  { %v580_v15 = vsel %vm204_vm9, %v575_v14, 0  ;;  %2143 = vrcp.f32 %v507_v7 }
 0x3e0   :  { %1920 = vmatmul.msk.bf16.vlgmr.msra.gmra.mxu1 %vm164_vm8, %v451_v12 }
 0x3e1   :  { %589 = vmatpush.bf16.msrb.mxu1 %v580_v15 }
 0x3e3   :  { %v2140_v16 = vpop.eup %2139 }
 0x3e4   :  { %v385_v17 = vmul.f32 %v2140_v16, %v2128_v44  ;;  %v2142_v20 = vpop.eup %2141  ;;  %v633_v23 = vpop.xlane.xlu0 %632 }
 0x3e5   :  { %v572_v55 = vmul.f32 %v2142_v20, %v2475_v35  ;;  %v2144_v22 = vpop.eup %2143  ;;  %2145 = vrcp.f32 %v633_v23 }
 0x3e6   :  { %v386_v18 = vpack.c.bf16 %v385_v17, %v385_v17  ;;  %v509_v24 = vmul.f32 %v2144_v22, %v2478_v37 }
 0x3e7   :  { %v573_v21 = vpack.c.bf16 %v572_v55, %v572_v55  ;;  %v2058_v55 = vld [vmem:[%s2888_s10] sm:$0xff] }
 0x3e8   :  { %1918 = vmatmul.msk.bf16.vlgmr.msra.gmra.mxu2 %vm164_vm8, %v386_v18  ;;  %v510_v25 = vpack.c.bf16 %v509_v24, %v509_v24 }
 0x3eb   :  { %v2146_v28 = vpop.eup %2145 }
 0x3ec   :  { %v635_v29 = vmul.f32 %v2146_v28, %v2487_v47 }
 0x3ee   :  { %v636_v30 = vpack.c.bf16 %v635_v29, %v635_v29 }
 0x3f0   :  { %1924 = vmatmul.msk.bf16.vlgmr.msrb.gmra.mxu1 %vm164_vm8, %v573_v21 }
 0x3f7   :  { %v638_v26 = vpop.permute.xlu0 %637 }
 0x3f8   :  { %v643_v27 = vsel %vm204_vm9, %v638_v26, 0  ;;  %1922 = vmatmul.msk.bf16.vlgmr.msrb.gmra.mxu2 %vm164_vm8, %v510_v25 }
 0x3f9   :  { %652 = vmatpush.bf16.msra.mxu2 %v643_v27 }
 0x408   :  { %1926 = vmatmul.msk.bf16.vlgmr.msra.gmra.mxu2 %vm164_vm8, %v636_v30 }
 0x40a   :  { %v217_v31 = vpop.f32.mrf.mxu2 }
 0x40b   :  { %221 = vst.msk [vmem:[#allocation2] sm:$0xff] %vm164_vm8, %v217_v31 }
 0x412   :  { %v219_v32 = vpop.f32.mrf.mxu2 }
 0x41c   :  { %v340_v33 = vpop.f32.mrf.mxu1 }
 0x41d   :  { %345 = vrot.lane.b32.xlu0 %v340_v33, %s2898_s0 }
 0x424   :  { %v276_v34 = vpop.f32.mrf.mxu2  ;;  %v342_v35 = vpop.f32.mrf.mxu1 }
 0x425   :  { %281 = vrot.lane.b32.xlu0 %v276_v34, %s2242_s17 }
 0x42c   :  { %v278_v36 = vpop.f32.mrf.mxu2 }
 0x42d   :  { %v2095_v36 = vld [vmem:[%s2886_s8] ss:$0 sm:$0xff] }
 0x45d   :  { %v469_v37 = vpop.f32.mrf.mxu1 }
 0x45e   :  { %473 = vst.msk [vmem:[#allocation2 + $0x8] sm:$0xff] %vm164_vm8, %v469_v37 }
 0x465   :  { %v471_v39 = vpop.f32.mrf.mxu1 }
 0x46b   :  { %v404_v40 = vpop.f32.mrf.mxu2 }
 0x46c   :  { %409 = vrot.lane.b32.xlu0 %v404_v40, %s2896_s18 }
 0x46d   :  { %v591_v38 = vpop.f32.mrf.mxu1 }
 0x473   :  { %v406_v41 = vpop.f32.mrf.mxu2 }
 0x475   :  { %v593_v42 = vpop.f32.mrf.mxu1 }
 0x47b   :  { %v528_v43 = vpop.f32.mrf.mxu2 }
 0x47c   :  { %533 = vrot.lane.b32.xlu2 %v528_v43, %s2242_s17 }
 0x483   :  { %v530_v44 = vpop.f32.mrf.mxu2 }
 0x484   :  { %596 = vrot.lane.b32.xlu2 %v591_v38, %s2898_s0  ;;  %v2096_v38 = vld [vmem:[%s2887_s9] ss:$0 sm:$0xff] }
 0x48b   :  { %v654_v46 = vpop.f32.mrf.mxu2 }
 0x48c   :  { %659 = vrot.lane.b32.xlu1 %v654_v46, %s2896_s18 }
 0x48f   :  { %v346_v47 = vpop.permute.xlu0 %345 }
 0x493   :  { %v656_v48 = vpop.f32.mrf.mxu2 }
 0x494   :  { %v2097_v48 = vld [vmem:[%s2889_s11] ss:$0 sm:$0xff] }
 0x497   :  { %v282_v51 = vpop.permute.xlu0 %281 }
 0x498   :  { %285 = vst.msk [vmem:[#allocation2] sm:$0xff] %vm284_vm10, %v282_v51 }
 0x499   :  { %349 = vst.msk [vmem:[#allocation2] sm:$0xff] %vm348_vm11, %v346_v47 }
 0x4d6   :  { %v534_v52 = vpop.permute.xlu2 %533 }
 0x4d7   :  { %536 = vst.msk [vmem:[#allocation2 + $0x8] sm:$0xff] %vm284_vm10, %v534_v52 }
 0x4de   :  { %v410_v53 = vpop.permute.xlu0 %409  ;;  %v597_v54 = vpop.permute.xlu2 %596 }
 0x4df   :  { %413 = vst.msk [vmem:[#allocation2] sm:$0xff] %vm412_vm12, %v410_v53 }
 0x4e0   :  { %599 = vst.msk [vmem:[#allocation2 + $0x8] sm:$0xff] %vm348_vm11, %v597_v54 }
 0x4e6   :  { %v663_v60 = vld [vmem:[#allocation2] sm:$0xff] }
 0x4fe   :  { %v660_v59 = vpop.permute.xlu1 %659 }
 0x4ff   :  { %662 = vst.msk [vmem:[#allocation2 + $0x8] sm:$0xff] %vm412_vm12, %v660_v59 }
 0x506   :  { %v664_v61 = vld [vmem:[#allocation2 + $0x8] sm:$0xff] }
 0x507   :  { %v670_v62 = vpack.c.bf16 %v664_v61, %v663_v60 }
 0x509   :  { %1935 = vmatmul.msk.bf16.vlgmr.msra.gmra.mxu0 %vm59_vm0, %v670_v62 }
 0x586   :  { %v698_v0 = vpop.f32.mrf.mxu0 }
 0x587   :  { %v699_v1 = vadd.f32 %v2094_v63, %v698_v0 }
 0x589   :  { %v703_v2 = vadd.f32 %v699_v1, %v2359_v49 }
 0x58b   :  { %v707_v58 = vsel %vm59_vm0, %v703_v2, 0.0 }
 0x58c   :  { %708 = vadd.xlane.f32.xlu2 %v707_v58 }
 0x58e   :  { %v700_v3 = vpop.f32.mrf.mxu0 }
 0x58f   :  { %v701_v4 = vadd.f32 %v2094_v63, %v700_v3 }
 0x591   :  { %v704_v5 = vadd.f32 %v701_v4, %v2361_v50  ;;  %v2059_v50 = vld [vmem:[%s2888_s10 + $0x8] sm:$0xff] }
 0x592   :  { %791 = vmatpush.bf16.msra.mxu1 %v2059_v50 }
 0x593   :  { %v710_v6 = vsel %vm59_vm0, %v704_v5, 0.0 }
 0x594   :  { %711 = vadd.xlane.f32.xlu0 %v710_v6  ;;  %v2063_v6 = vld [vmem:[%s2890_s12 + $0x18] sm:$0xff] }
 0x595   :  { %932 = vmatpush.bf16.msra.mxu3 %v2063_v6 }
 0x596   :  { %792 = vmatpush.bf16.msra.mxu1 %v2058_v55 }
 0x5ff   :  { %v709_v7 = vpop.xlane.xlu2 %708 }
 0x600   :  { %v713_v8 = vmul.f32 %v709_v7, %v2339_v10 }
 0x602   :  { %v715_v9 = vsub.f32 %v703_v2, %v713_v8 }
 0x604   :  { %v717_v11 = vmul.f32 %v715_v9, %v715_v9 }
 0x606   :  { %v719_v12 = vsel %vm59_vm0, %v717_v11, 0.0 }
 0x607   :  { %v712_v13 = vpop.xlane.xlu0 %711  ;;  %720 = vadd.xlane.f32.xlu1 %v719_v12 }
 0x608   :  { %v714_v49 = vmul.f32 %v712_v13, %v2339_v10 }
 0x60a   :  { %v716_v14 = vsub.f32 %v704_v5, %v714_v49 }
 0x60c   :  { %v718_v15 = vmul.f32 %v716_v14, %v716_v14 }
 0x60e   :  { %v722_v16 = vsel %vm59_vm0, %v718_v15, 0.0 }
 0x60f   :  { %723 = vadd.xlane.f32.xlu2 %v722_v16 }
 0x67a   :  { %v721_v17 = vpop.xlane.xlu1 %720 }
 0x67b   :  { %v725_v18 = vmul.f32 %v721_v17, %v2339_v10 }
 0x67d   :  { %v727_v20 = vadd.f32 1e-12, %v725_v18 }
 0x67f   :  { %2147 = vrsqrt.f32 %v727_v20  ;;  %vm735_vm14 = vweird.f32 %v727_v20 }
 0x682   :  { %v724_v21 = vpop.xlane.xlu2 %723 }
 0x683   :  { %v726_v22 = vmul.f32 %v724_v21, %v2339_v10  ;;  %v2061_v21 = vld [vmem:[%s2890_s12 + $0x8] sm:$0xff] }
 0x685   :  { %v2148_v23 = vpop.eup %2147  ;;  %v728_v24 = vadd.f32 1e-12, %v726_v22 }
 0x686   :  { %v730_v25 = vmul.f32 %v2148_v23, %v727_v20  ;;  %vm736_vm13 = vweird.f32 %v2148_v23 }
 0x687   :  { %2149 = vrsqrt.f32 %v728_v24  ;;  %vm737_vm15 = vmor %vm735_vm14, %vm736_vm13  ;;  %vm745_vm2 = vweird.f32 %v728_v24 }
 0x688   :  { %v731_v26 = vmul.f32 %v2148_v23, %v730_v25 }
 0x68a   :  { %v732_v27 = vmul.f32 0.5, %v731_v26 }
 0x68c   :  { %v733_v28 = vsub.f32 1.5, %v732_v27  ;;  %v2060_v27 = vld [vmem:[%s2890_s12] sm:$0xff] }
 0x68d   :  { %v2150_v29 = vpop.eup %2149 }
 0x68e   :  { %v734_v30 = vmul.f32 %v2148_v23, %v733_v28  ;;  %v740_v31 = vmul.f32 %v2150_v29, %v728_v24  ;;  %vm746_vm1 = vweird.f32 %v2150_v29 }
 0x68f   :  { %vm747_vm3 = vmor %vm745_vm2, %vm746_vm1  ;;  %vm924_vm2 = vcmask 523264  }
 0x690   :  { %v741_v32 = vmul.f32 %v2150_v29, %v740_v31  ;;  %v738_v33 = vsel %vm737_vm15, %v2148_v23, %v734_v30 }
 0x691   :  { %v749_v37 = vmul.f32 %v738_v33, %v715_v9 }
 0x692   :  { %v742_v34 = vmul.f32 0.5, %v741_v32 }
 0x693   :  { %v754_v41 = vmul.f32 %v2095_v36, %v749_v37 }
 0x694   :  { %v743_v35 = vsub.f32 1.5, %v742_v34 }
 0x695   :  { %v2560_v44 = vadd.f32 %v2096_v38, %v754_v41 }
 0x696   :  { %v744_v39 = vmul.f32 %v2150_v29, %v743_v35 }
 0x698   :  { %v748_v40 = vsel %vm747_vm3, %v2150_v29, %v744_v39 }
 0x699   :  { %v750_v42 = vmul.f32 %v748_v40, %v716_v14  ;;  %v2062_v14 = vld [vmem:[%s2890_s12 + $0x10] sm:$0xff] }
 0x69a   :  { %933 = vmatpush.bf16.msra.mxu3 %v2062_v14 }
 0x69b   :  { %v755_v43 = vmul.f32 %v2095_v36, %v750_v42 }
 0x69d   :  { %v2562_v46 = vadd.f32 %v2096_v38, %v755_v43 }
 0x69e   :  { %934 = vmatpush.bf16.msra.mxu3 %v2061_v21 }
 0x69f   :  { %v766_v47 = vpack.c.bf16 %v2562_v46, %v2560_v44 }
 0x6a1   :  { %1944 = vmatmul.msk.bf16.vlgmr.msra.gmra.mxu1 %vm59_vm0, %v766_v47 }
 0x6a2   :  { %935 = vmatpush.bf16.msra.mxu3 %v2060_v27 }
 0x71e   :  { %v794_v51 = vpop.f32.mrf.mxu1 }
 0x71f   :  { %v2570_v52 = vadd.f32 %v2097_v48, %v794_v51 }
 0x721   :  { %v2573_v53 = vmul.f32 0.70710677, %v2570_v52 }
 0x723   :  { %v803_v54 = vmul.f32 %v2573_v53, %v2573_v53 }
 0x725   :  { %v804_v56 = vmin.f32 %v803_v54, 16.0 }
 0x726   :  { %v796_v57 = vpop.f32.mrf.mxu1 }
 0x727   :  { %v805_v59 = vmul.f32 2.1237322e-06, %v804_v56  ;;  %v816_v60 = vmul.f32 3.8918573e-05, %v804_v56  ;;  %v2577_v61 = vadd.f32 %v2097_v48, %v796_v57 }
 0x729   :  { %v806_v62 = vadd.f32 0.00028619796, %v805_v59  ;;  %v817_v63 = vadd.f32 0.001143296, %v816_v60  ;;  %v2580_v0 = vmul.f32 0.70710677, %v2577_v61 }
 0x72a   :  { %v800_v14 = vmul.f32 0.5, %v2577_v61 }
 0x72b   :  { %v818_v1 = vmul.f32 %v817_v63, %v804_v56  ;;  %v843_v2 = vmul.f32 %v2580_v0, %v2580_v0  ;;  %v807_v58 = vmul.f32 %v806_v62, %v804_v56 }
 0x72d   :  { %v819_v3 = vadd.f32 0.014752088, %v818_v1  ;;  %v844_v4 = vmin.f32 %v843_v2, 16.0  ;;  %v808_v9 = vadd.f32 0.0036580483, %v807_v58 }
 0x72f   :  { %v820_v5 = vmul.f32 %v819_v3, %v804_v56  ;;  %v845_v7 = vmul.f32 2.1237322e-06, %v844_v4  ;;  %v856_v8 = vmul.f32 3.8918573e-05, %v844_v4  ;;  %v809_v50 = vmul.f32 %v808_v9, %v804_v56 }
 0x731   :  { %v821_v11 = vadd.f32 0.112945676, %v820_v5  ;;  %v846_v12 = vadd.f32 0.00028619796, %v845_v7  ;;  %v857_v13 = vadd.f32 0.001143296, %v856_v8 }
 0x732   :  { %v810_v23 = vadd.f32 0.05243302, %v809_v50 }
 0x733   :  { %v822_v49 = vmul.f32 %v821_v11, %v804_v56  ;;  %v847_v15 = vmul.f32 %v846_v12, %v844_v4  ;;  %v858_v16 = vmul.f32 %v857_v13, %v844_v4 }
 0x734   :  { %v811_v29 = vmul.f32 %v810_v23, %v804_v56 }
 0x735   :  { %v823_v17 = vadd.f32 0.4994258, %v822_v49  ;;  %v848_v18 = vadd.f32 0.0036580483, %v847_v15  ;;  %v859_v20 = vadd.f32 0.014752088, %v858_v16 }
 0x736   :  { %v812_v34 = vadd.f32 0.18741608, %v811_v29  ;;  %v799_v49 = vmul.f32 0.5, %v2570_v52 }
 0x737   :  { %v824_v55 = vmul.f32 %v823_v17, %v804_v56  ;;  %v860_v22 = vmul.f32 %v859_v20, %v844_v4  ;;  %v849_v25 = vmul.f32 %v848_v18, %v844_v4 }
 0x738   :  { %v813_v40 = vmul.f32 %v812_v34, %v804_v56 }
 0x739   :  { %v825_v24 = vadd.f32 1.0, %v824_v55  ;;  %v861_v26 = vadd.f32 0.112945676, %v860_v22  ;;  %v850_v30 = vadd.f32 0.05243302, %v849_v25 }
 0x73a   :  { %v814_v48 = vadd.f32 1.1283791, %v813_v40 }
 0x73b   :  { %2151 = vrcp.f32 %v825_v24  ;;  %v862_v28 = vmul.f32 %v861_v26, %v844_v4  ;;  %v851_v36 = vmul.f32 %v850_v30, %v844_v4  ;;  %v837_v41 = vand.u32 2147483648, %v825_v24 }
 0x73c   :  { %v835_v43 = vand.u32 2147483647, %v825_v24  ;;  %vm831_vm5 = vweird.f32 %v825_v24  ;;  %v815_v63 = vmul.f32 %v814_v48, %v2573_v53 }
 0x73d   :  { %v863_v31 = vadd.f32 0.4994258, %v862_v28  ;;  %v852_v42 = vadd.f32 0.18741608, %v851_v36  ;;  %v838_v57 = vor.u32 1.1754944e-38, %v837_v41  ;;  %v2064_v36 = vld [vmem:[%s2882_s4 + $0x10] sm:$0xff] }
 0x73e   :  { %vm836_vm7 = vcmp.eq.f32.partialorder %v835_v43, 8.507059e+37 }
 0x73f   :  { %v864_v32 = vmul.f32 %v863_v31, %v844_v4  ;;  %v853_v59 = vmul.f32 %v852_v42, %v844_v4 }
 0x741   :  { %v2152_v33 = vpop.eup %2151  ;;  %v865_v37 = vadd.f32 1.0, %v864_v32  ;;  %v854_v56 = vadd.f32 1.1283791, %v853_v59 }
 0x742   :  { %v827_v35 = vmul.f32 %v2152_v33, %v825_v24  ;;  %vm832_vm4 = vweird.f32 %v2152_v33 }
 0x743   :  { %2153 = vrcp.f32 %v865_v37  ;;  %vm833_vm6 = vmor %vm831_vm5, %vm832_vm4  ;;  %v877_v2 = vand.u32 2147483648, %v865_v37  ;;  %v875_v5 = vand.u32 2147483647, %v865_v37  ;;  %vm871_vm14 = vweird.f32 %v865_v37 }
 0x744   :  { %v828_v39 = vsub.f32 1.0, %v827_v35  ;;  %v855_v9 = vmul.f32 %v854_v56, %v2580_v0  ;;  %v2098_v0 = vld [vmem:[%s2891_s13] ss:$0 sm:$0xff] }
 0x745   :  { %v878_v7 = vor.u32 1.1754944e-38, %v877_v2  ;;  %vm876_vm1 = vcmp.eq.f32.partialorder %v875_v5, 8.507059e+37 }
 0x746   :  { %v829_v38 = vmul.f32 %v2152_v33, %v828_v39 }
 0x748   :  { %v830_v47 = vadd.f32 %v2152_v33, %v829_v38 }
 0x749   :  { %v2154_v51 = vpop.eup %2153 }
 0x74a   :  { %v834_v54 = vsel %vm833_vm6, %v2152_v33, %v830_v47  ;;  %v867_v60 = vmul.f32 %v2154_v51, %v865_v37  ;;  %vm872_vm13 = vweird.f32 %v2154_v51 }
 0x74b   :  { %v839_v62 = vsel %vm836_vm7, %v838_v57, %v834_v54  ;;  %vm873_vm15 = vmor %vm871_vm14, %vm872_vm13 }
 0x74c   :  { %v868_v1 = vsub.f32 1.0, %v867_v60  ;;  %v840_v58 = vmul.f32 %v839_v62, %v815_v63  ;;  %v2099_v63 = vld [vmem:[%s2892_s14] ss:$0 sm:$0xff] }
 0x74e   :  { %v869_v3 = vmul.f32 %v2154_v51, %v868_v1  ;;  %v1945_v8 = vclamps-f32 %v840_v58, 1.0  ;;  %v2100_v58 = vld [vmem:[%s2893_s15] ss:$0 sm:$0xff] }
 0x750   :  { %v870_v6 = vadd.f32 %v2154_v51, %v869_v3  ;;  %v883_v13 = vadd.f32 1.0, %v1945_v8 }
 0x752   :  { %v874_v4 = vsel %vm873_vm15, %v2154_v51, %v870_v6  ;;  %v885_v16 = vmul.f32 %v883_v13, %v799_v49 }
 0x753   :  { %v879_v11 = vsel %vm876_vm1, %v878_v7, %v874_v4  ;;  %v2101_v4 = vld [vmem:[%s2883_s5 + $0x1] ss:$0 sm:$0xff]  ;;  %s2902_s5 = smov 16  }
 0x754   :  { %v880_v12 = vmul.f32 %v879_v11, %v855_v9 }
 0x756   :  { %v1946_v53 = vclamps-f32 %v880_v12, 1.0 }
 0x758   :  { %v884_v15 = vadd.f32 1.0, %v1946_v53 }
 0x75a   :  { %v886_v50 = vmul.f32 %v884_v15, %v800_v14 }
 0x75c   :  { %v896_v17 = vpack.c.bf16 %v886_v50, %v885_v16 }
 0x75e   :  { %1963 = vmatmul.msk.bf16.vlgmr.msra.gmra.mxu3 %vm924_vm2, %v896_v17 }
 0x7e1   :  { %v937_v18 = vpop.f32.mrf.mxu3 }
 0x7e2   :  { %v938_v20 = vadd.f32 %v2098_v0, %v937_v18 }
 0x7e4   :  { %v942_v55 = vadd.f32 %v938_v20, %v2560_v44 }
 0x7e6   :  { %v946_v21 = vsel %vm59_vm0, %v942_v55, 0.0 }
 0x7e7   :  { %947 = vadd.xlane.f32.xlu0 %v946_v21 }
 0x7e9   :  { %v939_v52 = vpop.f32.mrf.mxu3 }
 0x7ea   :  { %v940_v61 = vadd.f32 %v2098_v0, %v939_v52 }
 0x7ec   :  { %v943_v22 = vadd.f32 %v940_v61, %v2562_v46  ;;  %v2065_v46 = vld [vmem:[%s2882_s4 + $0x18] sm:$0xff] }
 0x7ed   :  { %1032 = vmatpush.bf16.msrb.mxu2 %v2065_v46 }
 0x7ee   :  { %v949_v23 = vsel %vm59_vm0, %v943_v22, 0.0 }
 0x7ef   :  { %950 = vadd.xlane.f32.xlu2 %v949_v23 }
 0x7f1   :  { %1033 = vmatpush.bf16.msrb.mxu2 %v2064_v36 }
 0x85a   :  { %v948_v24 = vpop.xlane.xlu0 %947 }
 0x85b   :  { %v952_v25 = vmul.f32 %v948_v24, %v2339_v10 }
 0x85d   :  { %v954_v26 = vsub.f32 %v942_v55, %v952_v25 }
 0x85f   :  { %v956_v27 = vmul.f32 %v954_v26, %v954_v26 }
 0x861   :  { %v958_v28 = vsel %vm59_vm0, %v956_v27, 0.0 }
 0x862   :  { %v951_v29 = vpop.xlane.xlu2 %950  ;;  %959 = vadd.xlane.f32.xlu0 %v958_v28 }
 0x863   :  { %v953_v44 = vmul.f32 %v951_v29, %v2339_v10 }
 0x865   :  { %v955_v30 = vsub.f32 %v943_v22, %v953_v44 }
 0x867   :  { %v957_v31 = vmul.f32 %v955_v30, %v955_v30 }
 0x869   :  { %v961_v32 = vsel %vm59_vm0, %v957_v31, 0.0 }
 0x86a   :  { %962 = vadd.xlane.f32.xlu2 %v961_v32 }
 0x8d5   :  { %v960_v33 = vpop.xlane.xlu0 %959 }
 0x8d6   :  { %v964_v34 = vmul.f32 %v960_v33, %v2339_v10 }
 0x8d8   :  { %v966_v35 = vadd.f32 1e-12, %v964_v34 }
 0x8da   :  { %2155 = vrsqrt.f32 %v966_v35  ;;  %vm974_vm4 = vweird.f32 %v966_v35 }
 0x8dd   :  { %v963_v37 = vpop.xlane.xlu2 %962 }
 0x8de   :  { %v965_v39 = vmul.f32 %v963_v37, %v2339_v10 }
 0x8e0   :  { %v2156_v40 = vpop.eup %2155  ;;  %v967_v38 = vadd.f32 1e-12, %v965_v39 }
 0x8e1   :  { %v969_v41 = vmul.f32 %v2156_v40, %v966_v35  ;;  %vm975_vm3 = vweird.f32 %v2156_v40 }
 0x8e2   :  { %2157 = vrsqrt.f32 %v967_v38  ;;  %vm976_vm5 = vmor %vm974_vm4, %vm975_vm3  ;;  %vm984_vm7 = vweird.f32 %v967_v38 }
 0x8e3   :  { %v970_v42 = vmul.f32 %v2156_v40, %v969_v41 }
 0x8e5   :  { %v971_v43 = vmul.f32 0.5, %v970_v42 }
 0x8e7   :  { %v972_v47 = vsub.f32 1.5, %v971_v43 }
 0x8e8   :  { %v2158_v48 = vpop.eup %2157 }
 0x8e9   :  { %v973_v51 = vmul.f32 %v2156_v40, %v972_v47  ;;  %v979_v54 = vmul.f32 %v2158_v48, %v967_v38  ;;  %vm985_vm6 = vweird.f32 %v2158_v48 }
 0x8ea   :  { %vm986_vm13 = vmor %vm984_vm7, %vm985_vm6 }
 0x8eb   :  { %v980_v57 = vmul.f32 %v2158_v48, %v979_v54  ;;  %v977_v59 = vsel %vm976_vm5, %v2156_v40, %v973_v51 }
 0x8ec   :  { %v988_v1 = vmul.f32 %v977_v59, %v954_v26 }
 0x8ed   :  { %v981_v60 = vmul.f32 0.5, %v980_v57 }
 0x8ee   :  { %v993_v3 = vmul.f32 %v2099_v63, %v988_v1 }
 0x8ef   :  { %v982_v62 = vsub.f32 1.5, %v981_v60 }
 0x8f0   :  { %v2626_v7 = vadd.f32 %v2100_v58, %v993_v3 }
 0x8f1   :  { %v983_v56 = vmul.f32 %v2158_v48, %v982_v62 }
 0x8f3   :  { %v987_v2 = vsel %vm986_vm13, %v2158_v48, %v983_v56 }
 0x8f4   :  { %v989_v5 = vmul.f32 %v987_v2, %v955_v30 }
 0x8f6   :  { %v994_v6 = vmul.f32 %v2099_v63, %v989_v5 }
 0x8f8   :  { %v2628_v8 = vadd.f32 %v2100_v58, %v994_v6 }
 0x8fa   :  { %v1007_v9 = vpack.c.bf16 %v2628_v8, %v2626_v7 }
 0x8fc   :  { %1977 = vmatmul.msk.bf16.vlgmr.msrb.gmra.mxu2 %vm59_vm0, %v1007_v9 }
 0x97f   :  { %v1035_v11 = vpop.f32.mrf.mxu2 }
 0x980   :  { %v1036_v12 = vadd.f32 %v2101_v4, %v1035_v11 }
 0x982   :  { %v2636_v13 = vpack.c.bf16 %v1036_v12, %v1036_v12 }
 0x984   :  { %1042 = vrot.lane.b32.xlu1 %v2636_v13, %s2232_s21  ;;  %1099 = vrot.lane.b32.xlu2 %v2636_v13, %s2231_s3 }
 0x985   :  { %1101 = vrot.lane.b32.xlu0 %v2636_v13, %s2234_s23 }
 0x987   :  { %v1037_v53 = vpop.f32.mrf.mxu2 }
 0x988   :  { %v1038_v49 = vadd.f32 %v2101_v4, %v1037_v53 }
 0x98a   :  { %v2650_v14 = vpack.c.bf16 %v1038_v49, %v1038_v49 }
 0x98c   :  { %1164 = vrot.lane.b32.xlu1 %v2636_v13, %s2235_s24  ;;  %1225 = vrot.lane.b32.xlu2 %v2636_v13, %s2236_s25 }
 0x98d   :  { %1227 = vrot.lane.b32.xlu0 %v2636_v13, %s2230_s20 }
 0x994   :  { %1347 = vrot.lane.b32.xlu1 %v2650_v14, %s2231_s3  ;;  %1162 = vrot.lane.b32.xlu2 %v2636_v13, %s2233_s22 }
 0x995   :  { %1349 = vrot.lane.b32.xlu0 %v2650_v14, %s2234_s23 }
 0x99c   :  { %1473 = vrot.lane.b32.xlu1 %v2650_v14, %s2236_s25  ;;  %1475 = vrot.lane.b32.xlu2 %v2650_v14, %s2230_s20  ;;  %s2903_s20 = smov 24  }
 0x99d   :  { %1290 = vrot.lane.b32.xlu0 %v2650_v14, %s2232_s21 }
 0x9a4   :  { %1410 = vrot.lane.b32.xlu2 %v2650_v14, %s2233_s22 }
 0x9a5   :  { %1412 = vrot.lane.b32.xlu0 %v2650_v14, %s2235_s24 }
 0x9ad   :  { %1136 = vrot.lane.b32.xlu0 %v2636_v13, %s2238_s28 }
 0x9de   :  { %v1100_v15 = vpop.permute.xlu2 %1099 }
 0x9e6   :  { %v1226_v18 = vpop.permute.xlu2 %1225 }
 0x9ee   :  { %v1163_v61 = vpop.permute.xlu2 %1162 }
 0x9f6   :  { %v1043_v16 = vpop.permute.xlu1 %1042  ;;  %v1476_v24 = vpop.permute.xlu2 %1475 }
 0x9f7   :  { %v1048_v50 = vsel %vm164_vm8, %v1043_v16, 0  ;;  %v1102_v17 = vpop.permute.xlu0 %1101  ;;  %v1481_v26 = vsel %vm164_vm8, %v1476_v24, 0 }
 0x9f8   :  { %v1107_v0 = vsel %vm164_vm8, %v1102_v17, 0  ;;  %1057 = vmatpush.bf16.xpose.msrb.mxu0 %v1048_v50 }
 0x9f9   :  { %1116 = vmatpush.bf16.xpose.msrb.mxu3 %v1107_v0 }
 0x9fe   :  { %v1165_v20 = vpop.permute.xlu1 %1164  ;;  %v1411_v32 = vpop.permute.xlu2 %1410 }
 0x9ff   :  { %v1170_v55 = vsel %vm164_vm8, %v1165_v20, 0  ;;  %v1228_v21 = vpop.permute.xlu0 %1227  ;;  %1978 = vmatmul.msk.bf16.vlgmr.msrb.gmra.mxu0 %vm164_vm8, %v2636_v13 }
 0xa00   :  { %v1233_v52 = vsel %vm164_vm8, %v1228_v21, 0  ;;  %1980 = vmatmul.msk.bf16.vlgmr.msrb.gmra.mxu3 %vm164_vm8, %v1100_v15  ;;  %1179 = vmatpush.bf16.xpose.msra.mxu0 %v1170_v55 }
 0xa01   :  { %1242 = vmatpush.bf16.xpose.msra.mxu3 %v1233_v52 }
 0xa06   :  { %v1348_v44 = vpop.permute.xlu1 %1347 }
 0xa07   :  { %v1350_v22 = vpop.permute.xlu0 %1349 }
 0xa08   :  { %v1355_v23 = vsel %vm164_vm8, %v1350_v22, 0 }
 0xa09   :  { %1364 = vmatpush.bf16.xpose.msrb.mxu3 %v1355_v23 }
 0xa0e   :  { %v1474_v46 = vpop.permute.xlu1 %1473 }
 0xa0f   :  { %v1291_v25 = vpop.permute.xlu0 %1290  ;;  %1982 = vmatmul.msk.bf16.vlgmr.msra.gmra.mxu0 %vm164_vm8, %v1163_v61 }
 0xa10   :  { %v1296_v27 = vsel %vm164_vm8, %v1291_v25, 0  ;;  %1984 = vmatmul.msk.bf16.vlgmr.msra.gmra.mxu3 %vm164_vm8, %v1226_v18 }
 0xa11   :  { %1490 = vmatpush.bf16.xpose.msra.mxu3 %v1481_v26  ;;  %1305 = vmatpush.bf16.xpose.msrb.mxu0 %v1296_v27 }
 0xa17   :  { %v1413_v28 = vpop.permute.xlu0 %1412 }
 0xa18   :  { %v1418_v29 = vsel %vm164_vm8, %v1413_v28, 0 }
 0xa19   :  { %1427 = vmatpush.bf16.xpose.msra.mxu0 %v1418_v29 }
 0xa1f   :  { %v1137_v30 = vpop.permute.xlu0 %1136  ;;  %1986 = vmatmul.msk.bf16.vlgmr.msrb.gmra.mxu0 %vm164_vm8, %v2650_v14 }
 0xa20   :  { %v1142_v31 = vsel %vm204_vm9, %v1137_v30, 0  ;;  %1988 = vmatmul.msk.bf16.vlgmr.msrb.gmra.mxu3 %vm164_vm8, %v1348_v44 }
 0xa21   :  { %1151 = vmatpush.bf16.msra.mxu2 %v1142_v31 }
 0xa2f   :  { %1990 = vmatmul.msk.bf16.vlgmr.msra.gmra.mxu0 %vm164_vm8, %v1411_v32 }
 0xa30   :  { %1992 = vmatmul.msk.bf16.vlgmr.msra.gmra.mxu3 %vm164_vm8, %v1474_v46 }
 0xa7c   :  { %v1059_v33 = vpop.f32.mrf.mxu0 }
 0xa7d   :  { %v1063_v34 = vmul.f32 0.35355338, %v1059_v33 }
 0xa7f   :  { %v1064_v35 = vadd.f32 %v1063_v34, %v2422_v19 }
 0xa81   :  { %v1065_v36 = vsel %vm164_vm8, %v1064_v35, -inf }
 0xa82   :  { %1066 = vmax.xlane.f32.xlu0 %v1065_v36 }
 0xa83   :  { %v1118_v37 = vpop.f32.mrf.mxu3 }
 0xa84   :  { %v1122_v39 = vmul.f32 0.35355338, %v1118_v37  ;;  %v1061_v40 = vpop.f32.mrf.mxu0 }
 0xa86   :  { %v1123_v38 = vadd.f32 %v1122_v39, %v2422_v19 }
 0xa88   :  { %v1124_v41 = vsel %vm164_vm8, %v1123_v38, -inf }
 0xa89   :  { %1125 = vmax.xlane.f32.xlu1 %v1124_v41 }
 0xa8b   :  { %v1120_v42 = vpop.f32.mrf.mxu3 }
 0xa8c   :  { %v1181_v43 = vpop.f32.mrf.mxu0 }
 0xa8d   :  { %v1185_v47 = vmul.f32 0.35355338, %v1181_v43 }
 0xa8f   :  { %v2694_v48 = vadd.f32 %v1185_v47, %v2422_v19 }
 0xa91   :  { %v1187_v51 = vsel %vm164_vm8, %v2694_v48, -inf }
 0xa92   :  { %1188 = vmax.xlane.f32.xlu1 %v1187_v51 }
 0xa93   :  { %v1244_v54 = vpop.f32.mrf.mxu3 }
 0xa94   :  { %v1248_v57 = vmul.f32 0.35355338, %v1244_v54  ;;  %v1183_v59 = vpop.f32.mrf.mxu0 }
 0xa96   :  { %v2699_v60 = vadd.f32 %v1248_v57, %v2422_v19 }
 0xa98   :  { %v1250_v62 = vsel %vm164_vm8, %v2699_v60, -inf }
 0xa99   :  { %1251 = vmax.xlane.f32.xlu2 %v1250_v62 }
 0xa9b   :  { %v1246_v63 = vpop.f32.mrf.mxu3 }
 0xa9c   :  { %v1307_v1 = vpop.f32.mrf.mxu0 }
 0xa9d   :  { %v1311_v56 = vmul.f32 0.35355338, %v1307_v1 }
 0xa9f   :  { %v1312_v2 = vadd.f32 %v1311_v56, %v2439_v45 }
 0xaa1   :  { %v1313_v58 = vsel %vm164_vm8, %v1312_v2, -inf }
 0xaa2   :  { %1314 = vmax.xlane.f32.xlu2 %v1313_v58 }
 0xaa3   :  { %v1366_v3 = vpop.f32.mrf.mxu3 }
 0xaa4   :  { %v1370_v5 = vmul.f32 0.35355338, %v1366_v3  ;;  %v1309_v6 = vpop.f32.mrf.mxu0 }
 0xaa6   :  { %v1371_v9 = vadd.f32 %v1370_v5, %v2439_v45 }
 0xaa8   :  { %v1372_v19 = vsel %vm164_vm8, %v1371_v9, -inf }
 0xaa9   :  { %1373 = vmax.xlane.f32.xlu0 %v1372_v19 }
 0xaab   :  { %v1368_v4 = vpop.f32.mrf.mxu3 }
 0xaac   :  { %v1429_v11 = vpop.f32.mrf.mxu0 }
 0xaad   :  { %v1433_v12 = vmul.f32 0.35355338, %v1429_v11 }
 0xaaf   :  { %v1434_v53 = vadd.f32 %v1433_v12, %v2439_v45 }
 0xab1   :  { %v1435_v49 = vsel %vm164_vm8, %v1434_v53, -inf }
 0xab2   :  { %1436 = vmax.xlane.f32.xlu2 %v1435_v49 }
 0xab3   :  { %v1492_v15 = vpop.f32.mrf.mxu3 }
 0xab4   :  { %v1496_v16 = vmul.f32 0.35355338, %v1492_v15  ;;  %v1431_v50 = vpop.f32.mrf.mxu0 }
 0xab6   :  { %v2710_v17 = vadd.f32 %v1496_v16, %v2439_v45 }
 0xab8   :  { %v1498_v0 = vsel %vm164_vm8, %v2710_v17, -inf }
 0xab9   :  { %1499 = vmax.xlane.f32.xlu1 %v1498_v0 }
 0xabb   :  { %v1494_v18 = vpop.f32.mrf.mxu3 }
 0xaca   :  { %1077 = vrot.lane.b32.xlu2 %v2636_v13, %s2237_s1 }
 0xaf5   :  { %v1067_v20 = vpop.xlane.xlu0 %1066 }
 0xaf6   :  { %v1068_v55 = vsub.f32 %v1064_v35, %v1067_v20 }
 0xaf8   :  { %v1069_v21 = vmul.f32 1.442695, %v1068_v55 }
 0xafa   :  { %2159 = vpow2.f32 %v1069_v21 }
 0xafc   :  { %v1126_v52 = vpop.xlane.xlu1 %1125 }
 0xafd   :  { %v1127_v61 = vsub.f32 %v1123_v38, %v1126_v52 }
 0xaff   :  { %v1128_v22 = vmul.f32 1.442695, %v1127_v61 }
 0xb00   :  { %v2160_v23 = vpop.eup %2159 }
 0xb01   :  { %2161 = vpow2.f32 %v1128_v22  ;;  %v1071_v45 = vsel %vm164_vm8, %v2160_v23, 0.0 }
 0xb02   :  { %1072 = vadd.xlane.f32.xlu1 %v1071_v45 }
 0xb05   :  { %v1189_v39 = vpop.xlane.xlu1 %1188 }
 0xb06   :  { %v1190_v38 = vsub.f32 %v2694_v48, %v1189_v39 }
 0xb07   :  { %v2162_v24 = vpop.eup %2161 }
 0xb08   :  { %v1130_v25 = vsel %vm164_vm8, %v2162_v24, 0.0  ;;  %v1191_v41 = vmul.f32 1.442695, %v1190_v38 }
 0xb09   :  { %1131 = vadd.xlane.f32.xlu0 %v1130_v25 }
 0xb0c   :  { %v1252_v26 = vpop.xlane.xlu2 %1251 }
 0xb0d   :  { %v1253_v43 = vsub.f32 %v2699_v60, %v1252_v26 }
 0xb0f   :  { %v1254_v51 = vmul.f32 1.442695, %v1253_v43 }
 0xb15   :  { %v1315_v27 = vpop.xlane.xlu2 %1314 }
 0xb16   :  { %v1316_v28 = vsub.f32 %v1312_v2, %v1315_v27 }
 0xb18   :  { %v1317_v29 = vmul.f32 1.442695, %v1316_v28 }
 0xb1a   :  { %2163 = vpow2.f32 %v1317_v29 }
 0xb1b   :  { %1199 = vrot.lane.b32.xlu1 %v2636_v13, %s2239_s29 }
 0xb1c   :  { %v1374_v36 = vpop.xlane.xlu0 %1373 }
 0xb1d   :  { %1262 = vrot.lane.b32.xlu0 %v2636_v13, %s2240_s30  ;;  %v1375_v37 = vsub.f32 %v1371_v9, %v1374_v36 }
 0xb1f   :  { %v1376_v40 = vmul.f32 1.442695, %v1375_v37 }
 0xb20   :  { %v2722_v44 = vpop.eup %2163 }
 0xb21   :  { %v1319_v30 = vsel %vm164_vm8, %v2722_v44, 0.0 }
 0xb22   :  { %1320 = vadd.xlane.f32.xlu2 %v1319_v30 }
 0xb23   :  { %1384 = vrot.lane.b32.xlu1 %v2650_v14, %s2238_s28 }
 0xb25   :  { %v1437_v31 = vpop.xlane.xlu2 %1436 }
 0xb26   :  { %v1438_v32 = vsub.f32 %v1434_v53, %v1437_v31 }
 0xb28   :  { %v1439_v46 = vmul.f32 1.442695, %v1438_v32 }
 0xb2a   :  { %2165 = vpow2.f32 %v1439_v46 }
 0xb2b   :  { %2167 = vpow2.f32 %v1376_v40 }
 0xb2c   :  { %2169 = vpow2.f32 %v1191_v41  ;;  %v1500_v60 = vpop.xlane.xlu1 %1499 }
 0xb2d   :  { %v1078_v33 = vpop.permute.xlu2 %1077  ;;  %2171 = vpow2.f32 %v1254_v51  ;;  %v1501_v5 = vsub.f32 %v2710_v17, %v1500_v60 }
 0xb2e   :  { %v1083_v34 = vsel %vm204_vm9, %v1078_v33, 0 }
 0xb2f   :  { %1092 = vmatpush.bf16.msrb.mxu1 %v1083_v34  ;;  %v1502_v9 = vmul.f32 1.442695, %v1501_v5  ;;  %v2066_v5 = vld [vmem:[%s2884_s6 + $0x10] sm:$0xff] }
 0xb30   :  { %v2729_v35 = vpop.eup %2165 }
 0xb31   :  { %v1441_v13 = vsel %vm164_vm8, %v2729_v35, 0.0  ;;  %v2734_v42 = vpop.eup %2167 }
 0xb32   :  { %1442 = vadd.xlane.f32.xlu2 %v1441_v13  ;;  %v1378_v47 = vsel %vm164_vm8, %v2734_v42, 0.0  ;;  %v2170_v54 = vpop.eup %2169 }
 0xb33   :  { %v1193_v57 = vsel %vm164_vm8, %v2170_v54, 0.0  ;;  %v2172_v48 = vpop.eup %2171 }
 0xb34   :  { %v1256_v59 = vsel %vm164_vm8, %v2172_v48, 0.0 }
 0xb47   :  { %1379 = vadd.xlane.f32.xlu0 %v1378_v47 }
 0xb4a   :  { %1447 = vrot.lane.b32.xlu2 %v2650_v14, %s2239_s29 }
 0xb4d   :  { %1194 = vadd.xlane.f32.xlu1 %v1193_v57 }
 0xb55   :  { %1257 = vadd.xlane.f32.xlu1 %v1256_v59 }
 0xb5b   :  { %1510 = vrot.lane.b32.xlu0 %v2650_v14, %s2240_s30 }
 0xb6e   :  { %1325 = vrot.lane.b32.xlu1 %v2650_v14, %s2237_s1 }
 0xb75   :  { %v1073_v62 = vpop.xlane.xlu1 %1072 }
 0xb76   :  { %2173 = vrcp.f32 %v1073_v62 }
 0xb7c   :  { %v2174_v63 = vpop.eup %2173  ;;  %v1132_v1 = vpop.xlane.xlu0 %1131 }
 0xb7d   :  { %v1075_v56 = vmul.f32 %v2174_v63, %v2160_v23  ;;  %2175 = vrcp.f32 %v1132_v1 }
 0xb7e   :  { %2177 = vpow2.f32 %v1502_v9 }
 0xb7f   :  { %v1076_v2 = vpack.c.bf16 %v1075_v56, %v1075_v56 }
 0xb81   :  { %1979 = vmatmul.msk.bf16.vlgmr.msrb.gmra.mxu1 %vm164_vm8, %v1076_v2 }
 0xb83   :  { %v2176_v58 = vpop.eup %2175 }
 0xb84   :  { %v1134_v3 = vmul.f32 %v2176_v58, %v2162_v24  ;;  %v2178_v12 = vpop.eup %2177 }
 0xb85   :  { %v1504_v15 = vsel %vm164_vm8, %v2178_v12, 0.0 }
 0xb86   :  { %v1135_v6 = vpack.c.bf16 %v1134_v3, %v1134_v3  ;;  %v2067_v3 = vld [vmem:[%s2884_s6 + $0x18] sm:$0xff]  ;;  %s1890_s6 = sshll.u32 %s2894_s16, 4  ;;  %s1891_s6 = int_to_ptr.hbm [resolvable:$true] %s1890_s6 }
 0xb87   :  { %1570 = vmatpush.bf16.msrb.mxu0 %v2067_v3 }
 0xb88   :  { %1981 = vmatmul.msk.bf16.vlgmr.msra.gmra.mxu2 %vm164_vm8, %v1135_v6 }
 0xb8b   :  { %1571 = vmatpush.bf16.msrb.mxu0 %v2066_v5 }
 0xb8d   :  { %v1200_v19 = vpop.permute.xlu1 %1199 }
 0xb8e   :  { %v1205_v14 = vsel %vm204_vm9, %v1200_v19, 0 }
 0xb8f   :  { %v1263_v4 = vpop.permute.xlu0 %1262  ;;  %1214 = vmatpush.bf16.msra.mxu1 %v1205_v14 }
 0xb90   :  { %v1268_v11 = vsel %vm204_vm9, %v1263_v4, 0 }
 0xb91   :  { %1277 = vmatpush.bf16.msrb.mxu2 %v1268_v11 }
 0xb95   :  { %v1385_v53 = vpop.permute.xlu1 %1384  ;;  %v1321_v55 = vpop.xlane.xlu2 %1320 }
 0xb96   :  { %v1390_v49 = vsel %vm204_vm9, %v1385_v53, 0 }
 0xb97   :  { %1399 = vmatpush.bf16.msra.mxu2 %v1390_v49 }
 0xb98   :  { %1505 = vadd.xlane.f32.xlu1 %v1504_v15 }
 0xba5   :  { %v1443_v45 = vpop.xlane.xlu2 %1442 }
 0xbad   :  { %v1448_v28 = vpop.permute.xlu2 %1447 }
 0xbae   :  { %v1453_v31 = vsel %vm204_vm9, %v1448_v28, 0  ;;  %v2068_v28 = vld [vmem:[%s2888_s10 + $0x10] sm:$0xff] }
 0xbba   :  { %v1380_v18 = vpop.xlane.xlu0 %1379 }
 0xbc0   :  { %v1195_v16 = vpop.xlane.xlu1 %1194 }
 0xbc1   :  { %2179 = vrcp.f32 %v1195_v16 }
 0xbc7   :  { %v2180_v50 = vpop.eup %2179 }
 0xbc8   :  { %v1197_v17 = vmul.f32 %v2180_v50, %v2170_v54  ;;  %v1258_v0 = vpop.xlane.xlu1 %1257 }
 0xbc9   :  { %2181 = vrcp.f32 %v1258_v0 }
 0xbca   :  { %v1198_v20 = vpack.c.bf16 %v1197_v17, %v1197_v17  ;;  %2183 = vrcp.f32 %v1380_v18 }
 0xbcb   :  { %2185 = vrcp.f32 %v1321_v55 }
 0xbcc   :  { %1983 = vmatmul.msk.bf16.vlgmr.msra.gmra.mxu1 %vm164_vm8, %v1198_v20  ;;  %2187 = vrcp.f32 %v1443_v45 }
 0xbcd   :  { %v1511_v61 = vpop.permute.xlu0 %1510 }
 0xbce   :  { %v1516_v23 = vsel %vm204_vm9, %v1511_v61, 0 }
 0xbcf   :  { %v2182_v21 = vpop.eup %2181 }
 0xbd0   :  { %v1260_v52 = vmul.f32 %v2182_v21, %v2172_v48  ;;  %v2184_v24 = vpop.eup %2183 }
 0xbd1   :  { %v2186_v25 = vpop.eup %2185  ;;  %v1382_v26 = vmul.f32 %v2184_v24, %v2734_v42 }
 0xbd2   :  { %v1261_v22 = vpack.c.bf16 %v1260_v52, %v1260_v52  ;;  %v1323_v27 = vmul.f32 %v2186_v25, %v2722_v44  ;;  %v2188_v33 = vpop.eup %2187  ;;  %v2069_v25 = vld [vmem:[%s2888_s10 + $0x18] sm:$0xff] }
 0xbd3   :  { %v1383_v32 = vpack.c.bf16 %v1382_v26, %v1382_v26  ;;  %v1445_v34 = vmul.f32 %v2188_v33, %v2729_v35 }
 0xbd4   :  { %1985 = vmatmul.msk.bf16.vlgmr.msrb.gmra.mxu2 %vm164_vm8, %v1261_v22  ;;  %v1324_v46 = vpack.c.bf16 %v1323_v27, %v1323_v27 }
 0xbd5   :  { %1525 = vmatpush.bf16.msrb.mxu2 %v1516_v23  ;;  %v1446_v13 = vpack.c.bf16 %v1445_v34, %v1445_v34 }
 0xbe0   :  { %v1326_v29 = vpop.permute.xlu1 %1325 }
 0xbe1   :  { %v1331_v30 = vsel %vm204_vm9, %v1326_v29, 0 }
 0xbe2   :  { %1340 = vmatpush.bf16.msrb.mxu1 %v1331_v30 }
 0xbe4   :  { %1989 = vmatmul.msk.bf16.vlgmr.msra.gmra.mxu2 %vm164_vm8, %v1383_v32 }
 0xbe5   :  { %1987 = vmatmul.msk.bf16.vlgmr.msrb.gmra.mxu1 %vm164_vm8, %v1324_v46 }
 0xbe6   :  { %1462 = vmatpush.bf16.msra.mxu1 %v1453_v31 }
 0xbea   :  { %1670 = vmatpush.bf16.msrb.mxu1 %v2069_v25 }
 0xbee   :  { %1671 = vmatpush.bf16.msrb.mxu1 %v2068_v28 }
 0xbf5   :  { %1991 = vmatmul.msk.bf16.vlgmr.msra.gmra.mxu1 %vm164_vm8, %v1446_v13 }
 0xbfe   :  { %v1094_v44 = vpop.f32.mrf.mxu1 }
 0xbff   :  { %1098 = vst.msk [vmem:[#allocation2] sm:$0xff] %vm164_vm8, %v1094_v44 }
 0xc06   :  { %v1096_v36 = vpop.f32.mrf.mxu1 }
 0xc0b   :  { %v1153_v37 = vpop.f32.mrf.mxu2  ;;  %v1506_v39 = vpop.xlane.xlu1 %1505 }
 0xc0c   :  { %2189 = vrcp.f32 %v1506_v39  ;;  %1158 = vrot.lane.b32.xlu0 %v1153_v37, %s2242_s17 }
 0xc12   :  { %v2190_v40 = vpop.eup %2189 }
 0xc13   :  { %v1508_v38 = vmul.f32 %v2190_v40, %v2178_v12  ;;  %v1155_v41 = vpop.f32.mrf.mxu2  ;;  %v2102_v12 = vld [vmem:[%s2885_s7 + $0x1] ss:$0 sm:$0xff] }
 0xc15   :  { %v1509_v42 = vpack.c.bf16 %v1508_v38, %v1508_v38 }
 0xc17   :  { %1993 = vmatmul.msk.bf16.vlgmr.msrb.gmra.mxu2 %vm164_vm8, %v1509_v42  ;;  %v2103_v42 = vld [vmem:[%s2886_s8 + $0x1] ss:$0 sm:$0xff] }
 0xc49   :  { %v1216_v43 = vpop.f32.mrf.mxu1 }
 0xc4a   :  { %1221 = vrot.lane.b32.xlu2 %v1216_v43, %s2902_s5 }
 0xc51   :  { %v1218_v35 = vpop.f32.mrf.mxu1 }
 0xc57   :  { %v1279_v47 = vpop.f32.mrf.mxu2 }
 0xc58   :  { %1284 = vrot.lane.b32.xlu1 %v1279_v47, %s2903_s20 }
 0xc5f   :  { %v1281_v51 = vpop.f32.mrf.mxu2 }
 0xc60   :  { %v2104_v51 = vld [vmem:[%s2887_s9 + $0x1] ss:$0 sm:$0xff] }
 0xc62   :  { %v1342_v54 = vpop.f32.mrf.mxu1 }
 0xc63   :  { %1346 = vst.msk [vmem:[#allocation2 + $0x8] sm:$0xff] %vm164_vm8, %v1342_v54 }
 0xc67   :  { %v1401_v57 = vpop.f32.mrf.mxu2 }
 0xc68   :  { %1406 = vrot.lane.b32.xlu0 %v1401_v57, %s2242_s17 }
 0xc6a   :  { %v1344_v48 = vpop.f32.mrf.mxu1 }
 0xc6f   :  { %v1403_v59 = vpop.f32.mrf.mxu2 }
 0xc72   :  { %v1464_v60 = vpop.f32.mrf.mxu1 }
 0xc73   :  { %1469 = vrot.lane.b32.xlu0 %v1464_v60, %s2902_s5 }
 0xc7a   :  { %v1466_v62 = vpop.f32.mrf.mxu1 }
 0xc7e   :  { %v1159_v63 = vpop.permute.xlu0 %1158 }
 0xc7f   :  { %1161 = vst.msk [vmem:[#allocation2] sm:$0xff] %vm284_vm10, %v1159_v63  ;;  %v2105_v63 = vld [vmem:[%s2889_s11 + $0x1] ss:$0 sm:$0xff] }
 0xc9a   :  { %v1527_v1 = vpop.f32.mrf.mxu2 }
 0xc9b   :  { %1532 = vrot.lane.b32.xlu2 %v1527_v1, %s2903_s20 }
 0xca2   :  { %v1529_v56 = vpop.f32.mrf.mxu2 }
 0xca4   :  { %v1222_v2 = vpop.permute.xlu2 %1221 }
 0xca5   :  { %1224 = vst.msk [vmem:[#allocation2] sm:$0xff] %vm348_vm11, %v1222_v2 }
 0xcca   :  { %v1285_v58 = vpop.permute.xlu1 %1284 }
 0xccb   :  { %1287 = vst.msk [vmem:[#allocation2] sm:$0xff] %vm412_vm12, %v1285_v58 }
 0xcd2   :  { %v1536_v14 = vld [vmem:[#allocation2] sm:$0xff] }
 0xcda   :  { %v1407_v6 = vpop.permute.xlu0 %1406 }
 0xcdb   :  { %1409 = vst.msk [vmem:[#allocation2 + $0x8] sm:$0xff] %vm284_vm10, %v1407_v6 }
 0xce5   :  { %v1470_v9 = vpop.permute.xlu0 %1469 }
 0xce6   :  { %1472 = vst.msk [vmem:[#allocation2 + $0x8] sm:$0xff] %vm348_vm11, %v1470_v9 }
 0xcf5   :  { %v1533_v19 = vpop.permute.xlu2 %1532 }
 0xcf6   :  { %1535 = vst.msk [vmem:[#allocation2 + $0x8] sm:$0xff] %vm412_vm12, %v1533_v19 }
 0xcfd   :  { %v1537_v4 = vld [vmem:[#allocation2 + $0x8] sm:$0xff] }
 0xcfe   :  { %v1545_v11 = vpack.c.bf16 %v1537_v4, %v1536_v14 }
 0xd00   :  { %2007 = vmatmul.msk.bf16.vlgmr.msrb.gmra.mxu0 %vm59_vm0, %v1545_v11 }
 0xd7d   :  { %v1573_v53 = vpop.f32.mrf.mxu0 }
 0xd7e   :  { %v1574_v49 = vadd.f32 %v2102_v12, %v1573_v53 }
 0xd80   :  { %v1578_v15 = vadd.f32 %v1574_v49, %v2626_v7 }
 0xd82   :  { %v1584_v16 = vsel %vm59_vm0, %v1578_v15, 0.0 }
 0xd83   :  { %1585 = vadd.xlane.f32.xlu0 %v1584_v16 }
 0xd85   :  { %v1575_v50 = vpop.f32.mrf.mxu0 }
 0xd86   :  { %v1576_v17 = vadd.f32 %v2102_v12, %v1575_v50 }
 0xd88   :  { %v1579_v0 = vadd.f32 %v1576_v17, %v2628_v8  ;;  %v2073_v17 = vld [vmem:[%s2890_s12 + $0x38] sm:$0xff] }
 0xd89   :  { %1812 = vmatpush.bf16.msrb.mxu3 %v2073_v17 }
 0xd8a   :  { %v1587_v18 = vsel %vm59_vm0, %v1579_v0, 0.0 }
 0xd8b   :  { %1588 = vadd.xlane.f32.xlu2 %v1587_v18 }
 0xdf6   :  { %v1586_v20 = vpop.xlane.xlu0 %1585 }
 0xdf7   :  { %v1590_v55 = vmul.f32 %v1586_v20, %v2339_v10 }
 0xdf9   :  { %v1592_v21 = vsub.f32 %v1578_v15, %v1590_v55 }
 0xdfb   :  { %v1594_v52 = vmul.f32 %v1592_v21, %v1592_v21 }
 0xdfd   :  { %v1596_v61 = vsel %vm59_vm0, %v1594_v52, 0.0 }
 0xdfe   :  { %v1589_v22 = vpop.xlane.xlu2 %1588  ;;  %1597 = vadd.xlane.f32.xlu1 %v1596_v61 }
 0xdff   :  { %v1591_v7 = vmul.f32 %v1589_v22, %v2339_v10  ;;  %v2072_v22 = vld [vmem:[%s2890_s12 + $0x30] sm:$0xff] }
 0xe00   :  { %1813 = vmatpush.bf16.msrb.mxu3 %v2072_v22 }
 0xe01   :  { %v1593_v23 = vsub.f32 %v1579_v0, %v1591_v7 }
 0xe03   :  { %v1595_v45 = vmul.f32 %v1593_v23, %v1593_v23 }
 0xe05   :  { %v1599_v24 = vsel %vm59_vm0, %v1595_v45, 0.0 }
 0xe06   :  { %1600 = vadd.xlane.f32.xlu0 %v1599_v24 }
 0xe71   :  { %v1598_v8 = vpop.xlane.xlu1 %1597 }
 0xe72   :  { %v1602_v26 = vmul.f32 %v1598_v8, %v2339_v10 }
 0xe74   :  { %v1604_v27 = vadd.f32 1e-12, %v1602_v26 }
 0xe76   :  { %2191 = vrsqrt.f32 %v1604_v27  ;;  %vm1612_vm9 = vweird.f32 %v1604_v27 }
 0xe79   :  { %v1601_v29 = vpop.xlane.xlu0 %1600 }
 0xe7a   :  { %v1603_v30 = vmul.f32 %v1601_v29, %v2339_v10 }
 0xe7c   :  { %v2192_v31 = vpop.eup %2191  ;;  %v1605_v32 = vadd.f32 1e-12, %v1603_v30 }
 0xe7d   :  { %v1607_v46 = vmul.f32 %v2192_v31, %v1604_v27  ;;  %vm1613_vm8 = vweird.f32 %v2192_v31  ;;  %v2071_v27 = vld [vmem:[%s2890_s12 + $0x28] sm:$0xff] }
 0xe7e   :  { %2193 = vrsqrt.f32 %v1605_v32  ;;  %vm1614_vm10 = vmor %vm1612_vm9, %vm1613_vm8  ;;  %vm1622_vm12 = vweird.f32 %v1605_v32  ;;  %1814 = vmatpush.bf16.msrb.mxu3 %v2071_v27 }
 0xe7f   :  { %v1608_v33 = vmul.f32 %v2192_v31, %v1607_v46  ;;  %v2070_v46 = vld [vmem:[%s2890_s12 + $0x20] sm:$0xff] }
 0xe81   :  { %v1609_v34 = vmul.f32 0.5, %v1608_v33 }
 0xe82   :  { %1815 = vmatpush.bf16.msrb.mxu3 %v2070_v46 }
 0xe83   :  { %v1610_v13 = vsub.f32 1.5, %v1609_v34 }
 0xe84   :  { %v2194_v44 = vpop.eup %2193 }
 0xe85   :  { %v1611_v36 = vmul.f32 %v2192_v31, %v1610_v13  ;;  %v1617_v37 = vmul.f32 %v2194_v44, %v1605_v32  ;;  %vm1623_vm11 = vweird.f32 %v2194_v44 }
 0xe86   :  { %vm1624_vm14 = vmor %vm1622_vm12, %vm1623_vm11 }
 0xe87   :  { %v1618_v39 = vmul.f32 %v2194_v44, %v1617_v37  ;;  %v1615_v40 = vsel %vm1614_vm10, %v2192_v31, %v1611_v36 }
 0xe88   :  { %v1626_v43 = vmul.f32 %v1615_v40, %v1592_v21 }
 0xe89   :  { %v1619_v38 = vmul.f32 0.5, %v1618_v39 }
 0xe8a   :  { %v1631_v54 = vmul.f32 %v2103_v42, %v1626_v43 }
 0xe8b   :  { %v1620_v41 = vsub.f32 1.5, %v1619_v38 }
 0xe8c   :  { %v2812_v59 = vadd.f32 %v2104_v51, %v1631_v54 }
 0xe8d   :  { %v1621_v35 = vmul.f32 %v2194_v44, %v1620_v41 }
 0xe8f   :  { %v1625_v47 = vsel %vm1624_vm14, %v2194_v44, %v1621_v35 }
 0xe90   :  { %v1627_v57 = vmul.f32 %v1625_v47, %v1593_v23 }
 0xe92   :  { %v1632_v48 = vmul.f32 %v2103_v42, %v1627_v57 }
 0xe94   :  { %v2814_v60 = vadd.f32 %v2104_v51, %v1632_v48 }
 0xe96   :  { %v1645_v62 = vpack.c.bf16 %v2814_v60, %v2812_v59 }
 0xe98   :  { %2023 = vmatmul.msk.bf16.vlgmr.msrb.gmra.mxu1 %vm59_vm0, %v1645_v62 }
 0xf15   :  { %v1673_v1 = vpop.f32.mrf.mxu1 }
 0xf16   :  { %v2822_v56 = vadd.f32 %v2105_v63, %v1673_v1 }
 0xf18   :  { %v2825_v2 = vmul.f32 0.70710677, %v2822_v56 }
 0xf1a   :  { %v1682_v58 = vmul.f32 %v2825_v2, %v2825_v2 }
 0xf1c   :  { %v1683_v3 = vmin.f32 %v1682_v58, 16.0 }
 0xf1d   :  { %v1675_v5 = vpop.f32.mrf.mxu1 }
 0xf1e   :  { %v1684_v6 = vmul.f32 2.1237322e-06, %v1683_v3  ;;  %v1695_v9 = vmul.f32 3.8918573e-05, %v1683_v3  ;;  %v2829_v19 = vadd.f32 %v2105_v63, %v1675_v5 }
 0xf20   :  { %v1685_v14 = vadd.f32 0.00028619796, %v1684_v6  ;;  %v1696_v4 = vadd.f32 0.001143296, %v1695_v9  ;;  %v2832_v11 = vmul.f32 0.70710677, %v2829_v19 }
 0xf22   :  { %v1697_v12 = vmul.f32 %v1696_v4, %v1683_v3  ;;  %v1722_v53 = vmul.f32 %v2832_v11, %v2832_v11  ;;  %v1686_v49 = vmul.f32 %v1685_v14, %v1683_v3 }
 0xf24   :  { %v1698_v15 = vadd.f32 0.014752088, %v1697_v12  ;;  %v1723_v16 = vmin.f32 %v1722_v53, 16.0  ;;  %v1687_v20 = vadd.f32 0.0036580483, %v1686_v49 }
 0xf26   :  { %v1699_v50 = vmul.f32 %v1698_v15, %v1683_v3  ;;  %v1724_v0 = vmul.f32 2.1237322e-06, %v1723_v16  ;;  %v1735_v18 = vmul.f32 3.8918573e-05, %v1723_v16  ;;  %v1688_v45 = vmul.f32 %v1687_v20, %v1683_v3 }
 0xf28   :  { %v1700_v55 = vadd.f32 0.112945676, %v1699_v50  ;;  %v1725_v21 = vadd.f32 0.00028619796, %v1724_v0  ;;  %v1736_v52 = vadd.f32 0.001143296, %v1735_v18 }
 0xf29   :  { %v1689_v29 = vadd.f32 0.05243302, %v1688_v45 }
 0xf2a   :  { %v1701_v61 = vmul.f32 %v1700_v55, %v1683_v3  ;;  %v1726_v7 = vmul.f32 %v1725_v21, %v1723_v16  ;;  %v1737_v23 = vmul.f32 %v1736_v52, %v1723_v16  ;;  %v1678_v21 = vmul.f32 0.5, %v2822_v56 }
 0xf2b   :  { %v1690_v34 = vmul.f32 %v1689_v29, %v1683_v3  ;;  %v1679_v52 = vmul.f32 0.5, %v2829_v19 }
 0xf2c   :  { %v1702_v24 = vadd.f32 0.4994258, %v1701_v61  ;;  %v1727_v8 = vadd.f32 0.0036580483, %v1726_v7  ;;  %v1738_v25 = vadd.f32 0.014752088, %v1737_v23 }
 0xf2d   :  { %v1691_v39 = vadd.f32 0.18741608, %v1690_v34 }
 0xf2e   :  { %v1703_v26 = vmul.f32 %v1702_v24, %v1683_v3  ;;  %v1739_v28 = vmul.f32 %v1738_v25, %v1723_v16  ;;  %v1728_v31 = vmul.f32 %v1727_v8, %v1723_v16 }
 0xf2f   :  { %v1692_v43 = vmul.f32 %v1691_v39, %v1683_v3 }
 0xf30   :  { %v1704_v30 = vadd.f32 1.0, %v1703_v26  ;;  %v1740_v32 = vadd.f32 0.112945676, %v1739_v28  ;;  %v1729_v13 = vadd.f32 0.05243302, %v1728_v31 }
 0xf31   :  { %v1693_v48 = vadd.f32 1.1283791, %v1692_v43 }
 0xf32   :  { %2195 = vrcp.f32 %v1704_v30  ;;  %v1741_v33 = vmul.f32 %v1740_v32, %v1723_v16  ;;  %v1730_v38 = vmul.f32 %v1729_v13, %v1723_v16  ;;  %v1716_v47 = vand.u32 2147483648, %v1704_v30 }
 0xf33   :  { %v1714_v54 = vand.u32 2147483647, %v1704_v30  ;;  %vm1710_vm1 = vweird.f32 %v1704_v30  ;;  %v1694_v9 = vmul.f32 %v1693_v48, %v2825_v2 }
 0xf34   :  { %v1742_v44 = vadd.f32 0.4994258, %v1741_v33  ;;  %v1731_v51 = vadd.f32 0.18741608, %v1730_v38  ;;  %v1717_v1 = vor.u32 1.1754944e-38, %v1716_v47 }
 0xf35   :  { %vm1715_vm4 = vcmp.eq.f32.partialorder %v1714_v54, 8.507059e+37 }
 0xf36   :  { %v1743_v36 = vmul.f32 %v1742_v44, %v1723_v16  ;;  %v1732_v58 = vmul.f32 %v1731_v51, %v1723_v16 }
 0xf38   :  { %v2196_v37 = vpop.eup %2195  ;;  %v1744_v41 = vadd.f32 1.0, %v1743_v36  ;;  %v1733_v3 = vadd.f32 1.1283791, %v1732_v58 }
 0xf39   :  { %v1706_v40 = vmul.f32 %v2196_v37, %v1704_v30  ;;  %vm1711_vm15 = vweird.f32 %v2196_v37 }
 0xf3a   :  { %2197 = vrcp.f32 %v1744_v41  ;;  %vm1712_vm3 = vmor %vm1710_vm1, %vm1711_vm15  ;;  %v1756_v4 = vand.u32 2147483648, %v1744_v41  ;;  %v1754_v49 = vand.u32 2147483647, %v1744_v41  ;;  %vm1750_vm6 = vweird.f32 %v1744_v41 }
 0xf3b   :  { %v1707_v42 = vsub.f32 1.0, %v1706_v40  ;;  %v1734_v0 = vmul.f32 %v1733_v3, %v2832_v11  ;;  %v2106_v11 = vld [vmem:[%s2891_s13 + $0x1] ss:$0 sm:$0xff] }
 0xf3c   :  { %v1757_v50 = vor.u32 1.1754944e-38, %v1756_v4  ;;  %vm1755_vm13 = vcmp.eq.f32.partialorder %v1754_v49, 8.507059e+37 }
 0xf3d   :  { %v1708_v35 = vmul.f32 %v2196_v37, %v1707_v42 }
 0xf3f   :  { %v1709_v57 = vadd.f32 %v2196_v37, %v1708_v35 }
 0xf40   :  { %v2198_v62 = vpop.eup %2197 }
 0xf41   :  { %v1713_v63 = vsel %vm1712_vm3, %v2196_v37, %v1709_v57  ;;  %v1746_v5 = vmul.f32 %v2198_v62, %v1744_v41  ;;  %vm1751_vm5 = vweird.f32 %v2198_v62  ;;  %v2107_v57 = vld [vmem:[%s2892_s14 + $0x1] ss:$0 sm:$0xff]  ;;  %s2244_s14 = smov [#allocation3]  }
 0xf42   :  { %v1718_v6 = vsel %vm1715_vm4, %v1717_v1, %v1713_v63  ;;  %vm1752_vm7 = vmor %vm1750_vm6, %vm1751_vm5  ;;  %v2108_v63 = vld [vmem:[%s2893_s15 + $0x1] ss:$0 sm:$0xff]  ;;  %s1888_s23 = sshll.u32 %s2244_s14, 4  ;;  %s2245_s15 = smov 128   ;;  %s1889_s23 = int_to_ptr.vmem [resolvable:$true] %s1888_s23 }
 0xf43   :  { %v1747_v14 = vsub.f32 1.0, %v1746_v5  ;;  %v1719_v12 = vmul.f32 %v1718_v6, %v1694_v9 }
 0xf45   :  { %v1748_v53 = vmul.f32 %v2198_v62, %v1747_v14  ;;  %v2024_v17 = vclamps-f32 %v1719_v12, 1.0 }
 0xf47   :  { %v1749_v15 = vadd.f32 %v2198_v62, %v1748_v53  ;;  %v1762_v55 = vadd.f32 1.0, %v2024_v17 }
 0xf49   :  { %v1753_v16 = vsel %vm1752_vm7, %v2198_v62, %v1749_v15  ;;  %v1764_v22 = vmul.f32 %v1762_v55, %v1678_v21 }
 0xf4a   :  { %v1758_v18 = vsel %vm1755_vm13, %v1757_v50, %v1753_v16 }
 0xf4b   :  { %v1759_v20 = vmul.f32 %v1758_v18, %v1734_v0 }
 0xf4d   :  { %v2025_v2 = vclamps-f32 %v1759_v20, 1.0 }
 0xf4f   :  { %v1763_v61 = vadd.f32 1.0, %v2025_v2 }
 0xf51   :  { %v1765_v7 = vmul.f32 %v1763_v61, %v1679_v52 }
 0xf53   :  { %v1777_v23 = vpack.c.bf16 %v1765_v7, %v1764_v22 }
 0xf55   :  { %2051 = vmatmul.msk.bf16.vlgmr.msrb.gmra.mxu3 %vm924_vm2, %v1777_v23 }
 0xfd8   :  { %v1817_v45 = vpop.f32.mrf.mxu3 }
 0xfd9   :  { %v1818_v24 = vadd.f32 %v2106_v11, %v1817_v45 }
 0xfdb   :  { %v1822_v8 = vadd.f32 %v1818_v24, %v2812_v59 }
 0xfdd   :  { %v1828_v25 = vsel %vm59_vm0, %v1822_v8, 0.0 }
 0xfde   :  { %1829 = vadd.xlane.f32.xlu2 %v1828_v25 }
 0xfe0   :  { %v1819_v56 = vpop.f32.mrf.mxu3 }
 0xfe1   :  { %v1820_v26 = vadd.f32 %v2106_v11, %v1819_v56 }
 0xfe3   :  { %v1823_v19 = vadd.f32 %v1820_v26, %v2814_v60 }
 0xfe5   :  { %v1831_v27 = vsel %vm59_vm0, %v1823_v19, 0.0 }
 0xfe6   :  { %1832 = vadd.xlane.f32.xlu0 %v1831_v27 }
0x1051   :  { %v1830_v28 = vpop.xlane.xlu2 %1829 }
0x1052   :  { %v1834_v29 = vmul.f32 %v1830_v28, %v2339_v10 }
0x1054   :  { %v1836_v30 = vsub.f32 %v1822_v8, %v1834_v29 }
0x1056   :  { %v1838_v31 = vmul.f32 %v1836_v30, %v1836_v30 }
0x1058   :  { %v1840_v32 = vsel %vm59_vm0, %v1838_v31, 0.0 }
0x1059   :  { %v1833_v46 = vpop.xlane.xlu0 %1832  ;;  %1841 = vadd.xlane.f32.xlu2 %v1840_v32 }
0x105a   :  { %v1835_v59 = vmul.f32 %v1833_v46, %v2339_v10 }
0x105c   :  { %v1837_v33 = vsub.f32 %v1823_v19, %v1835_v59 }
0x105e   :  { %v1839_v34 = vmul.f32 %v1837_v33, %v1837_v33 }
0x1060   :  { %v1843_v13 = vsel %vm59_vm0, %v1839_v34, 0.0 }
0x1061   :  { %1844 = vadd.xlane.f32.xlu0 %v1843_v13 }
0x10cc   :  { %v1842_v60 = vpop.xlane.xlu2 %1841 }
0x10cd   :  { %v1846_v44 = vmul.f32 %v1842_v60, %v2339_v10 }
0x10cf   :  { %v1848_v36 = vadd.f32 1e-12, %v1846_v44 }
0x10d1   :  { %2199 = vrsqrt.f32 %v1848_v36  ;;  %vm1856_vm8 = vweird.f32 %v1848_v36 }
0x10d4   :  { %v1845_v37 = vpop.xlane.xlu0 %1844 }
0x10d5   :  { %v1847_v39 = vmul.f32 %v1845_v37, %v2339_v10 }
0x10d7   :  { %v2200_v40 = vpop.eup %2199  ;;  %v1849_v38 = vadd.f32 1e-12, %v1847_v39 }
0x10d8   :  { %v1851_v41 = vmul.f32 %v2200_v40, %v1848_v36  ;;  %vm1857_vm2 = vweird.f32 %v2200_v40 }
0x10d9   :  { %2201 = vrsqrt.f32 %v1849_v38  ;;  %vm1858_vm9 = vmor %vm1856_vm8, %vm1857_vm2  ;;  %vm1866_vm11 = vweird.f32 %v1849_v38 }
0x10da   :  { %v1852_v42 = vmul.f32 %v2200_v40, %v1851_v41 }
0x10dc   :  { %v1853_v43 = vmul.f32 0.5, %v1852_v42 }
0x10de   :  { %v1854_v35 = vsub.f32 1.5, %v1853_v43 }
0x10df   :  { %v2202_v47 = vpop.eup %2201 }
0x10e0   :  { %v1855_v51 = vmul.f32 %v2200_v40, %v1854_v35  ;;  %v1861_v54 = vmul.f32 %v2202_v47, %v1849_v38  ;;  %vm1867_vm10 = vweird.f32 %v2202_v47 }
0x10e1   :  { %vm1868_vm12 = vmor %vm1866_vm11, %vm1867_vm10 }
0x10e2   :  { %v1859_v48 = vsel %vm1858_vm9, %v2200_v40, %v1855_v51  ;;  %v1862_v62 = vmul.f32 %v2202_v47, %v1861_v54 }
0x10e3   :  { %v1870_v10 = vmul.f32 %v1859_v48, %v1836_v30 }
0x10e4   :  { %v1863_v1 = vmul.f32 0.5, %v1862_v62 }
0x10e5   :  { %v1875_v58 = vmul.f32 %v2107_v57, %v1870_v10 }
0x10e6   :  { %v1864_v5 = vsub.f32 1.5, %v1863_v1 }
0x10e7   :  { %v1880_v6 = vadd.f32 %v2108_v63, %v1875_v58 }
0x10e8   :  { %v1865_v9 = vmul.f32 %v2202_v47, %v1864_v5 }
0x10e9   :  { %1882 = vst.msk [vmem:[#allocation3] sm:$0xff] %vm59_vm0, %v1880_v6 }
0x10ea   :  { %v1869_v14 = vsel %vm1868_vm12, %v2202_v47, %v1865_v9 }
0x10eb   :  { %v1871_v3 = vmul.f32 %v1869_v14, %v1837_v33 }
0x10ed   :  { %v1876_v4 = vmul.f32 %v2107_v57, %v1871_v3 }
0x10ef   :  { %v1881_v12 = vadd.f32 %v2108_v63, %v1876_v4 }
0x10f1   :  { %1883 = vst.msk [vmem:[#allocation3 + $0x8] sm:$0xff] %vm59_vm0, %v1881_v12 }
0x10f2   :  { %1896 = dma.vmem_to_hbm [thread:$0]  %s1889_s23, 256, %s1891_s6, [#allocation4], %s2245_s15, %s2245_s15, %s2242_s17  }
0x10f3   :  { %2227 = dma.done.wait [#allocation4], 256  }
0x10f4   :  { %2228 = vsyncadd [#allocation4], 4294967040 }
0x10f5   :  { %1901 = vsyncpa [#allocation4], 1 }

</bundles_post_ra>
